<compile_context>
chip_gen: v5e
topology: v5e:2x2
jax: 0.10.0
libtpu: 0.0.40
codegen_flags: <defaults>
</compile_context>

<pallas_src>
import functools

import jax
import jax.numpy as jnp
from jax import lax
from jax.experimental import pallas as pl
from jax.experimental.pallas import tpu as pltpu

# LIF parameters (MA-SNN default pa_dict style).
ALPHA = 0.3
BETA = 0.3
VRESET = 0.0
VTHRES = 0.3


# --------------------------------------------------------------------------
# VMEM budgeting / block-size selection helpers
# --------------------------------------------------------------------------
def _vmem_budget_bytes():
    """Per-generation VMEM budget, with headroom for Mosaic-internal scratch."""
    cap = 64 << 20                      # conservative default = v7x physical VMEM per TC
    try:
        info = pltpu.get_tpu_info()
        cap = int(getattr(info, "vmem_capacity_bytes", cap)) or cap
    except Exception:
        pass
    return min(int(cap * 0.7), 100 << 20)   # ~45 MiB on v7x, ~90 MiB on v5e/v6e


def _largest_divisor(n, cap, min_quotient=1):
    """Largest d | n with d <= cap, preferring n // d >= min_quotient (grid parallelism)."""
    cap = max(1, min(int(cap), n))
    best_any, best_good = 1, None
    for d in range(1, cap + 1):
        if n % d == 0:
            best_any = d
            if n // d >= min_quotient:
                best_good = d
    return best_good if best_good is not None else best_any


# --------------------------------------------------------------------------
# Kernel 1: fused-im2col conv (single MXU dot) + bias + per-image mean/max pooling.
# --------------------------------------------------------------------------
def _conv_stats_kernel(x_ref, m_ref, w_ref, b_ref, y_ref, mean_ref, max_ref, rhs_ref,
                       *, nb, ksize, pad, w_img, hw, cin):
    """x_ref:(nb,Cin,Lp) f32  m_ref:(k,HW) f32  w_ref:(Cout,k*k*Cin) bf16  b_ref:(Cout,1)
    y_ref:(Cout,nb*HW) bf16  mean/max_ref:(nb,128) f32  rhs_ref:(k*k*Cin,nb*HW) bf16 scratch."""
    # Stage the stacked im2col RHS.  These static loops are data staging only (no dots):
    # the images are folded into the matmul lane dim so ONE MXU dot does all the compute.
    for i in range(nb):
        for kh in range(ksize):
            for kw in range(ksize):
                tap = kh * ksize + kw
                xs = x_ref[i, :, pl.ds(kh * w_img + kw, hw)]       # (Cin, HW) lane slice
                if kw != pad:                                      # zero wrapped columns
                    xs = xs * m_ref[pl.ds(kw, 1), :]
                rhs_ref[pl.ds(tap * cin, cin), pl.ds(i * hw, hw)] = xs.astype(rhs_ref.dtype)

    # Single bf16 MXU matmul with f32 accumulation: (Cout, k*k*Cin) x (k*k*Cin, nb*HW).
    acc = jnp.dot(w_ref[...], rhs_ref[...], preferred_element_type=jnp.float32)
    acc = acc + b_ref[...]                                         # (Cout, 1) bias broadcast
    y_ref[...] = acc.astype(y_ref.dtype)                           # lane-dense bf16 store

    # Fused per-image (C,H,W) mean / max pooling for the TA attention (f32, no extra HBM pass).
    cout = acc.shape[0]
    inv_cnt = 1.0 / float(cout * hw)
    for i in range(nb):
        v = acc[:, i * hw:(i + 1) * hw]
        tot = jnp.sum(jnp.sum(v, axis=1, keepdims=True), axis=0, keepdims=True)
        mxv = jnp.max(jnp.max(v, axis=1, keepdims=True), axis=0, keepdims=True)
        mean_ref[pl.ds(i, 1), :] = jnp.broadcast_to(tot * inv_cnt, (1, 128))
        max_ref[pl.ds(i, 1), :] = jnp.broadcast_to(mxv, (1, 128))


def conv2d_stats_pallas(x, w, b, *, padding=1, img_block=None):
    """x: (N,Cin,H,W), w: (Cout,Cin,k,k), b: (Cout,).
    Returns y (Cout, N*H*W) bf16, per-image mean (N,), per-image max (N,)."""
    N, Cin, H, W = x.shape
    Cout, _, KH, KW = w.shape
    assert KH == KW, "square kernels only"
    k = KH
    # TODO(synk): only stride=1 'same' convolutions (2*padding == k-1) are implemented.
    assert 2 * padding == k - 1, "only 'same' convolutions supported"
    HW = H * W
    Lp = HW + 2 * padding * (W + 1)

    budget = _vmem_budget_bytes()
    # Per-image footprint: double-buffered x & y blocks + the bf16 im2col scratch.
    per_img = 2 * Cin * Lp * x.dtype.itemsize + 2 * Cout * HW * 2 + k * k * Cin * HW * 2
    cap = min(max(budget // (3 * per_img), 1), 32, N)
    if img_block is not None:
        cap = min(cap, max(int(img_block), 1))
    nb = _largest_divisor(N, cap, min_quotient=2)     # keep >=2 grid steps for 2 TCs (v7x)

    # One pad builds the H-padded, row-major-flattened layout with halo:
    #   xf[n, ci, padding*(W+1) + r*W + c] = x[n, ci, r, c]
    off0 = padding * (W + 1)
    xf = jnp.pad(x.reshape(N, Cin, HW), ((0, 0), (0, 0), (off0, Lp - off0 - HW)))

    # Stacked conv weights, row order = (kh*k + kw)*Cin + ci, bf16 for the MXU.
    w2 = jnp.transpose(w, (0, 2, 3, 1)).reshape(Cout, k * k * Cin).astype(jnp.bfloat16)

    # Column-boundary masks per kw (the kw == padding tap never needs one).
    col = jnp.arange(HW, dtype=jnp.int32) % W
    masks = jnp.stack(
        [((col >= padding - kw) & (col < W + padding - kw)).astype(x.dtype)
         for kw in range(k)])                                      # (k, HW)

    kern = functools.partial(_conv_stats_kernel, nb=nb, ksize=k, pad=padding,
                             w_img=W, hw=HW, cin=Cin)
    y, mean_o, max_o = pl.pallas_call(
        kern,
        out_shape=(jax.ShapeDtypeStruct((Cout, N * HW), jnp.bfloat16),
                   jax.ShapeDtypeStruct((N, 128), jnp.float32),
                   jax.ShapeDtypeStruct((N, 128), jnp.float32)),
        grid=(N // nb,),
        in_specs=[
            pl.BlockSpec((nb, Cin, Lp), lambda n: (n, 0, 0)),
            pl.BlockSpec((k, HW), lambda n: (0, 0)),
            pl.BlockSpec((Cout, k * k * Cin), lambda n: (0, 0)),
            pl.BlockSpec((Cout, 1), lambda n: (0, 0)),
        ],
        out_specs=(
            pl.BlockSpec((Cout, nb * HW), lambda n: (0, n)),
            pl.BlockSpec((nb, 128), lambda n: (n, 0)),
            pl.BlockSpec((nb, 128), lambda n: (n, 0)),
        ),
        scratch_shapes=[pltpu.VMEM((k * k * Cin, nb * HW), jnp.bfloat16)],
        compiler_params=pltpu.CompilerParams(
            dimension_semantics=("parallel",),
            vmem_limit_bytes=budget),
    )(xf, masks, w2, b.reshape(Cout, 1).astype(jnp.float32))
    return y, mean_o[:, 0], max_o[:, 0]


# --------------------------------------------------------------------------
# Kernel 2: fused TA scaling + LIF recurrence (Tb timesteps per grid step).
# --------------------------------------------------------------------------
def _scale_lif_kernel(s_ref, y_ref, o_ref, h_ref, *, alpha, beta, vreset, vthres, tb, hw):
    """s_ref:(B,T) f32 SMEM  y_ref:(C,tb*HW) bf16  o_ref:(1,tb,C,HW)  h_ref:(C,HW) f32 scratch."""
    b = pl.program_id(0)
    tblk = pl.program_id(1)

    @pl.when(tblk == 0)
    def _():
        h_ref[...] = jnp.zeros_like(h_ref)

    for j in range(tb):                               # static unroll; tb is small
        t = tblk * tb + j
        scale = s_ref[b, t]                           # scalar TA gain for (b, t)
        y = y_ref[:, pl.ds(j * hw, hw)].astype(jnp.float32) * scale
        u = h_ref[...] * alpha + y
        fired = u > vthres                            # Heaviside forward
        o_ref[0, j] = fired.astype(o_ref.dtype)
        h_ref[...] = jnp.where(fired, vreset, beta * u)   # hard reset + leak


def scale_lif_pallas(y2d, s, *, B, T, C, HW, out_dtype=jnp.bfloat16, time_block=None,
                     alpha=ALPHA, beta=BETA, vreset=VRESET, vthres=VTHRES):
    """y2d: (C, B*T*HW) conv output (lane-dense bf16), s: (B,T) -> spikes (B,T,C,HW)."""
    assert y2d.shape == (C, B * T * HW)
    budget = _vmem_budget_bytes()
    per_t = 2 * C * HW * (y2d.dtype.itemsize + jnp.dtype(out_dtype).itemsize)  # dbl-buffered
    cap = max((budget // 3 - C * HW * 4) // per_t, 1)
    if time_block is not None:
        cap = min(cap, max(int(time_block), 1))
    tb = _largest_divisor(T, min(cap, 64))
    nt = T // tb

    kern = functools.partial(_scale_lif_kernel, alpha=alpha, beta=beta, vreset=vreset,
                             vthres=vthres, tb=tb, hw=HW)
    return pl.pallas_call(
        kern,
        out_shape=jax.ShapeDtypeStruct((B, T, C, HW), out_dtype),
        grid=(B, nt),                                 # time innermost: membrane carried
        in_specs=[
            pl.BlockSpec(memory_space=pltpu.MemorySpace.SMEM),
            pl.BlockSpec((C, tb * HW), lambda b, t: (0, b * nt + t)),
        ],
        out_specs=pl.BlockSpec((1, tb, C, HW), lambda b, t: (b, t, 0, 0)),
        scratch_shapes=[pltpu.VMEM((C, HW), jnp.float32)],
        compiler_params=pltpu.CompilerParams(
            dimension_semantics=("parallel", "arbitrary"),
            vmem_limit_bytes=budget),
    )(s.astype(jnp.float32), y2d)


# --------------------------------------------------------------------------
# Full ConvAttLIF forward
# --------------------------------------------------------------------------
def conv_att_lif_forward(x, conv_w, conv_b, ta_w1, ta_w2, *, padding=1, only_last=False,
                         img_block=None, time_block=None, out_dtype=jnp.bfloat16):
    B, T, Cin, H, W = x.shape
    Cout = conv_w.shape[0]
    HW = H * W
    y2d, mean_n, max_n = conv2d_stats_pallas(
        x.reshape(B * T, Cin, H, W), conv_w, conv_b, padding=padding, img_block=img_block)

    # TA shared MLP (Conv3d 1x1x1, no bias) + sigmoid on pooled (B, T) stats: tiny, plain JAX.
    avg = mean_n.reshape(B, T)
    mx = max_n.reshape(B, T)

    def mlp(v):
        return jnp.maximum(v @ ta_w1.T, 0.0) @ ta_w2.T

    s = jax.nn.sigmoid(mlp(avg) + mlp(mx))                        # (B, T)

    spikes = scale_lif_pallas(y2d, s, B=B, T=T, C=Cout, HW=HW,
                              out_dtype=out_dtype, time_block=time_block)
    spikes = spikes.reshape(B, T, Cout, H, W)
    return spikes[:, -1] if only_last else spikes


# --------------------------------------------------------------------------
# Pure-JAX reference (sanity check only)
# --------------------------------------------------------------------------
def reference_forward(x, conv_w, conv_b, ta_w1, ta_w2):
    B, T, Cin, H, W = x.shape
    Cout = conv_w.shape[0]
    y = lax.conv_general_dilated(
        x.reshape(B * T, Cin, H, W), conv_w, (1, 1), [(1, 1), (1, 1)],
        dimension_numbers=("NCHW", "OIHW", "NCHW"),
        precision=lax.Precision.HIGHEST,
    ) + conv_b[None, :, None, None]                               # (N, Cout, H, W)
    y5 = y.reshape(B, T, Cout, H, W)
    avg = y5.mean(axis=(2, 3, 4))
    mx = y5.max(axis=(2, 3, 4))

    def mlp(v):
        return jnp.maximum(v @ ta_w1.T, 0.0) @ ta_w2.T

    s = jax.nn.sigmoid(mlp(avg) + mlp(mx))
    ys = y5 * s[:, :, None, None, None]
    h = jnp.zeros((B, Cout, H, W), jnp.float32)
    outs = []
    for t in range(T):
        u = ALPHA * h + ys[:, t]
        sp = (u > VTHRES).astype(jnp.float32)
        h = BETA * u * (1.0 - sp) + VRESET * sp
        outs.append(sp)
    return jnp.stack(outs, axis=1), s, y


if __name__ == "__main__":
    B, T, Cin, Chid, H, W = 2, 8, 4, 8, 16, 16
    KH = KW = 3
    t_ratio = 2                      # module default 16; use 2 so T // t_ratio >= 1
    Tr = T // t_ratio

    key = jax.random.PRNGKey(0)
    k1, k2, k3, k4, k5 = jax.random.split(key, 5)
    x = jax.random.normal(k1, (B, T, Cin, H, W), jnp.float32)
    conv_w = 0.1 * jax.random.normal(k2, (Chid, Cin, KH, KW), jnp.float32)
    conv_b = 0.1 * jax.random.normal(k3, (Chid,), jnp.float32)
    ta_w1 = 0.1 * jax.random.normal(k4, (Tr, T), jnp.float32)     # Conv3d(T -> T//r, 1)
    ta_w2 = 0.1 * jax.random.normal(k5, (T, Tr), jnp.float32)     # Conv3d(T//r -> T, 1)

    fwd = jax.jit(functools.partial(conv_att_lif_forward, padding=1, only_last=False))
    out = fwd(x, conv_w, conv_b, ta_w1, ta_w2)
    jax.block_until_ready(out)

    assert out.shape == (B, T, Chid, H, W), out.shape
    out_f32 = out.astype(jnp.float32)
    assert bool(jnp.all(jnp.isfinite(out_f32)))

    # ---- correctness checks.  The conv uses bf16 MXU operands + bf16 activation storage,
    # so compare the pre-threshold quantities with tolerances and only bound the fraction
    # of threshold-boundary spike flips (spikes are exactly 0/1). ----
    ref_spikes, ref_s, ref_y = reference_forward(x, conv_w, conv_b, ta_w1, ta_w2)

    y_k, mean_k, max_k = jax.jit(conv2d_stats_pallas)(
        x.reshape(B * T, Cin, H, W), conv_w, conv_b)
    y_k = jnp.transpose(y_k.reshape(Chid, B * T, H * W), (1, 0, 2)).astype(jnp.float32)
    y_err = jnp.abs(y_k - ref_y.reshape(B * T, Chid, H * W))
    assert float(y_err.mean()) < 1e-2 and float(y_err.max()) < 1e-1, (
        float(y_err.mean()), float(y_err.max()))
    assert float(jnp.abs(mean_k - ref_y.reshape(B * T, -1).mean(axis=1)).max()) < 5e-3
    assert float(jnp.abs(max_k - ref_y.reshape(B * T, -1).max(axis=1)).max()) < 5e-2

    mismatch = float(jnp.mean(jnp.abs(out_f32 - ref_spikes)))
    assert mismatch < 0.03, mismatch

    print("KERNEL_OK")
</pallas_src>

<mosaic_0001>
module attributes {stable_mosaic.version = 11 : i64} {
  func.func @_conv_stats_kernel(%arg0: i32, %arg1: memref<8x4x290xf32, #tpu.memory_space<vmem>>, %arg2: memref<3x256xf32, #tpu.memory_space<vmem>>, %arg3: memref<8x36xbf16, #tpu.memory_space<vmem>>, %arg4: memref<8x1xf32, #tpu.memory_space<vmem>>, %arg5: memref<8x2048xbf16, #tpu.memory_space<vmem>>, %arg6: memref<8x128xf32, #tpu.memory_space<vmem>>, %arg7: memref<8x128xf32, #tpu.memory_space<vmem>>, %arg8: memref<36x2048xbf16, #tpu.memory_space<vmem>>) attributes {dimension_semantics = [#tpu.dimension_semantics<parallel>], iteration_bounds = array<i64: 2>, scalar_prefetch = 0 : i64, scratch_operands = 1 : i64, tpu.core_type = #tpu.core_type<tc>, window_params = [{transform_indices = @transform_0, window_bounds = array<i64: 8, 4, 290>}, {pipeline_mode = #tpu.pipeline_mode<synchronous>, transform_indices = @transform_1, window_bounds = array<i64: 3, 256>}, {pipeline_mode = #tpu.pipeline_mode<synchronous>, transform_indices = @transform_2, window_bounds = array<i64: 8, 36>}, {pipeline_mode = #tpu.pipeline_mode<synchronous>, transform_indices = @transform_3, window_bounds = array<i64: 8, 1>}, {transform_indices = @transform_4, window_bounds = array<i64: 8, 2048>}, {transform_indices = @transform_5, window_bounds = array<i64: 8, 128>}, {transform_indices = @transform_6, window_bounds = array<i64: 8, 128>}]} {
    %c0 = arith.constant 0 : index
    %c0_0 = arith.constant 0 : index
    %c0_1 = arith.constant 0 : index
    %0 = vector.load %arg1[%c0, %c0_0, %c0_1] : memref<8x4x290xf32, #tpu.memory_space<vmem>>, vector<1x4x256xf32>
    %1 = vector.shape_cast %0 : vector<1x4x256xf32> to vector<4x256xf32>
    %c0_2 = arith.constant 0 : index
    %c0_3 = arith.constant 0 : index
    %2 = vector.load %arg2[%c0_2, %c0_3] : memref<3x256xf32, #tpu.memory_space<vmem>>, vector<1x256xf32>
    %3 = vector.broadcast %2 : vector<1x256xf32> to vector<4x256xf32>
    %4 = arith.mulf %1, %3 : vector<4x256xf32>
    %5 = arith.truncf %4 : vector<4x256xf32> to vector<4x256xbf16>
    %c0_4 = arith.constant 0 : index
    %c0_5 = arith.constant 0 : index
    %6 = vector.load %arg8[%c0_4, %c0_5] : memref<36x2048xbf16, #tpu.memory_space<vmem>>, vector<4x256xbf16>
    tpu.vector_store %arg8[%c0_4, %c0_5], %5 {strides = array<i32>} : memref<36x2048xbf16, #tpu.memory_space<vmem>>, vector<4x256xbf16>,
    %c0_6 = arith.constant 0 : index
    %c0_7 = arith.constant 0 : index
    %c1 = arith.constant 1 : index
    %7 = vector.load %arg1[%c0_6, %c0_7, %c1] : memref<8x4x290xf32, #tpu.memory_space<vmem>>, vector<1x4x256xf32>
    %8 = vector.shape_cast %7 : vector<1x4x256xf32> to vector<4x256xf32>
    %9 = arith.truncf %8 : vector<4x256xf32> to vector<4x256xbf16>
    %c4 = arith.constant 4 : index
    %c0_8 = arith.constant 0 : index
    %10 = vector.load %arg8[%c4, %c0_8] : memref<36x2048xbf16, #tpu.memory_space<vmem>>, vector<4x256xbf16>
    tpu.vector_store %arg8[%c4, %c0_8], %9 {strides = array<i32>} : memref<36x2048xbf16, #tpu.memory_space<vmem>>, vector<4x256xbf16>,
    %c0_9 = arith.constant 0 : index
    %c0_10 = arith.constant 0 : index
    %c2 = arith.constant 2 : index
    %11 = vector.load %arg1[%c0_9, %c0_10, %c2] : memref<8x4x290xf32, #tpu.memory_space<vmem>>, vector<1x4x256xf32>
    %12 = vector.shape_cast %11 : vector<1x4x256xf32> to vector<4x256xf32>
    %c2_11 = arith.constant 2 : index
    %c0_12 = arith.constant 0 : index
    %13 = vector.load %arg2[%c2_11, %c0_12] : memref<3x256xf32, #tpu.memory_space<vmem>>, vector<1x256xf32>
    %14 = vector.broadcast %13 : vector<1x256xf32> to vector<4x256xf32>
    %15 = arith.mulf %12, %14 : vector<4x256xf32>
    %16 = arith.truncf %15 : vector<4x256xf32> to vector<4x256xbf16>
    %c8 = arith.constant 8 : index
    %c0_13 = arith.constant 0 : index
    %17 = vector.load %arg8[%c8, %c0_13] : memref<36x2048xbf16, #tpu.memory_space<vmem>>, vector<4x256xbf16>
    tpu.vector_store %arg8[%c8, %c0_13], %16 {strides = array<i32>} : memref<36x2048xbf16, #tpu.memory_space<vmem>>, vector<4x256xbf16>,
    %c0_14 = arith.constant 0 : index
    %c0_15 = arith.constant 0 : index
    %c16 = arith.constant 16 : index
    %18 = vector.load %arg1[%c0_14, %c0_15, %c16] : memref<8x4x290xf32, #tpu.memory_space<vmem>>, vector<1x4x256xf32>
    %19 = vector.shape_cast %18 : vector<1x4x256xf32> to vector<4x256xf32>
    %c0_16 = arith.constant 0 : index
    %c0_17 = arith.constant 0 : index
    %20 = vector.load %arg2[%c0_16, %c0_17] : memref<3x256xf32, #tpu.memory_space<vmem>>, vector<1x256xf32>
    %21 = vector.broadcast %20 : vector<1x256xf32> to vector<4x256xf32>
    %22 = arith.mulf %19, %21 : vector<4x256xf32>
    %23 = arith.truncf %22 : vector<4x256xf32> to vector<4x256xbf16>
    %c12 = arith.constant 12 : index
    %c0_18 = arith.constant 0 : index
    %24 = vector.load %arg8[%c12, %c0_18] : memref<36x2048xbf16, #tpu.memory_space<vmem>>, vector<4x256xbf16>
    tpu.vector_store %arg8[%c12, %c0_18], %23 {strides = array<i32>} : memref<36x2048xbf16, #tpu.memory_space<vmem>>, vector<4x256xbf16>,
    %c0_19 = arith.constant 0 : index
    %c0_20 = arith.constant 0 : index
    %c17 = arith.constant 17 : index
    %25 = vector.load %arg1[%c0_19, %c0_20, %c17] : memref<8x4x290xf32, #tpu.memory_space<vmem>>, vector<1x4x256xf32>
    %26 = vector.shape_cast %25 : vector<1x4x256xf32> to vector<4x256xf32>
    %27 = arith.truncf %26 : vector<4x256xf32> to vector<4x256xbf16>
    %c16_21 = arith.constant 16 : index
    %c0_22 = arith.constant 0 : index
    %28 = vector.load %arg8[%c16_21, %c0_22] : memref<36x2048xbf16, #tpu.memory_space<vmem>>, vector<4x256xbf16>
    tpu.vector_store %arg8[%c16_21, %c0_22], %27 {strides = array<i32>} : memref<36x2048xbf16, #tpu.memory_space<vmem>>, vector<4x256xbf16>,
    %c0_23 = arith.constant 0 : index
    %c0_24 = arith.constant 0 : index
    %c18 = arith.constant 18 : index
    %29 = vector.load %arg1[%c0_23, %c0_24, %c18] : memref<8x4x290xf32, #tpu.memory_space<vmem>>, vector<1x4x256xf32>
    %30 = vector.shape_cast %29 : vector<1x4x256xf32> to vector<4x256xf32>
    %c2_25 = arith.constant 2 : index
    %c0_26 = arith.constant 0 : index
    %31 = vector.load %arg2[%c2_25, %c0_26] : memref<3x256xf32, #tpu.memory_space<vmem>>, vector<1x256xf32>
    %32 = vector.broadcast %31 : vector<1x256xf32> to vector<4x256xf32>
    %33 = arith.mulf %30, %32 : vector<4x256xf32>
    %34 = arith.truncf %33 : vector<4x256xf32> to vector<4x256xbf16>
    %c20 = arith.constant 20 : index
    %c0_27 = arith.constant 0 : index
    %35 = vector.load %arg8[%c20, %c0_27] : memref<36x2048xbf16, #tpu.memory_space<vmem>>, vector<4x256xbf16>
    tpu.vector_store %arg8[%c20, %c0_27], %34 {strides = array<i32>} : memref<36x2048xbf16, #tpu.memory_space<vmem>>, vector<4x256xbf16>,
    %c0_28 = arith.constant 0 : index
    %c0_29 = arith.constant 0 : index
    %c32 = arith.constant 32 : index
    %36 = vector.load %arg1[%c0_28, %c0_29, %c32] : memref<8x4x290xf32, #tpu.memory_space<vmem>>, vector<1x4x256xf32>
    %37 = vector.shape_cast %36 : vector<1x4x256xf32> to vector<4x256xf32>
    %c0_30 = arith.constant 0 : index
    %c0_31 = arith.constant 0 : index
    %38 = vector.load %arg2[%c0_30, %c0_31] : memref<3x256xf32, #tpu.memory_space<vmem>>, vector<1x256xf32>
    %39 = vector.broadcast %38 : vector<1x256xf32> to vector<4x256xf32>
    %40 = arith.mulf %37, %39 : vector<4x256xf32>
    %41 = arith.truncf %40 : vector<4x256xf32> to vector<4x256xbf16>
    %c24 = arith.constant 24 : index
    %c0_32 = arith.constant 0 : index
    %42 = vector.load %arg8[%c24, %c0_32] : memref<36x2048xbf16, #tpu.memory_space<vmem>>, vector<4x256xbf16>
    tpu.vector_store %arg8[%c24, %c0_32], %41 {strides = array<i32>} : memref<36x2048xbf16, #tpu.memory_space<vmem>>, vector<4x256xbf16>,
    %c0_33 = arith.constant 0 : index
    %c0_34 = arith.constant 0 : index
    %c33 = arith.constant 33 : index
    %43 = vector.load %arg1[%c0_33, %c0_34, %c33] : memref<8x4x290xf32, #tpu.memory_space<vmem>>, vector<1x4x256xf32>
    %44 = vector.shape_cast %43 : vector<1x4x256xf32> to vector<4x256xf32>
    %45 = arith.truncf %44 : vector<4x256xf32> to vector<4x256xbf16>
    %c28 = arith.constant 28 : index
    %c0_35 = arith.constant 0 : index
    %46 = vector.load %arg8[%c28, %c0_35] : memref<36x2048xbf16, #tpu.memory_space<vmem>>, vector<4x256xbf16>
    tpu.vector_store %arg8[%c28, %c0_35], %45 {strides = array<i32>} : memref<36x2048xbf16, #tpu.memory_space<vmem>>, vector<4x256xbf16>,
    %c0_36 = arith.constant 0 : index
    %c0_37 = arith.constant 0 : index
    %c34 = arith.constant 34 : index
    %47 = vector.load %arg1[%c0_36, %c0_37, %c34] : memref<8x4x290xf32, #tpu.memory_space<vmem>>, vector<1x4x256xf32>
    %48 = vector.shape_cast %47 : vector<1x4x256xf32> to vector<4x256xf32>
    %c2_38 = arith.constant 2 : index
    %c0_39 = arith.constant 0 : index
    %49 = vector.load %arg2[%c2_38, %c0_39] : memref<3x256xf32, #tpu.memory_space<vmem>>, vector<1x256xf32>
    %50 = vector.broadcast %49 : vector<1x256xf32> to vector<4x256xf32>
    %51 = arith.mulf %48, %50 : vector<4x256xf32>
    %52 = arith.truncf %51 : vector<4x256xf32> to vector<4x256xbf16>
    %c32_40 = arith.constant 32 : index
    %c0_41 = arith.constant 0 : index
    %53 = vector.load %arg8[%c32_40, %c0_41] : memref<36x2048xbf16, #tpu.memory_space<vmem>>, vector<4x256xbf16>
    tpu.vector_store %arg8[%c32_40, %c0_41], %52 {strides = array<i32>} : memref<36x2048xbf16, #tpu.memory_space<vmem>>, vector<4x256xbf16>,
    %c1_42 = arith.constant 1 : index
    %c0_43 = arith.constant 0 : index
    %c0_44 = arith.constant 0 : index
    %54 = vector.load %arg1[%c1_42, %c0_43, %c0_44] : memref<8x4x290xf32, #tpu.memory_space<vmem>>, vector<1x4x256xf32>
    %55 = vector.shape_cast %54 : vector<1x4x256xf32> to vector<4x256xf32>
    %c0_45 = arith.constant 0 : index
    %c0_46 = arith.constant 0 : index
    %56 = vector.load %arg2[%c0_45, %c0_46] : memref<3x256xf32, #tpu.memory_space<vmem>>, vector<1x256xf32>
    %57 = vector.broadcast %56 : vector<1x256xf32> to vector<4x256xf32>
    %58 = arith.mulf %55, %57 : vector<4x256xf32>
    %59 = arith.truncf %58 : vector<4x256xf32> to vector<4x256xbf16>
    %c0_47 = arith.constant 0 : index
    %c256 = arith.constant 256 : index
    %60 = vector.load %arg8[%c0_47, %c256] : memref<36x2048xbf16, #tpu.memory_space<vmem>>, vector<4x256xbf16>
    tpu.vector_store %arg8[%c0_47, %c256], %59 {strides = array<i32>} : memref<36x2048xbf16, #tpu.memory_space<vmem>>, vector<4x256xbf16>,
    %c1_48 = arith.constant 1 : index
    %c0_49 = arith.constant 0 : index
    %c1_50 = arith.constant 1 : index
    %61 = vector.load %arg1[%c1_48, %c0_49, %c1_50] : memref<8x4x290xf32, #tpu.memory_space<vmem>>, vector<1x4x256xf32>
    %62 = vector.shape_cast %61 : vector<1x4x256xf32> to vector<4x256xf32>
    %63 = arith.truncf %62 : vector<4x256xf32> to vector<4x256xbf16>
    %c4_51 = arith.constant 4 : index
    %c256_52 = arith.constant 256 : index
    %64 = vector.load %arg8[%c4_51, %c256_52] : memref<36x2048xbf16, #tpu.memory_space<vmem>>, vector<4x256xbf16>
    tpu.vector_store %arg8[%c4_51, %c256_52], %63 {strides = array<i32>} : memref<36x2048xbf16, #tpu.memory_space<vmem>>, vector<4x256xbf16>,
    %c1_53 = arith.constant 1 : index
    %c0_54 = arith.constant 0 : index
    %c2_55 = arith.constant 2 : index
    %65 = vector.load %arg1[%c1_53, %c0_54, %c2_55] : memref<8x4x290xf32, #tpu.memory_space<vmem>>, vector<1x4x256xf32>
    %66 = vector.shape_cast %65 : vector<1x4x256xf32> to vector<4x256xf32>
    %c2_56 = arith.constant 2 : index
    %c0_57 = arith.constant 0 : index
    %67 = vector.load %arg2[%c2_56, %c0_57] : memref<3x256xf32, #tpu.memory_space<vmem>>, vector<1x256xf32>
    %68 = vector.broadcast %67 : vector<1x256xf32> to vector<4x256xf32>
    %69 = arith.mulf %66, %68 : vector<4x256xf32>
    %70 = arith.truncf %69 : vector<4x256xf32> to vector<4x256xbf16>
    %c8_58 = arith.constant 8 : index
    %c256_59 = arith.constant 256 : index
    %71 = vector.load %arg8[%c8_58, %c256_59] : memref<36x2048xbf16, #tpu.memory_space<vmem>>, vector<4x256xbf16>
    tpu.vector_store %arg8[%c8_58, %c256_59], %70 {strides = array<i32>} : memref<36x2048xbf16, #tpu.memory_space<vmem>>, vector<4x256xbf16>,
    %c1_60 = arith.constant 1 : index
    %c0_61 = arith.constant 0 : index
    %c16_62 = arith.constant 16 : index
    %72 = vector.load %arg1[%c1_60, %c0_61, %c16_62] : memref<8x4x290xf32, #tpu.memory_space<vmem>>, vector<1x4x256xf32>
    %73 = vector.shape_cast %72 : vector<1x4x256xf32> to vector<4x256xf32>
    %c0_63 = arith.constant 0 : index
    %c0_64 = arith.constant 0 : index
    %74 = vector.load %arg2[%c0_63, %c0_64] : memref<3x256xf32, #tpu.memory_space<vmem>>, vector<1x256xf32>
    %75 = vector.broadcast %74 : vector<1x256xf32> to vector<4x256xf32>
    %76 = arith.mulf %73, %75 : vector<4x256xf32>
    %77 = arith.truncf %76 : vector<4x256xf32> to vector<4x256xbf16>
    %c12_65 = arith.constant 12 : index
    %c256_66 = arith.constant 256 : index
    %78 = vector.load %arg8[%c12_65, %c256_66] : memref<36x2048xbf16, #tpu.memory_space<vmem>>, vector<4x256xbf16>
    tpu.vector_store %arg8[%c12_65, %c256_66], %77 {strides = array<i32>} : memref<36x2048xbf16, #tpu.memory_space<vmem>>, vector<4x256xbf16>,
    %c1_67 = arith.constant 1 : index
    %c0_68 = arith.constant 0 : index
    %c17_69 = arith.constant 17 : index
    %79 = vector.load %arg1[%c1_67, %c0_68, %c17_69] : memref<8x4x290xf32, #tpu.memory_space<vmem>>, vector<1x4x256xf32>
    %80 = vector.shape_cast %79 : vector<1x4x256xf32> to vector<4x256xf32>
    %81 = arith.truncf %80 : vector<4x256xf32> to vector<4x256xbf16>
    %c16_70 = arith.constant 16 : index
    %c256_71 = arith.constant 256 : index
    %82 = vector.load %arg8[%c16_70, %c256_71] : memref<36x2048xbf16, #tpu.memory_space<vmem>>, vector<4x256xbf16>
    tpu.vector_store %arg8[%c16_70, %c256_71], %81 {strides = array<i32>} : memref<36x2048xbf16, #tpu.memory_space<vmem>>, vector<4x256xbf16>,
    %c1_72 = arith.constant 1 : index
    %c0_73 = arith.constant 0 : index
    %c18_74 = arith.constant 18 : index
    %83 = vector.load %arg1[%c1_72, %c0_73, %c18_74] : memref<8x4x290xf32, #tpu.memory_space<vmem>>, vector<1x4x256xf32>
    %84 = vector.shape_cast %83 : vector<1x4x256xf32> to vector<4x256xf32>
    %c2_75 = arith.constant 2 : index
    %c0_76 = arith.constant 0 : index
    %85 = vector.load %arg2[%c2_75, %c0_76] : memref<3x256xf32, #tpu.memory_space<vmem>>, vector<1x256xf32>
    %86 = vector.broadcast %85 : vector<1x256xf32> to vector<4x256xf32>
    %87 = arith.mulf %84, %86 : vector<4x256xf32>
    %88 = arith.truncf %87 : vector<4x256xf32> to vector<4x256xbf16>
    %c20_77 = arith.constant 20 : index
    %c256_78 = arith.constant 256 : index
    %89 = vector.load %arg8[%c20_77, %c256_78] : memref<36x2048xbf16, #tpu.memory_space<vmem>>, vector<4x256xbf16>
    tpu.vector_store %arg8[%c20_77, %c256_78], %88 {strides = array<i32>} : memref<36x2048xbf16, #tpu.memory_space<vmem>>, vector<4x256xbf16>,
    %c1_79 = arith.constant 1 : index
    %c0_80 = arith.constant 0 : index
    %c32_81 = arith.constant 32 : index
    %90 = vector.load %arg1[%c1_79, %c0_80, %c32_81] : memref<8x4x290xf32, #tpu.memory_space<vmem>>, vector<1x4x256xf32>
    %91 = vector.shape_cast %90 : vector<1x4x256xf32> to vector<4x256xf32>
    %c0_82 = arith.constant 0 : index
    %c0_83 = arith.constant 0 : index
    %92 = vector.load %arg2[%c0_82, %c0_83] : memref<3x256xf32, #tpu.memory_space<vmem>>, vector<1x256xf32>
    %93 = vector.broadcast %92 : vector<1x256xf32> to vector<4x256xf32>
    %94 = arith.mulf %91, %93 : vector<4x256xf32>
    %95 = arith.truncf %94 : vector<4x256xf32> to vector<4x256xbf16>
    %c24_84 = arith.constant 24 : index
    %c256_85 = arith.constant 256 : index
    %96 = vector.load %arg8[%c24_84, %c256_85] : memref<36x2048xbf16, #tpu.memory_space<vmem>>, vector<4x256xbf16>
    tpu.vector_store %arg8[%c24_84, %c256_85], %95 {strides = array<i32>} : memref<36x2048xbf16, #tpu.memory_space<vmem>>, vector<4x256xbf16>,
    %c1_86 = arith.constant 1 : index
    %c0_87 = arith.constant 0 : index
    %c33_88 = arith.constant 33 : index
    %97 = vector.load %arg1[%c1_86, %c0_87, %c33_88] : memref<8x4x290xf32, #tpu.memory_space<vmem>>, vector<1x4x256xf32>
    %98 = vector.shape_cast %97 : vector<1x4x256xf32> to vector<4x256xf32>
    %99 = arith.truncf %98 : vector<4x256xf32> to vector<4x256xbf16>
    %c28_89 = arith.constant 28 : index
    %c256_90 = arith.constant 256 : index
    %100 = vector.load %arg8[%c28_89, %c256_90] : memref<36x2048xbf16, #tpu.memory_space<vmem>>, vector<4x256xbf16>
    tpu.vector_store %arg8[%c28_89, %c256_90], %99 {strides = array<i32>} : memref<36x2048xbf16, #tpu.memory_space<vmem>>, vector<4x256xbf16>,
    %c1_91 = arith.constant 1 : index
    %c0_92 = arith.constant 0 : index
    %c34_93 = arith.constant 34 : index
    %101 = vector.load %arg1[%c1_91, %c0_92, %c34_93] : memref<8x4x290xf32, #tpu.memory_space<vmem>>, vector<1x4x256xf32>
    %102 = vector.shape_cast %101 : vector<1x4x256xf32> to vector<4x256xf32>
    %c2_94 = arith.constant 2 : index
    %c0_95 = arith.constant 0 : index
    %103 = vector.load %arg2[%c2_94, %c0_95] : memref<3x256xf32, #tpu.memory_space<vmem>>, vector<1x256xf32>
    %104 = vector.broadcast %103 : vector<1x256xf32> to vector<4x256xf32>
    %105 = arith.mulf %102, %104 : vector<4x256xf32>
    %106 = arith.truncf %105 : vector<4x256xf32> to vector<4x256xbf16>
    %c32_96 = arith.constant 32 : index
    %c256_97 = arith.constant 256 : index
    %107 = vector.load %arg8[%c32_96, %c256_97] : memref<36x2048xbf16, #tpu.memory_space<vmem>>, vector<4x256xbf16>
    tpu.vector_store %arg8[%c32_96, %c256_97], %106 {strides = array<i32>} : memref<36x2048xbf16, #tpu.memory_space<vmem>>, vector<4x256xbf16>,
    %c2_98 = arith.constant 2 : index
    %c0_99 = arith.constant 0 : index
    %c0_100 = arith.constant 0 : index
    %108 = vector.load %arg1[%c2_98, %c0_99, %c0_100] : memref<8x4x290xf32, #tpu.memory_space<vmem>>, vector<1x4x256xf32>
    %109 = vector.shape_cast %108 : vector<1x4x256xf32> to vector<4x256xf32>
    %c0_101 = arith.constant 0 : index
    %c0_102 = arith.constant 0 : index
    %110 = vector.load %arg2[%c0_101, %c0_102] : memref<3x256xf32, #tpu.memory_space<vmem>>, vector<1x256xf32>
    %111 = vector.broadcast %110 : vector<1x256xf32> to vector<4x256xf32>
    %112 = arith.mulf %109, %111 : vector<4x256xf32>
    %113 = arith.truncf %112 : vector<4x256xf32> to vector<4x256xbf16>
    %c0_103 = arith.constant 0 : index
    %c512 = arith.constant 512 : index
    %114 = vector.load %arg8[%c0_103, %c512] : memref<36x2048xbf16, #tpu.memory_space<vmem>>, vector<4x256xbf16>
    tpu.vector_store %arg8[%c0_103, %c512], %113 {strides = array<i32>} : memref<36x2048xbf16, #tpu.memory_space<vmem>>, vector<4x256xbf16>,
    %c2_104 = arith.constant 2 : index
    %c0_105 = arith.constant 0 : index
    %c1_106 = arith.constant 1 : index
    %115 = vector.load %arg1[%c2_104, %c0_105, %c1_106] : memref<8x4x290xf32, #tpu.memory_space<vmem>>, vector<1x4x256xf32>
    %116 = vector.shape_cast %115 : vector<1x4x256xf32> to vector<4x256xf32>
    %117 = arith.truncf %116 : vector<4x256xf32> to vector<4x256xbf16>
    %c4_107 = arith.constant 4 : index
    %c512_108 = arith.constant 512 : index
    %118 = vector.load %arg8[%c4_107, %c512_108] : memref<36x2048xbf16, #tpu.memory_space<vmem>>, vector<4x256xbf16>
    tpu.vector_store %arg8[%c4_107, %c512_108], %117 {strides = array<i32>} : memref<36x2048xbf16, #tpu.memory_space<vmem>>, vector<4x256xbf16>,
    %c2_109 = arith.constant 2 : index
    %c0_110 = arith.constant 0 : index
    %c2_111 = arith.constant 2 : index
    %119 = vector.load %arg1[%c2_109, %c0_110, %c2_111] : memref<8x4x290xf32, #tpu.memory_space<vmem>>, vector<1x4x256xf32>
    %120 = vector.shape_cast %119 : vector<1x4x256xf32> to vector<4x256xf32>
    %c2_112 = arith.constant 2 : index
    %c0_113 = arith.constant 0 : index
    %121 = vector.load %arg2[%c2_112, %c0_113] : memref<3x256xf32, #tpu.memory_space<vmem>>, vector<1x256xf32>
    %122 = vector.broadcast %121 : vector<1x256xf32> to vector<4x256xf32>
    %123 = arith.mulf %120, %122 : vector<4x256xf32>
    %124 = arith.truncf %123 : vector<4x256xf32> to vector<4x256xbf16>
    %c8_114 = arith.constant 8 : index
    %c512_115 = arith.constant 512 : index
    %125 = vector.load %arg8[%c8_114, %c512_115] : memref<36x2048xbf16, #tpu.memory_space<vmem>>, vector<4x256xbf16>
    tpu.vector_store %arg8[%c8_114, %c512_115], %124 {strides = array<i32>} : memref<36x2048xbf16, #tpu.memory_space<vmem>>, vector<4x256xbf16>,
    %c2_116 = arith.constant 2 : index
    %c0_117 = arith.constant 0 : index
    %c16_118 = arith.constant 16 : index
    %126 = vector.load %arg1[%c2_116, %c0_117, %c16_118] : memref<8x4x290xf32, #tpu.memory_space<vmem>>, vector<1x4x256xf32>
    %127 = vector.shape_cast %126 : vector<1x4x256xf32> to vector<4x256xf32>
    %c0_119 = arith.constant 0 : index
    %c0_120 = arith.constant 0 : index
    %128 = vector.load %arg2[%c0_119, %c0_120] : memref<3x256xf32, #tpu.memory_space<vmem>>, vector<1x256xf32>
    %129 = vector.broadcast %128 : vector<1x256xf32> to vector<4x256xf32>
    %130 = arith.mulf %127, %129 : vector<4x256xf32>
    %131 = arith.truncf %130 : vector<4x256xf32> to vector<4x256xbf16>
    %c12_121 = arith.constant 12 : index
    %c512_122 = arith.constant 512 : index
    %132 = vector.load %arg8[%c12_121, %c512_122] : memref<36x2048xbf16, #tpu.memory_space<vmem>>, vector<4x256xbf16>
    tpu.vector_store %arg8[%c12_121, %c512_122], %131 {strides = array<i32>} : memref<36x2048xbf16, #tpu.memory_space<vmem>>, vector<4x256xbf16>,
    %c2_123 = arith.constant 2 : index
    %c0_124 = arith.constant 0 : index
    %c17_125 = arith.constant 17 : index
    %133 = vector.load %arg1[%c2_123, %c0_124, %c17_125] : memref<8x4x290xf32, #tpu.memory_space<vmem>>, vector<1x4x256xf32>
    %134 = vector.shape_cast %133 : vector<1x4x256xf32> to vector<4x256xf32>
    %135 = arith.truncf %134 : vector<4x256xf32> to vector<4x256xbf16>
    %c16_126 = arith.constant 16 : index
    %c512_127 = arith.constant 512 : index
    %136 = vector.load %arg8[%c16_126, %c512_127] : memref<36x2048xbf16, #tpu.memory_space<vmem>>, vector<4x256xbf16>
    tpu.vector_store %arg8[%c16_126, %c512_127], %135 {strides = array<i32>} : memref<36x2048xbf16, #tpu.memory_space<vmem>>, vector<4x256xbf16>,
    %c2_128 = arith.constant 2 : index
    %c0_129 = arith.constant 0 : index
    %c18_130 = arith.constant 18 : index
    %137 = vector.load %arg1[%c2_128, %c0_129, %c18_130] : memref<8x4x290xf32, #tpu.memory_space<vmem>>, vector<1x4x256xf32>
    %138 = vector.shape_cast %137 : vector<1x4x256xf32> to vector<4x256xf32>
    %c2_131 = arith.constant 2 : index
    %c0_132 = arith.constant 0 : index
    %139 = vector.load %arg2[%c2_131, %c0_132] : memref<3x256xf32, #tpu.memory_space<vmem>>, vector<1x256xf32>
    %140 = vector.broadcast %139 : vector<1x256xf32> to vector<4x256xf32>
    %141 = arith.mulf %138, %140 : vector<4x256xf32>
    %142 = arith.truncf %141 : vector<4x256xf32> to vector<4x256xbf16>
    %c20_133 = arith.constant 20 : index
    %c512_134 = arith.constant 512 : index
    %143 = vector.load %arg8[%c20_133, %c512_134] : memref<36x2048xbf16, #tpu.memory_space<vmem>>, vector<4x256xbf16>
    tpu.vector_store %arg8[%c20_133, %c512_134], %142 {strides = array<i32>} : memref<36x2048xbf16, #tpu.memory_space<vmem>>, vector<4x256xbf16>,
    %c2_135 = arith.constant 2 : index
    %c0_136 = arith.constant 0 : index
    %c32_137 = arith.constant 32 : index
    %144 = vector.load %arg1[%c2_135, %c0_136, %c32_137] : memref<8x4x290xf32, #tpu.memory_space<vmem>>, vector<1x4x256xf32>
    %145 = vector.shape_cast %144 : vector<1x4x256xf32> to vector<4x256xf32>
    %c0_138 = arith.constant 0 : index
    %c0_139 = arith.constant 0 : index
    %146 = vector.load %arg2[%c0_138, %c0_139] : memref<3x256xf32, #tpu.memory_space<vmem>>, vector<1x256xf32>
    %147 = vector.broadcast %146 : vector<1x256xf32> to vector<4x256xf32>
    %148 = arith.mulf %145, %147 : vector<4x256xf32>
    %149 = arith.truncf %148 : vector<4x256xf32> to vector<4x256xbf16>
    %c24_140 = arith.constant 24 : index
    %c512_141 = arith.constant 512 : index
    %150 = vector.load %arg8[%c24_140, %c512_141] : memref<36x2048xbf16, #tpu.memory_space<vmem>>, vector<4x256xbf16>
    tpu.vector_store %arg8[%c24_140, %c512_141], %149 {strides = array<i32>} : memref<36x2048xbf16, #tpu.memory_space<vmem>>, vector<4x256xbf16>,
    %c2_142 = arith.constant 2 : index
    %c0_143 = arith.constant 0 : index
    %c33_144 = arith.constant 33 : index
    %151 = vector.load %arg1[%c2_142, %c0_143, %c33_144] : memref<8x4x290xf32, #tpu.memory_space<vmem>>, vector<1x4x256xf32>
    %152 = vector.shape_cast %151 : vector<1x4x256xf32> to vector<4x256xf32>
    %153 = arith.truncf %152 : vector<4x256xf32> to vector<4x256xbf16>
    %c28_145 = arith.constant 28 : index
    %c512_146 = arith.constant 512 : index
    %154 = vector.load %arg8[%c28_145, %c512_146] : memref<36x2048xbf16, #tpu.memory_space<vmem>>, vector<4x256xbf16>
    tpu.vector_store %arg8[%c28_145, %c512_146], %153 {strides = array<i32>} : memref<36x2048xbf16, #tpu.memory_space<vmem>>, vector<4x256xbf16>,
    %c2_147 = arith.constant 2 : index
    %c0_148 = arith.constant 0 : index
    %c34_149 = arith.constant 34 : index
    %155 = vector.load %arg1[%c2_147, %c0_148, %c34_149] : memref<8x4x290xf32, #tpu.memory_space<vmem>>, vector<1x4x256xf32>
    %156 = vector.shape_cast %155 : vector<1x4x256xf32> to vector<4x256xf32>
    %c2_150 = arith.constant 2 : index
    %c0_151 = arith.constant 0 : index
    %157 = vector.load %arg2[%c2_150, %c0_151] : memref<3x256xf32, #tpu.memory_space<vmem>>, vector<1x256xf32>
    %158 = vector.broadcast %157 : vector<1x256xf32> to vector<4x256xf32>
    %159 = arith.mulf %156, %158 : vector<4x256xf32>
    %160 = arith.truncf %159 : vector<4x256xf32> to vector<4x256xbf16>
    %c32_152 = arith.constant 32 : index
    %c512_153 = arith.constant 512 : index
    %161 = vector.load %arg8[%c32_152, %c512_153] : memref<36x2048xbf16, #tpu.memory_space<vmem>>, vector<4x256xbf16>
    tpu.vector_store %arg8[%c32_152, %c512_153], %160 {strides = array<i32>} : memref<36x2048xbf16, #tpu.memory_space<vmem>>, vector<4x256xbf16>,
    %c3 = arith.constant 3 : index
    %c0_154 = arith.constant 0 : index
    %c0_155 = arith.constant 0 : index
    %162 = vector.load %arg1[%c3, %c0_154, %c0_155] : memref<8x4x290xf32, #tpu.memory_space<vmem>>, vector<1x4x256xf32>
    %163 = vector.shape_cast %162 : vector<1x4x256xf32> to vector<4x256xf32>
    %c0_156 = arith.constant 0 : index
    %c0_157 = arith.constant 0 : index
    %164 = vector.load %arg2[%c0_156, %c0_157] : memref<3x256xf32, #tpu.memory_space<vmem>>, vector<1x256xf32>
    %165 = vector.broadcast %164 : vector<1x256xf32> to vector<4x256xf32>
    %166 = arith.mulf %163, %165 : vector<4x256xf32>
    %167 = arith.truncf %166 : vector<4x256xf32> to vector<4x256xbf16>
    %c0_158 = arith.constant 0 : index
    %c768 = arith.constant 768 : index
    %168 = vector.load %arg8[%c0_158, %c768] : memref<36x2048xbf16, #tpu.memory_space<vmem>>, vector<4x256xbf16>
    tpu.vector_store %arg8[%c0_158, %c768], %167 {strides = array<i32>} : memref<36x2048xbf16, #tpu.memory_space<vmem>>, vector<4x256xbf16>,
    %c3_159 = arith.constant 3 : index
    %c0_160 = arith.constant 0 : index
    %c1_161 = arith.constant 1 : index
    %169 = vector.load %arg1[%c3_159, %c0_160, %c1_161] : memref<8x4x290xf32, #tpu.memory_space<vmem>>, vector<1x4x256xf32>
    %170 = vector.shape_cast %169 : vector<1x4x256xf32> to vector<4x256xf32>
    %171 = arith.truncf %170 : vector<4x256xf32> to vector<4x256xbf16>
    %c4_162 = arith.constant 4 : index
    %c768_163 = arith.constant 768 : index
    %172 = vector.load %arg8[%c4_162, %c768_163] : memref<36x2048xbf16, #tpu.memory_space<vmem>>, vector<4x256xbf16>
    tpu.vector_store %arg8[%c4_162, %c768_163], %171 {strides = array<i32>} : memref<36x2048xbf16, #tpu.memory_space<vmem>>, vector<4x256xbf16>,
    %c3_164 = arith.constant 3 : index
    %c0_165 = arith.constant 0 : index
    %c2_166 = arith.constant 2 : index
    %173 = vector.load %arg1[%c3_164, %c0_165, %c2_166] : memref<8x4x290xf32, #tpu.memory_space<vmem>>, vector<1x4x256xf32>
    %174 = vector.shape_cast %173 : vector<1x4x256xf32> to vector<4x256xf32>
    %c2_167 = arith.constant 2 : index
    %c0_168 = arith.constant 0 : index
    %175 = vector.load %arg2[%c2_167, %c0_168] : memref<3x256xf32, #tpu.memory_space<vmem>>, vector<1x256xf32>
    %176 = vector.broadcast %175 : vector<1x256xf32> to vector<4x256xf32>
    %177 = arith.mulf %174, %176 : vector<4x256xf32>
    %178 = arith.truncf %177 : vector<4x256xf32> to vector<4x256xbf16>
    %c8_169 = arith.constant 8 : index
    %c768_170 = arith.constant 768 : index
    %179 = vector.load %arg8[%c8_169, %c768_170] : memref<36x2048xbf16, #tpu.memory_space<vmem>>, vector<4x256xbf16>
    tpu.vector_store %arg8[%c8_169, %c768_170], %178 {strides = array<i32>} : memref<36x2048xbf16, #tpu.memory_space<vmem>>, vector<4x256xbf16>,
    %c3_171 = arith.constant 3 : index
    %c0_172 = arith.constant 0 : index
    %c16_173 = arith.constant 16 : index
    %180 = vector.load %arg1[%c3_171, %c0_172, %c16_173] : memref<8x4x290xf32, #tpu.memory_space<vmem>>, vector<1x4x256xf32>
    %181 = vector.shape_cast %180 : vector<1x4x256xf32> to vector<4x256xf32>
    %c0_174 = arith.constant 0 : index
    %c0_175 = arith.constant 0 : index
    %182 = vector.load %arg2[%c0_174, %c0_175] : memref<3x256xf32, #tpu.memory_space<vmem>>, vector<1x256xf32>
    %183 = vector.broadcast %182 : vector<1x256xf32> to vector<4x256xf32>
    %184 = arith.mulf %181, %183 : vector<4x256xf32>
    %185 = arith.truncf %184 : vector<4x256xf32> to vector<4x256xbf16>
    %c12_176 = arith.constant 12 : index
    %c768_177 = arith.constant 768 : index
    %186 = vector.load %arg8[%c12_176, %c768_177] : memref<36x2048xbf16, #tpu.memory_space<vmem>>, vector<4x256xbf16>
    tpu.vector_store %arg8[%c12_176, %c768_177], %185 {strides = array<i32>} : memref<36x2048xbf16, #tpu.memory_space<vmem>>, vector<4x256xbf16>,
    %c3_178 = arith.constant 3 : index
    %c0_179 = arith.constant 0 : index
    %c17_180 = arith.constant 17 : index
    %187 = vector.load %arg1[%c3_178, %c0_179, %c17_180] : memref<8x4x290xf32, #tpu.memory_space<vmem>>, vector<1x4x256xf32>
    %188 = vector.shape_cast %187 : vector<1x4x256xf32> to vector<4x256xf32>
    %189 = arith.truncf %188 : vector<4x256xf32> to vector<4x256xbf16>
    %c16_181 = arith.constant 16 : index
    %c768_182 = arith.constant 768 : index
    %190 = vector.load %arg8[%c16_181, %c768_182] : memref<36x2048xbf16, #tpu.memory_space<vmem>>, vector<4x256xbf16>
    tpu.vector_store %arg8[%c16_181, %c768_182], %189 {strides = array<i32>} : memref<36x2048xbf16, #tpu.memory_space<vmem>>, vector<4x256xbf16>,
    %c3_183 = arith.constant 3 : index
    %c0_184 = arith.constant 0 : index
    %c18_185 = arith.constant 18 : index
    %191 = vector.load %arg1[%c3_183, %c0_184, %c18_185] : memref<8x4x290xf32, #tpu.memory_space<vmem>>, vector<1x4x256xf32>
    %192 = vector.shape_cast %191 : vector<1x4x256xf32> to vector<4x256xf32>
    %c2_186 = arith.constant 2 : index
    %c0_187 = arith.constant 0 : index
    %193 = vector.load %arg2[%c2_186, %c0_187] : memref<3x256xf32, #tpu.memory_space<vmem>>, vector<1x256xf32>
    %194 = vector.broadcast %193 : vector<1x256xf32> to vector<4x256xf32>
    %195 = arith.mulf %192, %194 : vector<4x256xf32>
    %196 = arith.truncf %195 : vector<4x256xf32> to vector<4x256xbf16>
    %c20_188 = arith.constant 20 : index
    %c768_189 = arith.constant 768 : index
    %197 = vector.load %arg8[%c20_188, %c768_189] : memref<36x2048xbf16, #tpu.memory_space<vmem>>, vector<4x256xbf16>
    tpu.vector_store %arg8[%c20_188, %c768_189], %196 {strides = array<i32>} : memref<36x2048xbf16, #tpu.memory_space<vmem>>, vector<4x256xbf16>,
    %c3_190 = arith.constant 3 : index
    %c0_191 = arith.constant 0 : index
    %c32_192 = arith.constant 32 : index
    %198 = vector.load %arg1[%c3_190, %c0_191, %c32_192] : memref<8x4x290xf32, #tpu.memory_space<vmem>>, vector<1x4x256xf32>
    %199 = vector.shape_cast %198 : vector<1x4x256xf32> to vector<4x256xf32>
    %c0_193 = arith.constant 0 : index
    %c0_194 = arith.constant 0 : index
    %200 = vector.load %arg2[%c0_193, %c0_194] : memref<3x256xf32, #tpu.memory_space<vmem>>, vector<1x256xf32>
    %201 = vector.broadcast %200 : vector<1x256xf32> to vector<4x256xf32>
    %202 = arith.mulf %199, %201 : vector<4x256xf32>
    %203 = arith.truncf %202 : vector<4x256xf32> to vector<4x256xbf16>
    %c24_195 = arith.constant 24 : index
    %c768_196 = arith.constant 768 : index
    %204 = vector.load %arg8[%c24_195, %c768_196] : memref<36x2048xbf16, #tpu.memory_space<vmem>>, vector<4x256xbf16>
    tpu.vector_store %arg8[%c24_195, %c768_196], %203 {strides = array<i32>} : memref<36x2048xbf16, #tpu.memory_space<vmem>>, vector<4x256xbf16>,
    %c3_197 = arith.constant 3 : index
    %c0_198 = arith.constant 0 : index
    %c33_199 = arith.constant 33 : index
    %205 = vector.load %arg1[%c3_197, %c0_198, %c33_199] : memref<8x4x290xf32, #tpu.memory_space<vmem>>, vector<1x4x256xf32>
    %206 = vector.shape_cast %205 : vector<1x4x256xf32> to vector<4x256xf32>
    %207 = arith.truncf %206 : vector<4x256xf32> to vector<4x256xbf16>
    %c28_200 = arith.constant 28 : index
    %c768_201 = arith.constant 768 : index
    %208 = vector.load %arg8[%c28_200, %c768_201] : memref<36x2048xbf16, #tpu.memory_space<vmem>>, vector<4x256xbf16>
    tpu.vector_store %arg8[%c28_200, %c768_201], %207 {strides = array<i32>} : memref<36x2048xbf16, #tpu.memory_space<vmem>>, vector<4x256xbf16>,
    %c3_202 = arith.constant 3 : index
    %c0_203 = arith.constant 0 : index
    %c34_204 = arith.constant 34 : index
    %209 = vector.load %arg1[%c3_202, %c0_203, %c34_204] : memref<8x4x290xf32, #tpu.memory_space<vmem>>, vector<1x4x256xf32>
    %210 = vector.shape_cast %209 : vector<1x4x256xf32> to vector<4x256xf32>
    %c2_205 = arith.constant 2 : index
    %c0_206 = arith.constant 0 : index
    %211 = vector.load %arg2[%c2_205, %c0_206] : memref<3x256xf32, #tpu.memory_space<vmem>>, vector<1x256xf32>
    %212 = vector.broadcast %211 : vector<1x256xf32> to vector<4x256xf32>
    %213 = arith.mulf %210, %212 : vector<4x256xf32>
    %214 = arith.truncf %213 : vector<4x256xf32> to vector<4x256xbf16>
    %c32_207 = arith.constant 32 : index
    %c768_208 = arith.constant 768 : index
    %215 = vector.load %arg8[%c32_207, %c768_208] : memref<36x2048xbf16, #tpu.memory_space<vmem>>, vector<4x256xbf16>
    tpu.vector_store %arg8[%c32_207, %c768_208], %214 {strides = array<i32>} : memref<36x2048xbf16, #tpu.memory_space<vmem>>, vector<4x256xbf16>,
    %c4_209 = arith.constant 4 : index
    %c0_210 = arith.constant 0 : index
    %c0_211 = arith.constant 0 : index
    %216 = vector.load %arg1[%c4_209, %c0_210, %c0_211] : memref<8x4x290xf32, #tpu.memory_space<vmem>>, vector<1x4x256xf32>
    %217 = vector.shape_cast %216 : vector<1x4x256xf32> to vector<4x256xf32>
    %c0_212 = arith.constant 0 : index
    %c0_213 = arith.constant 0 : index
    %218 = vector.load %arg2[%c0_212, %c0_213] : memref<3x256xf32, #tpu.memory_space<vmem>>, vector<1x256xf32>
    %219 = vector.broadcast %218 : vector<1x256xf32> to vector<4x256xf32>
    %220 = arith.mulf %217, %219 : vector<4x256xf32>
    %221 = arith.truncf %220 : vector<4x256xf32> to vector<4x256xbf16>
    %c0_214 = arith.constant 0 : index
    %c1024 = arith.constant 1024 : index
    %222 = vector.load %arg8[%c0_214, %c1024] : memref<36x2048xbf16, #tpu.memory_space<vmem>>, vector<4x256xbf16>
    tpu.vector_store %arg8[%c0_214, %c1024], %221 {strides = array<i32>} : memref<36x2048xbf16, #tpu.memory_space<vmem>>, vector<4x256xbf16>,
    %c4_215 = arith.constant 4 : index
    %c0_216 = arith.constant 0 : index
    %c1_217 = arith.constant 1 : index
    %223 = vector.load %arg1[%c4_215, %c0_216, %c1_217] : memref<8x4x290xf32, #tpu.memory_space<vmem>>, vector<1x4x256xf32>
    %224 = vector.shape_cast %223 : vector<1x4x256xf32> to vector<4x256xf32>
    %225 = arith.truncf %224 : vector<4x256xf32> to vector<4x256xbf16>
    %c4_218 = arith.constant 4 : index
    %c1024_219 = arith.constant 1024 : index
    %226 = vector.load %arg8[%c4_218, %c1024_219] : memref<36x2048xbf16, #tpu.memory_space<vmem>>, vector<4x256xbf16>
    tpu.vector_store %arg8[%c4_218, %c1024_219], %225 {strides = array<i32>} : memref<36x2048xbf16, #tpu.memory_space<vmem>>, vector<4x256xbf16>,
    %c4_220 = arith.constant 4 : index
    %c0_221 = arith.constant 0 : index
    %c2_222 = arith.constant 2 : index
    %227 = vector.load %arg1[%c4_220, %c0_221, %c2_222] : memref<8x4x290xf32, #tpu.memory_space<vmem>>, vector<1x4x256xf32>
    %228 = vector.shape_cast %227 : vector<1x4x256xf32> to vector<4x256xf32>
    %c2_223 = arith.constant 2 : index
    %c0_224 = arith.constant 0 : index
    %229 = vector.load %arg2[%c2_223, %c0_224] : memref<3x256xf32, #tpu.memory_space<vmem>>, vector<1x256xf32>
    %230 = vector.broadcast %229 : vector<1x256xf32> to vector<4x256xf32>
    %231 = arith.mulf %228, %230 : vector<4x256xf32>
    %232 = arith.truncf %231 : vector<4x256xf32> to vector<4x256xbf16>
    %c8_225 = arith.constant 8 : index
    %c1024_226 = arith.constant 1024 : index
    %233 = vector.load %arg8[%c8_225, %c1024_226] : memref<36x2048xbf16, #tpu.memory_space<vmem>>, vector<4x256xbf16>
    tpu.vector_store %arg8[%c8_225, %c1024_226], %232 {strides = array<i32>} : memref<36x2048xbf16, #tpu.memory_space<vmem>>, vector<4x256xbf16>,
    %c4_227 = arith.constant 4 : index
    %c0_228 = arith.constant 0 : index
    %c16_229 = arith.constant 16 : index
    %234 = vector.load %arg1[%c4_227, %c0_228, %c16_229] : memref<8x4x290xf32, #tpu.memory_space<vmem>>, vector<1x4x256xf32>
    %235 = vector.shape_cast %234 : vector<1x4x256xf32> to vector<4x256xf32>
    %c0_230 = arith.constant 0 : index
    %c0_231 = arith.constant 0 : index
    %236 = vector.load %arg2[%c0_230, %c0_231] : memref<3x256xf32, #tpu.memory_space<vmem>>, vector<1x256xf32>
    %237 = vector.broadcast %236 : vector<1x256xf32> to vector<4x256xf32>
    %238 = arith.mulf %235, %237 : vector<4x256xf32>
    %239 = arith.truncf %238 : vector<4x256xf32> to vector<4x256xbf16>
    %c12_232 = arith.constant 12 : index
    %c1024_233 = arith.constant 1024 : index
    %240 = vector.load %arg8[%c12_232, %c1024_233] : memref<36x2048xbf16, #tpu.memory_space<vmem>>, vector<4x256xbf16>
    tpu.vector_store %arg8[%c12_232, %c1024_233], %239 {strides = array<i32>} : memref<36x2048xbf16, #tpu.memory_space<vmem>>, vector<4x256xbf16>,
    %c4_234 = arith.constant 4 : index
    %c0_235 = arith.constant 0 : index
    %c17_236 = arith.constant 17 : index
    %241 = vector.load %arg1[%c4_234, %c0_235, %c17_236] : memref<8x4x290xf32, #tpu.memory_space<vmem>>, vector<1x4x256xf32>
    %242 = vector.shape_cast %241 : vector<1x4x256xf32> to vector<4x256xf32>
    %243 = arith.truncf %242 : vector<4x256xf32> to vector<4x256xbf16>
    %c16_237 = arith.constant 16 : index
    %c1024_238 = arith.constant 1024 : index
    %244 = vector.load %arg8[%c16_237, %c1024_238] : memref<36x2048xbf16, #tpu.memory_space<vmem>>, vector<4x256xbf16>
    tpu.vector_store %arg8[%c16_237, %c1024_238], %243 {strides = array<i32>} : memref<36x2048xbf16, #tpu.memory_space<vmem>>, vector<4x256xbf16>,
    %c4_239 = arith.constant 4 : index
    %c0_240 = arith.constant 0 : index
    %c18_241 = arith.constant 18 : index
    %245 = vector.load %arg1[%c4_239, %c0_240, %c18_241] : memref<8x4x290xf32, #tpu.memory_space<vmem>>, vector<1x4x256xf32>
    %246 = vector.shape_cast %245 : vector<1x4x256xf32> to vector<4x256xf32>
    %c2_242 = arith.constant 2 : index
    %c0_243 = arith.constant 0 : index
    %247 = vector.load %arg2[%c2_242, %c0_243] : memref<3x256xf32, #tpu.memory_space<vmem>>, vector<1x256xf32>
    %248 = vector.broadcast %247 : vector<1x256xf32> to vector<4x256xf32>
    %249 = arith.mulf %246, %248 : vector<4x256xf32>
    %250 = arith.truncf %249 : vector<4x256xf32> to vector<4x256xbf16>
    %c20_244 = arith.constant 20 : index
    %c1024_245 = arith.constant 1024 : index
    %251 = vector.load %arg8[%c20_244, %c1024_245] : memref<36x2048xbf16, #tpu.memory_space<vmem>>, vector<4x256xbf16>
    tpu.vector_store %arg8[%c20_244, %c1024_245], %250 {strides = array<i32>} : memref<36x2048xbf16, #tpu.memory_space<vmem>>, vector<4x256xbf16>,
    %c4_246 = arith.constant 4 : index
    %c0_247 = arith.constant 0 : index
    %c32_248 = arith.constant 32 : index
    %252 = vector.load %arg1[%c4_246, %c0_247, %c32_248] : memref<8x4x290xf32, #tpu.memory_space<vmem>>, vector<1x4x256xf32>
    %253 = vector.shape_cast %252 : vector<1x4x256xf32> to vector<4x256xf32>
    %c0_249 = arith.constant 0 : index
    %c0_250 = arith.constant 0 : index
    %254 = vector.load %arg2[%c0_249, %c0_250] : memref<3x256xf32, #tpu.memory_space<vmem>>, vector<1x256xf32>
    %255 = vector.broadcast %254 : vector<1x256xf32> to vector<4x256xf32>
    %256 = arith.mulf %253, %255 : vector<4x256xf32>
    %257 = arith.truncf %256 : vector<4x256xf32> to vector<4x256xbf16>
    %c24_251 = arith.constant 24 : index
    %c1024_252 = arith.constant 1024 : index
    %258 = vector.load %arg8[%c24_251, %c1024_252] : memref<36x2048xbf16, #tpu.memory_space<vmem>>, vector<4x256xbf16>
    tpu.vector_store %arg8[%c24_251, %c1024_252], %257 {strides = array<i32>} : memref<36x2048xbf16, #tpu.memory_space<vmem>>, vector<4x256xbf16>,
    %c4_253 = arith.constant 4 : index
    %c0_254 = arith.constant 0 : index
    %c33_255 = arith.constant 33 : index
    %259 = vector.load %arg1[%c4_253, %c0_254, %c33_255] : memref<8x4x290xf32, #tpu.memory_space<vmem>>, vector<1x4x256xf32>
    %260 = vector.shape_cast %259 : vector<1x4x256xf32> to vector<4x256xf32>
    %261 = arith.truncf %260 : vector<4x256xf32> to vector<4x256xbf16>
    %c28_256 = arith.constant 28 : index
    %c1024_257 = arith.constant 1024 : index
    %262 = vector.load %arg8[%c28_256, %c1024_257] : memref<36x2048xbf16, #tpu.memory_space<vmem>>, vector<4x256xbf16>
    tpu.vector_store %arg8[%c28_256, %c1024_257], %261 {strides = array<i32>} : memref<36x2048xbf16, #tpu.memory_space<vmem>>, vector<4x256xbf16>,
    %c4_258 = arith.constant 4 : index
    %c0_259 = arith.constant 0 : index
    %c34_260 = arith.constant 34 : index
    %263 = vector.load %arg1[%c4_258, %c0_259, %c34_260] : memref<8x4x290xf32, #tpu.memory_space<vmem>>, vector<1x4x256xf32>
    %264 = vector.shape_cast %263 : vector<1x4x256xf32> to vector<4x256xf32>
    %c2_261 = arith.constant 2 : index
    %c0_262 = arith.constant 0 : index
    %265 = vector.load %arg2[%c2_261, %c0_262] : memref<3x256xf32, #tpu.memory_space<vmem>>, vector<1x256xf32>
    %266 = vector.broadcast %265 : vector<1x256xf32> to vector<4x256xf32>
    %267 = arith.mulf %264, %266 : vector<4x256xf32>
    %268 = arith.truncf %267 : vector<4x256xf32> to vector<4x256xbf16>
    %c32_263 = arith.constant 32 : index
    %c1024_264 = arith.constant 1024 : index
    %269 = vector.load %arg8[%c32_263, %c1024_264] : memref<36x2048xbf16, #tpu.memory_space<vmem>>, vector<4x256xbf16>
    tpu.vector_store %arg8[%c32_263, %c1024_264], %268 {strides = array<i32>} : memref<36x2048xbf16, #tpu.memory_space<vmem>>, vector<4x256xbf16>,
    %c5 = arith.constant 5 : index
    %c0_265 = arith.constant 0 : index
    %c0_266 = arith.constant 0 : index
    %270 = vector.load %arg1[%c5, %c0_265, %c0_266] : memref<8x4x290xf32, #tpu.memory_space<vmem>>, vector<1x4x256xf32>
    %271 = vector.shape_cast %270 : vector<1x4x256xf32> to vector<4x256xf32>
    %c0_267 = arith.constant 0 : index
    %c0_268 = arith.constant 0 : index
    %272 = vector.load %arg2[%c0_267, %c0_268] : memref<3x256xf32, #tpu.memory_space<vmem>>, vector<1x256xf32>
    %273 = vector.broadcast %272 : vector<1x256xf32> to vector<4x256xf32>
    %274 = arith.mulf %271, %273 : vector<4x256xf32>
    %275 = arith.truncf %274 : vector<4x256xf32> to vector<4x256xbf16>
    %c0_269 = arith.constant 0 : index
    %c1280 = arith.constant 1280 : index
    %276 = vector.load %arg8[%c0_269, %c1280] : memref<36x2048xbf16, #tpu.memory_space<vmem>>, vector<4x256xbf16>
    tpu.vector_store %arg8[%c0_269, %c1280], %275 {strides = array<i32>} : memref<36x2048xbf16, #tpu.memory_space<vmem>>, vector<4x256xbf16>,
    %c5_270 = arith.constant 5 : index
    %c0_271 = arith.constant 0 : index
    %c1_272 = arith.constant 1 : index
    %277 = vector.load %arg1[%c5_270, %c0_271, %c1_272] : memref<8x4x290xf32, #tpu.memory_space<vmem>>, vector<1x4x256xf32>
    %278 = vector.shape_cast %277 : vector<1x4x256xf32> to vector<4x256xf32>
    %279 = arith.truncf %278 : vector<4x256xf32> to vector<4x256xbf16>
    %c4_273 = arith.constant 4 : index
    %c1280_274 = arith.constant 1280 : index
    %280 = vector.load %arg8[%c4_273, %c1280_274] : memref<36x2048xbf16, #tpu.memory_space<vmem>>, vector<4x256xbf16>
    tpu.vector_store %arg8[%c4_273, %c1280_274], %279 {strides = array<i32>} : memref<36x2048xbf16, #tpu.memory_space<vmem>>, vector<4x256xbf16>,
    %c5_275 = arith.constant 5 : index
    %c0_276 = arith.constant 0 : index
    %c2_277 = arith.constant 2 : index
    %281 = vector.load %arg1[%c5_275, %c0_276, %c2_277] : memref<8x4x290xf32, #tpu.memory_space<vmem>>, vector<1x4x256xf32>
    %282 = vector.shape_cast %281 : vector<1x4x256xf32> to vector<4x256xf32>
    %c2_278 = arith.constant 2 : index
    %c0_279 = arith.constant 0 : index
    %283 = vector.load %arg2[%c2_278, %c0_279] : memref<3x256xf32, #tpu.memory_space<vmem>>, vector<1x256xf32>
    %284 = vector.broadcast %283 : vector<1x256xf32> to vector<4x256xf32>
    %285 = arith.mulf %282, %284 : vector<4x256xf32>
    %286 = arith.truncf %285 : vector<4x256xf32> to vector<4x256xbf16>
    %c8_280 = arith.constant 8 : index
    %c1280_281 = arith.constant 1280 : index
    %287 = vector.load %arg8[%c8_280, %c1280_281] : memref<36x2048xbf16, #tpu.memory_space<vmem>>, vector<4x256xbf16>
    tpu.vector_store %arg8[%c8_280, %c1280_281], %286 {strides = array<i32>} : memref<36x2048xbf16, #tpu.memory_space<vmem>>, vector<4x256xbf16>,
    %c5_282 = arith.constant 5 : index
    %c0_283 = arith.constant 0 : index
    %c16_284 = arith.constant 16 : index
    %288 = vector.load %arg1[%c5_282, %c0_283, %c16_284] : memref<8x4x290xf32, #tpu.memory_space<vmem>>, vector<1x4x256xf32>
    %289 = vector.shape_cast %288 : vector<1x4x256xf32> to vector<4x256xf32>
    %c0_285 = arith.constant 0 : index
    %c0_286 = arith.constant 0 : index
    %290 = vector.load %arg2[%c0_285, %c0_286] : memref<3x256xf32, #tpu.memory_space<vmem>>, vector<1x256xf32>
    %291 = vector.broadcast %290 : vector<1x256xf32> to vector<4x256xf32>
    %292 = arith.mulf %289, %291 : vector<4x256xf32>
    %293 = arith.truncf %292 : vector<4x256xf32> to vector<4x256xbf16>
    %c12_287 = arith.constant 12 : index
    %c1280_288 = arith.constant 1280 : index
    %294 = vector.load %arg8[%c12_287, %c1280_288] : memref<36x2048xbf16, #tpu.memory_space<vmem>>, vector<4x256xbf16>
    tpu.vector_store %arg8[%c12_287, %c1280_288], %293 {strides = array<i32>} : memref<36x2048xbf16, #tpu.memory_space<vmem>>, vector<4x256xbf16>,
    %c5_289 = arith.constant 5 : index
    %c0_290 = arith.constant 0 : index
    %c17_291 = arith.constant 17 : index
    %295 = vector.load %arg1[%c5_289, %c0_290, %c17_291] : memref<8x4x290xf32, #tpu.memory_space<vmem>>, vector<1x4x256xf32>
    %296 = vector.shape_cast %295 : vector<1x4x256xf32> to vector<4x256xf32>
    %297 = arith.truncf %296 : vector<4x256xf32> to vector<4x256xbf16>
    %c16_292 = arith.constant 16 : index
    %c1280_293 = arith.constant 1280 : index
    %298 = vector.load %arg8[%c16_292, %c1280_293] : memref<36x2048xbf16, #tpu.memory_space<vmem>>, vector<4x256xbf16>
    tpu.vector_store %arg8[%c16_292, %c1280_293], %297 {strides = array<i32>} : memref<36x2048xbf16, #tpu.memory_space<vmem>>, vector<4x256xbf16>,
    %c5_294 = arith.constant 5 : index
    %c0_295 = arith.constant 0 : index
    %c18_296 = arith.constant 18 : index
    %299 = vector.load %arg1[%c5_294, %c0_295, %c18_296] : memref<8x4x290xf32, #tpu.memory_space<vmem>>, vector<1x4x256xf32>
    %300 = vector.shape_cast %299 : vector<1x4x256xf32> to vector<4x256xf32>
    %c2_297 = arith.constant 2 : index
    %c0_298 = arith.constant 0 : index
    %301 = vector.load %arg2[%c2_297, %c0_298] : memref<3x256xf32, #tpu.memory_space<vmem>>, vector<1x256xf32>
    %302 = vector.broadcast %301 : vector<1x256xf32> to vector<4x256xf32>
    %303 = arith.mulf %300, %302 : vector<4x256xf32>
    %304 = arith.truncf %303 : vector<4x256xf32> to vector<4x256xbf16>
    %c20_299 = arith.constant 20 : index
    %c1280_300 = arith.constant 1280 : index
    %305 = vector.load %arg8[%c20_299, %c1280_300] : memref<36x2048xbf16, #tpu.memory_space<vmem>>, vector<4x256xbf16>
    tpu.vector_store %arg8[%c20_299, %c1280_300], %304 {strides = array<i32>} : memref<36x2048xbf16, #tpu.memory_space<vmem>>, vector<4x256xbf16>,
    %c5_301 = arith.constant 5 : index
    %c0_302 = arith.constant 0 : index
    %c32_303 = arith.constant 32 : index
    %306 = vector.load %arg1[%c5_301, %c0_302, %c32_303] : memref<8x4x290xf32, #tpu.memory_space<vmem>>, vector<1x4x256xf32>
    %307 = vector.shape_cast %306 : vector<1x4x256xf32> to vector<4x256xf32>
    %c0_304 = arith.constant 0 : index
    %c0_305 = arith.constant 0 : index
    %308 = vector.load %arg2[%c0_304, %c0_305] : memref<3x256xf32, #tpu.memory_space<vmem>>, vector<1x256xf32>
    %309 = vector.broadcast %308 : vector<1x256xf32> to vector<4x256xf32>
    %310 = arith.mulf %307, %309 : vector<4x256xf32>
    %311 = arith.truncf %310 : vector<4x256xf32> to vector<4x256xbf16>
    %c24_306 = arith.constant 24 : index
    %c1280_307 = arith.constant 1280 : index
    %312 = vector.load %arg8[%c24_306, %c1280_307] : memref<36x2048xbf16, #tpu.memory_space<vmem>>, vector<4x256xbf16>
    tpu.vector_store %arg8[%c24_306, %c1280_307], %311 {strides = array<i32>} : memref<36x2048xbf16, #tpu.memory_space<vmem>>, vector<4x256xbf16>,
    %c5_308 = arith.constant 5 : index
    %c0_309 = arith.constant 0 : index
    %c33_310 = arith.constant 33 : index
    %313 = vector.load %arg1[%c5_308, %c0_309, %c33_310] : memref<8x4x290xf32, #tpu.memory_space<vmem>>, vector<1x4x256xf32>
    %314 = vector.shape_cast %313 : vector<1x4x256xf32> to vector<4x256xf32>
    %315 = arith.truncf %314 : vector<4x256xf32> to vector<4x256xbf16>
    %c28_311 = arith.constant 28 : index
    %c1280_312 = arith.constant 1280 : index
    %316 = vector.load %arg8[%c28_311, %c1280_312] : memref<36x2048xbf16, #tpu.memory_space<vmem>>, vector<4x256xbf16>
    tpu.vector_store %arg8[%c28_311, %c1280_312], %315 {strides = array<i32>} : memref<36x2048xbf16, #tpu.memory_space<vmem>>, vector<4x256xbf16>,
    %c5_313 = arith.constant 5 : index
    %c0_314 = arith.constant 0 : index
    %c34_315 = arith.constant 34 : index
    %317 = vector.load %arg1[%c5_313, %c0_314, %c34_315] : memref<8x4x290xf32, #tpu.memory_space<vmem>>, vector<1x4x256xf32>
    %318 = vector.shape_cast %317 : vector<1x4x256xf32> to vector<4x256xf32>
    %c2_316 = arith.constant 2 : index
    %c0_317 = arith.constant 0 : index
    %319 = vector.load %arg2[%c2_316, %c0_317] : memref<3x256xf32, #tpu.memory_space<vmem>>, vector<1x256xf32>
    %320 = vector.broadcast %319 : vector<1x256xf32> to vector<4x256xf32>
    %321 = arith.mulf %318, %320 : vector<4x256xf32>
    %322 = arith.truncf %321 : vector<4x256xf32> to vector<4x256xbf16>
    %c32_318 = arith.constant 32 : index
    %c1280_319 = arith.constant 1280 : index
    %323 = vector.load %arg8[%c32_318, %c1280_319] : memref<36x2048xbf16, #tpu.memory_space<vmem>>, vector<4x256xbf16>
    tpu.vector_store %arg8[%c32_318, %c1280_319], %322 {strides = array<i32>} : memref<36x2048xbf16, #tpu.memory_space<vmem>>, vector<4x256xbf16>,
    %c6 = arith.constant 6 : index
    %c0_320 = arith.constant 0 : index
    %c0_321 = arith.constant 0 : index
    %324 = vector.load %arg1[%c6, %c0_320, %c0_321] : memref<8x4x290xf32, #tpu.memory_space<vmem>>, vector<1x4x256xf32>
    %325 = vector.shape_cast %324 : vector<1x4x256xf32> to vector<4x256xf32>
    %c0_322 = arith.constant 0 : index
    %c0_323 = arith.constant 0 : index
    %326 = vector.load %arg2[%c0_322, %c0_323] : memref<3x256xf32, #tpu.memory_space<vmem>>, vector<1x256xf32>
    %327 = vector.broadcast %326 : vector<1x256xf32> to vector<4x256xf32>
    %328 = arith.mulf %325, %327 : vector<4x256xf32>
    %329 = arith.truncf %328 : vector<4x256xf32> to vector<4x256xbf16>
    %c0_324 = arith.constant 0 : index
    %c1536 = arith.constant 1536 : index
    %330 = vector.load %arg8[%c0_324, %c1536] : memref<36x2048xbf16, #tpu.memory_space<vmem>>, vector<4x256xbf16>
    tpu.vector_store %arg8[%c0_324, %c1536], %329 {strides = array<i32>} : memref<36x2048xbf16, #tpu.memory_space<vmem>>, vector<4x256xbf16>,
    %c6_325 = arith.constant 6 : index
    %c0_326 = arith.constant 0 : index
    %c1_327 = arith.constant 1 : index
    %331 = vector.load %arg1[%c6_325, %c0_326, %c1_327] : memref<8x4x290xf32, #tpu.memory_space<vmem>>, vector<1x4x256xf32>
    %332 = vector.shape_cast %331 : vector<1x4x256xf32> to vector<4x256xf32>
    %333 = arith.truncf %332 : vector<4x256xf32> to vector<4x256xbf16>
    %c4_328 = arith.constant 4 : index
    %c1536_329 = arith.constant 1536 : index
    %334 = vector.load %arg8[%c4_328, %c1536_329] : memref<36x2048xbf16, #tpu.memory_space<vmem>>, vector<4x256xbf16>
    tpu.vector_store %arg8[%c4_328, %c1536_329], %333 {strides = array<i32>} : memref<36x2048xbf16, #tpu.memory_space<vmem>>, vector<4x256xbf16>,
    %c6_330 = arith.constant 6 : index
    %c0_331 = arith.constant 0 : index
    %c2_332 = arith.constant 2 : index
    %335 = vector.load %arg1[%c6_330, %c0_331, %c2_332] : memref<8x4x290xf32, #tpu.memory_space<vmem>>, vector<1x4x256xf32>
    %336 = vector.shape_cast %335 : vector<1x4x256xf32> to vector<4x256xf32>
    %c2_333 = arith.constant 2 : index
    %c0_334 = arith.constant 0 : index
    %337 = vector.load %arg2[%c2_333, %c0_334] : memref<3x256xf32, #tpu.memory_space<vmem>>, vector<1x256xf32>
    %338 = vector.broadcast %337 : vector<1x256xf32> to vector<4x256xf32>
    %339 = arith.mulf %336, %338 : vector<4x256xf32>
    %340 = arith.truncf %339 : vector<4x256xf32> to vector<4x256xbf16>
    %c8_335 = arith.constant 8 : index
    %c1536_336 = arith.constant 1536 : index
    %341 = vector.load %arg8[%c8_335, %c1536_336] : memref<36x2048xbf16, #tpu.memory_space<vmem>>, vector<4x256xbf16>
    tpu.vector_store %arg8[%c8_335, %c1536_336], %340 {strides = array<i32>} : memref<36x2048xbf16, #tpu.memory_space<vmem>>, vector<4x256xbf16>,
    %c6_337 = arith.constant 6 : index
    %c0_338 = arith.constant 0 : index
    %c16_339 = arith.constant 16 : index
    %342 = vector.load %arg1[%c6_337, %c0_338, %c16_339] : memref<8x4x290xf32, #tpu.memory_space<vmem>>, vector<1x4x256xf32>
    %343 = vector.shape_cast %342 : vector<1x4x256xf32> to vector<4x256xf32>
    %c0_340 = arith.constant 0 : index
    %c0_341 = arith.constant 0 : index
    %344 = vector.load %arg2[%c0_340, %c0_341] : memref<3x256xf32, #tpu.memory_space<vmem>>, vector<1x256xf32>
    %345 = vector.broadcast %344 : vector<1x256xf32> to vector<4x256xf32>
    %346 = arith.mulf %343, %345 : vector<4x256xf32>
    %347 = arith.truncf %346 : vector<4x256xf32> to vector<4x256xbf16>
    %c12_342 = arith.constant 12 : index
    %c1536_343 = arith.constant 1536 : index
    %348 = vector.load %arg8[%c12_342, %c1536_343] : memref<36x2048xbf16, #tpu.memory_space<vmem>>, vector<4x256xbf16>
    tpu.vector_store %arg8[%c12_342, %c1536_343], %347 {strides = array<i32>} : memref<36x2048xbf16, #tpu.memory_space<vmem>>, vector<4x256xbf16>,
    %c6_344 = arith.constant 6 : index
    %c0_345 = arith.constant 0 : index
    %c17_346 = arith.constant 17 : index
    %349 = vector.load %arg1[%c6_344, %c0_345, %c17_346] : memref<8x4x290xf32, #tpu.memory_space<vmem>>, vector<1x4x256xf32>
    %350 = vector.shape_cast %349 : vector<1x4x256xf32> to vector<4x256xf32>
    %351 = arith.truncf %350 : vector<4x256xf32> to vector<4x256xbf16>
    %c16_347 = arith.constant 16 : index
    %c1536_348 = arith.constant 1536 : index
    %352 = vector.load %arg8[%c16_347, %c1536_348] : memref<36x2048xbf16, #tpu.memory_space<vmem>>, vector<4x256xbf16>
    tpu.vector_store %arg8[%c16_347, %c1536_348], %351 {strides = array<i32>} : memref<36x2048xbf16, #tpu.memory_space<vmem>>, vector<4x256xbf16>,
    %c6_349 = arith.constant 6 : index
    %c0_350 = arith.constant 0 : index
    %c18_351 = arith.constant 18 : index
    %353 = vector.load %arg1[%c6_349, %c0_350, %c18_351] : memref<8x4x290xf32, #tpu.memory_space<vmem>>, vector<1x4x256xf32>
    %354 = vector.shape_cast %353 : vector<1x4x256xf32> to vector<4x256xf32>
    %c2_352 = arith.constant 2 : index
    %c0_353 = arith.constant 0 : index
    %355 = vector.load %arg2[%c2_352, %c0_353] : memref<3x256xf32, #tpu.memory_space<vmem>>, vector<1x256xf32>
    %356 = vector.broadcast %355 : vector<1x256xf32> to vector<4x256xf32>
    %357 = arith.mulf %354, %356 : vector<4x256xf32>
    %358 = arith.truncf %357 : vector<4x256xf32> to vector<4x256xbf16>
    %c20_354 = arith.constant 20 : index
    %c1536_355 = arith.constant 1536 : index
    %359 = vector.load %arg8[%c20_354, %c1536_355] : memref<36x2048xbf16, #tpu.memory_space<vmem>>, vector<4x256xbf16>
    tpu.vector_store %arg8[%c20_354, %c1536_355], %358 {strides = array<i32>} : memref<36x2048xbf16, #tpu.memory_space<vmem>>, vector<4x256xbf16>,
    %c6_356 = arith.constant 6 : index
    %c0_357 = arith.constant 0 : index
    %c32_358 = arith.constant 32 : index
    %360 = vector.load %arg1[%c6_356, %c0_357, %c32_358] : memref<8x4x290xf32, #tpu.memory_space<vmem>>, vector<1x4x256xf32>
    %361 = vector.shape_cast %360 : vector<1x4x256xf32> to vector<4x256xf32>
    %c0_359 = arith.constant 0 : index
    %c0_360 = arith.constant 0 : index
    %362 = vector.load %arg2[%c0_359, %c0_360] : memref<3x256xf32, #tpu.memory_space<vmem>>, vector<1x256xf32>
    %363 = vector.broadcast %362 : vector<1x256xf32> to vector<4x256xf32>
    %364 = arith.mulf %361, %363 : vector<4x256xf32>
    %365 = arith.truncf %364 : vector<4x256xf32> to vector<4x256xbf16>
    %c24_361 = arith.constant 24 : index
    %c1536_362 = arith.constant 1536 : index
    %366 = vector.load %arg8[%c24_361, %c1536_362] : memref<36x2048xbf16, #tpu.memory_space<vmem>>, vector<4x256xbf16>
    tpu.vector_store %arg8[%c24_361, %c1536_362], %365 {strides = array<i32>} : memref<36x2048xbf16, #tpu.memory_space<vmem>>, vector<4x256xbf16>,
    %c6_363 = arith.constant 6 : index
    %c0_364 = arith.constant 0 : index
    %c33_365 = arith.constant 33 : index
    %367 = vector.load %arg1[%c6_363, %c0_364, %c33_365] : memref<8x4x290xf32, #tpu.memory_space<vmem>>, vector<1x4x256xf32>
    %368 = vector.shape_cast %367 : vector<1x4x256xf32> to vector<4x256xf32>
    %369 = arith.truncf %368 : vector<4x256xf32> to vector<4x256xbf16>
    %c28_366 = arith.constant 28 : index
    %c1536_367 = arith.constant 1536 : index
    %370 = vector.load %arg8[%c28_366, %c1536_367] : memref<36x2048xbf16, #tpu.memory_space<vmem>>, vector<4x256xbf16>
    tpu.vector_store %arg8[%c28_366, %c1536_367], %369 {strides = array<i32>} : memref<36x2048xbf16, #tpu.memory_space<vmem>>, vector<4x256xbf16>,
    %c6_368 = arith.constant 6 : index
    %c0_369 = arith.constant 0 : index
    %c34_370 = arith.constant 34 : index
    %371 = vector.load %arg1[%c6_368, %c0_369, %c34_370] : memref<8x4x290xf32, #tpu.memory_space<vmem>>, vector<1x4x256xf32>
    %372 = vector.shape_cast %371 : vector<1x4x256xf32> to vector<4x256xf32>
    %c2_371 = arith.constant 2 : index
    %c0_372 = arith.constant 0 : index
    %373 = vector.load %arg2[%c2_371, %c0_372] : memref<3x256xf32, #tpu.memory_space<vmem>>, vector<1x256xf32>
    %374 = vector.broadcast %373 : vector<1x256xf32> to vector<4x256xf32>
    %375 = arith.mulf %372, %374 : vector<4x256xf32>
    %376 = arith.truncf %375 : vector<4x256xf32> to vector<4x256xbf16>
    %c32_373 = arith.constant 32 : index
    %c1536_374 = arith.constant 1536 : index
    %377 = vector.load %arg8[%c32_373, %c1536_374] : memref<36x2048xbf16, #tpu.memory_space<vmem>>, vector<4x256xbf16>
    tpu.vector_store %arg8[%c32_373, %c1536_374], %376 {strides = array<i32>} : memref<36x2048xbf16, #tpu.memory_space<vmem>>, vector<4x256xbf16>,
    %c7 = arith.constant 7 : index
    %c0_375 = arith.constant 0 : index
    %c0_376 = arith.constant 0 : index
    %378 = vector.load %arg1[%c7, %c0_375, %c0_376] : memref<8x4x290xf32, #tpu.memory_space<vmem>>, vector<1x4x256xf32>
    %379 = vector.shape_cast %378 : vector<1x4x256xf32> to vector<4x256xf32>
    %c0_377 = arith.constant 0 : index
    %c0_378 = arith.constant 0 : index
    %380 = vector.load %arg2[%c0_377, %c0_378] : memref<3x256xf32, #tpu.memory_space<vmem>>, vector<1x256xf32>
    %381 = vector.broadcast %380 : vector<1x256xf32> to vector<4x256xf32>
    %382 = arith.mulf %379, %381 : vector<4x256xf32>
    %383 = arith.truncf %382 : vector<4x256xf32> to vector<4x256xbf16>
    %c0_379 = arith.constant 0 : index
    %c1792 = arith.constant 1792 : index
    %384 = vector.load %arg8[%c0_379, %c1792] : memref<36x2048xbf16, #tpu.memory_space<vmem>>, vector<4x256xbf16>
    tpu.vector_store %arg8[%c0_379, %c1792], %383 {strides = array<i32>} : memref<36x2048xbf16, #tpu.memory_space<vmem>>, vector<4x256xbf16>,
    %c7_380 = arith.constant 7 : index
    %c0_381 = arith.constant 0 : index
    %c1_382 = arith.constant 1 : index
    %385 = vector.load %arg1[%c7_380, %c0_381, %c1_382] : memref<8x4x290xf32, #tpu.memory_space<vmem>>, vector<1x4x256xf32>
    %386 = vector.shape_cast %385 : vector<1x4x256xf32> to vector<4x256xf32>
    %387 = arith.truncf %386 : vector<4x256xf32> to vector<4x256xbf16>
    %c4_383 = arith.constant 4 : index
    %c1792_384 = arith.constant 1792 : index
    %388 = vector.load %arg8[%c4_383, %c1792_384] : memref<36x2048xbf16, #tpu.memory_space<vmem>>, vector<4x256xbf16>
    tpu.vector_store %arg8[%c4_383, %c1792_384], %387 {strides = array<i32>} : memref<36x2048xbf16, #tpu.memory_space<vmem>>, vector<4x256xbf16>,
    %c7_385 = arith.constant 7 : index
    %c0_386 = arith.constant 0 : index
    %c2_387 = arith.constant 2 : index
    %389 = vector.load %arg1[%c7_385, %c0_386, %c2_387] : memref<8x4x290xf32, #tpu.memory_space<vmem>>, vector<1x4x256xf32>
    %390 = vector.shape_cast %389 : vector<1x4x256xf32> to vector<4x256xf32>
    %c2_388 = arith.constant 2 : index
    %c0_389 = arith.constant 0 : index
    %391 = vector.load %arg2[%c2_388, %c0_389] : memref<3x256xf32, #tpu.memory_space<vmem>>, vector<1x256xf32>
    %392 = vector.broadcast %391 : vector<1x256xf32> to vector<4x256xf32>
    %393 = arith.mulf %390, %392 : vector<4x256xf32>
    %394 = arith.truncf %393 : vector<4x256xf32> to vector<4x256xbf16>
    %c8_390 = arith.constant 8 : index
    %c1792_391 = arith.constant 1792 : index
    %395 = vector.load %arg8[%c8_390, %c1792_391] : memref<36x2048xbf16, #tpu.memory_space<vmem>>, vector<4x256xbf16>
    tpu.vector_store %arg8[%c8_390, %c1792_391], %394 {strides = array<i32>} : memref<36x2048xbf16, #tpu.memory_space<vmem>>, vector<4x256xbf16>,
    %c7_392 = arith.constant 7 : index
    %c0_393 = arith.constant 0 : index
    %c16_394 = arith.constant 16 : index
    %396 = vector.load %arg1[%c7_392, %c0_393, %c16_394] : memref<8x4x290xf32, #tpu.memory_space<vmem>>, vector<1x4x256xf32>
    %397 = vector.shape_cast %396 : vector<1x4x256xf32> to vector<4x256xf32>
    %c0_395 = arith.constant 0 : index
    %c0_396 = arith.constant 0 : index
    %398 = vector.load %arg2[%c0_395, %c0_396] : memref<3x256xf32, #tpu.memory_space<vmem>>, vector<1x256xf32>
    %399 = vector.broadcast %398 : vector<1x256xf32> to vector<4x256xf32>
    %400 = arith.mulf %397, %399 : vector<4x256xf32>
    %401 = arith.truncf %400 : vector<4x256xf32> to vector<4x256xbf16>
    %c12_397 = arith.constant 12 : index
    %c1792_398 = arith.constant 1792 : index
    %402 = vector.load %arg8[%c12_397, %c1792_398] : memref<36x2048xbf16, #tpu.memory_space<vmem>>, vector<4x256xbf16>
    tpu.vector_store %arg8[%c12_397, %c1792_398], %401 {strides = array<i32>} : memref<36x2048xbf16, #tpu.memory_space<vmem>>, vector<4x256xbf16>,
    %c7_399 = arith.constant 7 : index
    %c0_400 = arith.constant 0 : index
    %c17_401 = arith.constant 17 : index
    %403 = vector.load %arg1[%c7_399, %c0_400, %c17_401] : memref<8x4x290xf32, #tpu.memory_space<vmem>>, vector<1x4x256xf32>
    %404 = vector.shape_cast %403 : vector<1x4x256xf32> to vector<4x256xf32>
    %405 = arith.truncf %404 : vector<4x256xf32> to vector<4x256xbf16>
    %c16_402 = arith.constant 16 : index
    %c1792_403 = arith.constant 1792 : index
    %406 = vector.load %arg8[%c16_402, %c1792_403] : memref<36x2048xbf16, #tpu.memory_space<vmem>>, vector<4x256xbf16>
    tpu.vector_store %arg8[%c16_402, %c1792_403], %405 {strides = array<i32>} : memref<36x2048xbf16, #tpu.memory_space<vmem>>, vector<4x256xbf16>,
    %c7_404 = arith.constant 7 : index
    %c0_405 = arith.constant 0 : index
    %c18_406 = arith.constant 18 : index
    %407 = vector.load %arg1[%c7_404, %c0_405, %c18_406] : memref<8x4x290xf32, #tpu.memory_space<vmem>>, vector<1x4x256xf32>
    %408 = vector.shape_cast %407 : vector<1x4x256xf32> to vector<4x256xf32>
    %c2_407 = arith.constant 2 : index
    %c0_408 = arith.constant 0 : index
    %409 = vector.load %arg2[%c2_407, %c0_408] : memref<3x256xf32, #tpu.memory_space<vmem>>, vector<1x256xf32>
    %410 = vector.broadcast %409 : vector<1x256xf32> to vector<4x256xf32>
    %411 = arith.mulf %408, %410 : vector<4x256xf32>
    %412 = arith.truncf %411 : vector<4x256xf32> to vector<4x256xbf16>
    %c20_409 = arith.constant 20 : index
    %c1792_410 = arith.constant 1792 : index
    %413 = vector.load %arg8[%c20_409, %c1792_410] : memref<36x2048xbf16, #tpu.memory_space<vmem>>, vector<4x256xbf16>
    tpu.vector_store %arg8[%c20_409, %c1792_410], %412 {strides = array<i32>} : memref<36x2048xbf16, #tpu.memory_space<vmem>>, vector<4x256xbf16>,
    %c7_411 = arith.constant 7 : index
    %c0_412 = arith.constant 0 : index
    %c32_413 = arith.constant 32 : index
    %414 = vector.load %arg1[%c7_411, %c0_412, %c32_413] : memref<8x4x290xf32, #tpu.memory_space<vmem>>, vector<1x4x256xf32>
    %415 = vector.shape_cast %414 : vector<1x4x256xf32> to vector<4x256xf32>
    %c0_414 = arith.constant 0 : index
    %c0_415 = arith.constant 0 : index
    %416 = vector.load %arg2[%c0_414, %c0_415] : memref<3x256xf32, #tpu.memory_space<vmem>>, vector<1x256xf32>
    %417 = vector.broadcast %416 : vector<1x256xf32> to vector<4x256xf32>
    %418 = arith.mulf %415, %417 : vector<4x256xf32>
    %419 = arith.truncf %418 : vector<4x256xf32> to vector<4x256xbf16>
    %c24_416 = arith.constant 24 : index
    %c1792_417 = arith.constant 1792 : index
    %420 = vector.load %arg8[%c24_416, %c1792_417] : memref<36x2048xbf16, #tpu.memory_space<vmem>>, vector<4x256xbf16>
    tpu.vector_store %arg8[%c24_416, %c1792_417], %419 {strides = array<i32>} : memref<36x2048xbf16, #tpu.memory_space<vmem>>, vector<4x256xbf16>,
    %c7_418 = arith.constant 7 : index
    %c0_419 = arith.constant 0 : index
    %c33_420 = arith.constant 33 : index
    %421 = vector.load %arg1[%c7_418, %c0_419, %c33_420] : memref<8x4x290xf32, #tpu.memory_space<vmem>>, vector<1x4x256xf32>
    %422 = vector.shape_cast %421 : vector<1x4x256xf32> to vector<4x256xf32>
    %423 = arith.truncf %422 : vector<4x256xf32> to vector<4x256xbf16>
    %c28_421 = arith.constant 28 : index
    %c1792_422 = arith.constant 1792 : index
    %424 = vector.load %arg8[%c28_421, %c1792_422] : memref<36x2048xbf16, #tpu.memory_space<vmem>>, vector<4x256xbf16>
    tpu.vector_store %arg8[%c28_421, %c1792_422], %423 {strides = array<i32>} : memref<36x2048xbf16, #tpu.memory_space<vmem>>, vector<4x256xbf16>,
    %c7_423 = arith.constant 7 : index
    %c0_424 = arith.constant 0 : index
    %c34_425 = arith.constant 34 : index
    %425 = vector.load %arg1[%c7_423, %c0_424, %c34_425] : memref<8x4x290xf32, #tpu.memory_space<vmem>>, vector<1x4x256xf32>
    %426 = vector.shape_cast %425 : vector<1x4x256xf32> to vector<4x256xf32>
    %c2_426 = arith.constant 2 : index
    %c0_427 = arith.constant 0 : index
    %427 = vector.load %arg2[%c2_426, %c0_427] : memref<3x256xf32, #tpu.memory_space<vmem>>, vector<1x256xf32>
    %428 = vector.broadcast %427 : vector<1x256xf32> to vector<4x256xf32>
    %429 = arith.mulf %426, %428 : vector<4x256xf32>
    %430 = arith.truncf %429 : vector<4x256xf32> to vector<4x256xbf16>
    %c32_428 = arith.constant 32 : index
    %c1792_429 = arith.constant 1792 : index
    %431 = vector.load %arg8[%c32_428, %c1792_429] : memref<36x2048xbf16, #tpu.memory_space<vmem>>, vector<4x256xbf16>
    tpu.vector_store %arg8[%c32_428, %c1792_429], %430 {strides = array<i32>} : memref<36x2048xbf16, #tpu.memory_space<vmem>>, vector<4x256xbf16>,
    %c0_430 = arith.constant 0 : index
    %c0_431 = arith.constant 0 : index
    %432 = vector.load %arg3[%c0_430, %c0_431] : memref<8x36xbf16, #tpu.memory_space<vmem>>, vector<8x36xbf16>
    %c0_432 = arith.constant 0 : index
    %c0_433 = arith.constant 0 : index
    %433 = vector.load %arg8[%c0_432, %c0_433] : memref<36x2048xbf16, #tpu.memory_space<vmem>>, vector<36x2048xbf16>
    %cst = arith.constant dense<0.000000e+00> : vector<8x2048xf32>
    %434 = tpu.matmul %432, %433, %cst {dimension_numbers = #tpu.dot_dimension_numbers<[1], [0], [0], [1], [0, 0, 1, 1], [], []>} : vector<8x36xbf16>, vector<36x2048xbf16>, vector<8x2048xf32> -> vector<8x2048xf32>
    %c0_434 = arith.constant 0 : index
    %c0_435 = arith.constant 0 : index
    %435 = vector.load %arg4[%c0_434, %c0_435] : memref<8x1xf32, #tpu.memory_space<vmem>>, vector<8x1xf32>
    %436 = vector.broadcast %435 : vector<8x1xf32> to vector<8x2048xf32>
    %437 = arith.addf %434, %436 : vector<8x2048xf32>
    %438 = arith.truncf %437 : vector<8x2048xf32> to vector<8x2048xbf16>
    %c0_436 = arith.constant 0 : index
    %c0_437 = arith.constant 0 : index
    %439 = vector.load %arg5[%c0_436, %c0_437] : memref<8x2048xbf16, #tpu.memory_space<vmem>>, vector<8x2048xbf16>
    tpu.vector_store %arg5[%c0_436, %c0_437], %438 {strides = array<i32>} : memref<8x2048xbf16, #tpu.memory_space<vmem>>, vector<8x2048xbf16>,
    %440 = vector.extract_strided_slice %437 {offsets = [0, 0], sizes = [8, 256], strides = [1, 1]} : vector<8x2048xf32> to vector<8x256xf32>
    %cst_438 = arith.constant dense<0.000000e+00> : vector<8xf32>
    %441 = vector.multi_reduction <add>, %440, %cst_438 [1] : vector<8x256xf32> to vector<8xf32>
    %442 = vector.shape_cast %441 : vector<8xf32> to vector<8x1xf32>
    %cst_439 = arith.constant dense<0.000000e+00> : vector<1xf32>
    %443 = vector.multi_reduction <add>, %442, %cst_439 [0] : vector<8x1xf32> to vector<1xf32>
    %444 = vector.shape_cast %443 : vector<1xf32> to vector<1x1xf32>
    %cst_440 = arith.constant dense<0xFF800000> : vector<8xf32>
    %445 = vector.multi_reduction <maximumf>, %440, %cst_440 [1] : vector<8x256xf32> to vector<8xf32>
    %446 = vector.shape_cast %445 : vector<8xf32> to vector<8x1xf32>
    %cst_441 = arith.constant dense<0xFF800000> : vector<1xf32>
    %447 = vector.multi_reduction <maximumf>, %446, %cst_441 [0] : vector<8x1xf32> to vector<1xf32>
    %448 = vector.shape_cast %447 : vector<1xf32> to vector<1x1xf32>
    %cst_442 = arith.constant 4.8828125E-4 : f32
    %449 = vector.broadcast %cst_442 : f32 to vector<1x1xf32>
    %450 = arith.mulf %444, %449 : vector<1x1xf32>
    %451 = vector.shape_cast %450 : vector<1x1xf32> to vector<1x1xf32>
    %452 = vector.broadcast %451 : vector<1x1xf32> to vector<1x128xf32>
    %c0_443 = arith.constant 0 : index
    %c0_444 = arith.constant 0 : index
    %453 = vector.load %arg6[%c0_443, %c0_444] : memref<8x128xf32, #tpu.memory_space<vmem>>, vector<1x128xf32>
    tpu.vector_store %arg6[%c0_443, %c0_444], %452 {strides = array<i32>} : memref<8x128xf32, #tpu.memory_space<vmem>>, vector<1x128xf32>,
    %454 = vector.shape_cast %448 : vector<1x1xf32> to vector<1x1xf32>
    %455 = vector.broadcast %454 : vector<1x1xf32> to vector<1x128xf32>
    %c0_445 = arith.constant 0 : index
    %c0_446 = arith.constant 0 : index
    %456 = vector.load %arg7[%c0_445, %c0_446] : memref<8x128xf32, #tpu.memory_space<vmem>>, vector<1x128xf32>
    tpu.vector_store %arg7[%c0_445, %c0_446], %455 {strides = array<i32>} : memref<8x128xf32, #tpu.memory_space<vmem>>, vector<1x128xf32>,
    %457 = vector.extract_strided_slice %437 {offsets = [0, 256], sizes = [8, 256], strides = [1, 1]} : vector<8x2048xf32> to vector<8x256xf32>
    %cst_447 = arith.constant dense<0.000000e+00> : vector<8xf32>
    %458 = vector.multi_reduction <add>, %457, %cst_447 [1] : vector<8x256xf32> to vector<8xf32>
    %459 = vector.shape_cast %458 : vector<8xf32> to vector<8x1xf32>
    %cst_448 = arith.constant dense<0.000000e+00> : vector<1xf32>
    %460 = vector.multi_reduction <add>, %459, %cst_448 [0] : vector<8x1xf32> to vector<1xf32>
    %461 = vector.shape_cast %460 : vector<1xf32> to vector<1x1xf32>
    %cst_449 = arith.constant dense<0xFF800000> : vector<8xf32>
    %462 = vector.multi_reduction <maximumf>, %457, %cst_449 [1] : vector<8x256xf32> to vector<8xf32>
    %463 = vector.shape_cast %462 : vector<8xf32> to vector<8x1xf32>
    %cst_450 = arith.constant dense<0xFF800000> : vector<1xf32>
    %464 = vector.multi_reduction <maximumf>, %463, %cst_450 [0] : vector<8x1xf32> to vector<1xf32>
    %465 = vector.shape_cast %464 : vector<1xf32> to vector<1x1xf32>
    %cst_451 = arith.constant 4.8828125E-4 : f32
    %466 = vector.broadcast %cst_451 : f32 to vector<1x1xf32>
    %467 = arith.mulf %461, %466 : vector<1x1xf32>
    %468 = vector.shape_cast %467 : vector<1x1xf32> to vector<1x1xf32>
    %469 = vector.broadcast %468 : vector<1x1xf32> to vector<1x128xf32>
    %c1_452 = arith.constant 1 : index
    %c0_453 = arith.constant 0 : index
    %470 = vector.load %arg6[%c1_452, %c0_453] : memref<8x128xf32, #tpu.memory_space<vmem>>, vector<1x128xf32>
    tpu.vector_store %arg6[%c1_452, %c0_453], %469 {strides = array<i32>} : memref<8x128xf32, #tpu.memory_space<vmem>>, vector<1x128xf32>,
    %471 = vector.shape_cast %465 : vector<1x1xf32> to vector<1x1xf32>
    %472 = vector.broadcast %471 : vector<1x1xf32> to vector<1x128xf32>
    %c1_454 = arith.constant 1 : index
    %c0_455 = arith.constant 0 : index
    %473 = vector.load %arg7[%c1_454, %c0_455] : memref<8x128xf32, #tpu.memory_space<vmem>>, vector<1x128xf32>
    tpu.vector_store %arg7[%c1_454, %c0_455], %472 {strides = array<i32>} : memref<8x128xf32, #tpu.memory_space<vmem>>, vector<1x128xf32>,
    %474 = vector.extract_strided_slice %437 {offsets = [0, 512], sizes = [8, 256], strides = [1, 1]} : vector<8x2048xf32> to vector<8x256xf32>
    %cst_456 = arith.constant dense<0.000000e+00> : vector<8xf32>
    %475 = vector.multi_reduction <add>, %474, %cst_456 [1] : vector<8x256xf32> to vector<8xf32>
    %476 = vector.shape_cast %475 : vector<8xf32> to vector<8x1xf32>
    %cst_457 = arith.constant dense<0.000000e+00> : vector<1xf32>
    %477 = vector.multi_reduction <add>, %476, %cst_457 [0] : vector<8x1xf32> to vector<1xf32>
    %478 = vector.shape_cast %477 : vector<1xf32> to vector<1x1xf32>
    %cst_458 = arith.constant dense<0xFF800000> : vector<8xf32>
    %479 = vector.multi_reduction <maximumf>, %474, %cst_458 [1] : vector<8x256xf32> to vector<8xf32>
    %480 = vector.shape_cast %479 : vector<8xf32> to vector<8x1xf32>
    %cst_459 = arith.constant dense<0xFF800000> : vector<1xf32>
    %481 = vector.multi_reduction <maximumf>, %480, %cst_459 [0] : vector<8x1xf32> to vector<1xf32>
    %482 = vector.shape_cast %481 : vector<1xf32> to vector<1x1xf32>
    %cst_460 = arith.constant 4.8828125E-4 : f32
    %483 = vector.broadcast %cst_460 : f32 to vector<1x1xf32>
    %484 = arith.mulf %478, %483 : vector<1x1xf32>
    %485 = vector.shape_cast %484 : vector<1x1xf32> to vector<1x1xf32>
    %486 = vector.broadcast %485 : vector<1x1xf32> to vector<1x128xf32>
    %c2_461 = arith.constant 2 : index
    %c0_462 = arith.constant 0 : index
    %487 = vector.load %arg6[%c2_461, %c0_462] : memref<8x128xf32, #tpu.memory_space<vmem>>, vector<1x128xf32>
    tpu.vector_store %arg6[%c2_461, %c0_462], %486 {strides = array<i32>} : memref<8x128xf32, #tpu.memory_space<vmem>>, vector<1x128xf32>,
    %488 = vector.shape_cast %482 : vector<1x1xf32> to vector<1x1xf32>
    %489 = vector.broadcast %488 : vector<1x1xf32> to vector<1x128xf32>
    %c2_463 = arith.constant 2 : index
    %c0_464 = arith.constant 0 : index
    %490 = vector.load %arg7[%c2_463, %c0_464] : memref<8x128xf32, #tpu.memory_space<vmem>>, vector<1x128xf32>
    tpu.vector_store %arg7[%c2_463, %c0_464], %489 {strides = array<i32>} : memref<8x128xf32, #tpu.memory_space<vmem>>, vector<1x128xf32>,
    %491 = vector.extract_strided_slice %437 {offsets = [0, 768], sizes = [8, 256], strides = [1, 1]} : vector<8x2048xf32> to vector<8x256xf32>
    %cst_465 = arith.constant dense<0.000000e+00> : vector<8xf32>
    %492 = vector.multi_reduction <add>, %491, %cst_465 [1] : vector<8x256xf32> to vector<8xf32>
    %493 = vector.shape_cast %492 : vector<8xf32> to vector<8x1xf32>
    %cst_466 = arith.constant dense<0.000000e+00> : vector<1xf32>
    %494 = vector.multi_reduction <add>, %493, %cst_466 [0] : vector<8x1xf32> to vector<1xf32>
    %495 = vector.shape_cast %494 : vector<1xf32> to vector<1x1xf32>
    %cst_467 = arith.constant dense<0xFF800000> : vector<8xf32>
    %496 = vector.multi_reduction <maximumf>, %491, %cst_467 [1] : vector<8x256xf32> to vector<8xf32>
    %497 = vector.shape_cast %496 : vector<8xf32> to vector<8x1xf32>
    %cst_468 = arith.constant dense<0xFF800000> : vector<1xf32>
    %498 = vector.multi_reduction <maximumf>, %497, %cst_468 [0] : vector<8x1xf32> to vector<1xf32>
    %499 = vector.shape_cast %498 : vector<1xf32> to vector<1x1xf32>
    %cst_469 = arith.constant 4.8828125E-4 : f32
    %500 = vector.broadcast %cst_469 : f32 to vector<1x1xf32>
    %501 = arith.mulf %495, %500 : vector<1x1xf32>
    %502 = vector.shape_cast %501 : vector<1x1xf32> to vector<1x1xf32>
    %503 = vector.broadcast %502 : vector<1x1xf32> to vector<1x128xf32>
    %c3_470 = arith.constant 3 : index
    %c0_471 = arith.constant 0 : index
    %504 = vector.load %arg6[%c3_470, %c0_471] : memref<8x128xf32, #tpu.memory_space<vmem>>, vector<1x128xf32>
    tpu.vector_store %arg6[%c3_470, %c0_471], %503 {strides = array<i32>} : memref<8x128xf32, #tpu.memory_space<vmem>>, vector<1x128xf32>,
    %505 = vector.shape_cast %499 : vector<1x1xf32> to vector<1x1xf32>
    %506 = vector.broadcast %505 : vector<1x1xf32> to vector<1x128xf32>
    %c3_472 = arith.constant 3 : index
    %c0_473 = arith.constant 0 : index
    %507 = vector.load %arg7[%c3_472, %c0_473] : memref<8x128xf32, #tpu.memory_space<vmem>>, vector<1x128xf32>
    tpu.vector_store %arg7[%c3_472, %c0_473], %506 {strides = array<i32>} : memref<8x128xf32, #tpu.memory_space<vmem>>, vector<1x128xf32>,
    %508 = vector.extract_strided_slice %437 {offsets = [0, 1024], sizes = [8, 256], strides = [1, 1]} : vector<8x2048xf32> to vector<8x256xf32>
    %cst_474 = arith.constant dense<0.000000e+00> : vector<8xf32>
    %509 = vector.multi_reduction <add>, %508, %cst_474 [1] : vector<8x256xf32> to vector<8xf32>
    %510 = vector.shape_cast %509 : vector<8xf32> to vector<8x1xf32>
    %cst_475 = arith.constant dense<0.000000e+00> : vector<1xf32>
    %511 = vector.multi_reduction <add>, %510, %cst_475 [0] : vector<8x1xf32> to vector<1xf32>
    %512 = vector.shape_cast %511 : vector<1xf32> to vector<1x1xf32>
    %cst_476 = arith.constant dense<0xFF800000> : vector<8xf32>
    %513 = vector.multi_reduction <maximumf>, %508, %cst_476 [1] : vector<8x256xf32> to vector<8xf32>
    %514 = vector.shape_cast %513 : vector<8xf32> to vector<8x1xf32>
    %cst_477 = arith.constant dense<0xFF800000> : vector<1xf32>
    %515 = vector.multi_reduction <maximumf>, %514, %cst_477 [0] : vector<8x1xf32> to vector<1xf32>
    %516 = vector.shape_cast %515 : vector<1xf32> to vector<1x1xf32>
    %cst_478 = arith.constant 4.8828125E-4 : f32
    %517 = vector.broadcast %cst_478 : f32 to vector<1x1xf32>
    %518 = arith.mulf %512, %517 : vector<1x1xf32>
    %519 = vector.shape_cast %518 : vector<1x1xf32> to vector<1x1xf32>
    %520 = vector.broadcast %519 : vector<1x1xf32> to vector<1x128xf32>
    %c4_479 = arith.constant 4 : index
    %c0_480 = arith.constant 0 : index
    %521 = vector.load %arg6[%c4_479, %c0_480] : memref<8x128xf32, #tpu.memory_space<vmem>>, vector<1x128xf32>
    tpu.vector_store %arg6[%c4_479, %c0_480], %520 {strides = array<i32>} : memref<8x128xf32, #tpu.memory_space<vmem>>, vector<1x128xf32>,
    %522 = vector.shape_cast %516 : vector<1x1xf32> to vector<1x1xf32>
    %523 = vector.broadcast %522 : vector<1x1xf32> to vector<1x128xf32>
    %c4_481 = arith.constant 4 : index
    %c0_482 = arith.constant 0 : index
    %524 = vector.load %arg7[%c4_481, %c0_482] : memref<8x128xf32, #tpu.memory_space<vmem>>, vector<1x128xf32>
    tpu.vector_store %arg7[%c4_481, %c0_482], %523 {strides = array<i32>} : memref<8x128xf32, #tpu.memory_space<vmem>>, vector<1x128xf32>,
    %525 = vector.extract_strided_slice %437 {offsets = [0, 1280], sizes = [8, 256], strides = [1, 1]} : vector<8x2048xf32> to vector<8x256xf32>
    %cst_483 = arith.constant dense<0.000000e+00> : vector<8xf32>
    %526 = vector.multi_reduction <add>, %525, %cst_483 [1] : vector<8x256xf32> to vector<8xf32>
    %527 = vector.shape_cast %526 : vector<8xf32> to vector<8x1xf32>
    %cst_484 = arith.constant dense<0.000000e+00> : vector<1xf32>
    %528 = vector.multi_reduction <add>, %527, %cst_484 [0] : vector<8x1xf32> to vector<1xf32>
    %529 = vector.shape_cast %528 : vector<1xf32> to vector<1x1xf32>
    %cst_485 = arith.constant dense<0xFF800000> : vector<8xf32>
    %530 = vector.multi_reduction <maximumf>, %525, %cst_485 [1] : vector<8x256xf32> to vector<8xf32>
    %531 = vector.shape_cast %530 : vector<8xf32> to vector<8x1xf32>
    %cst_486 = arith.constant dense<0xFF800000> : vector<1xf32>
    %532 = vector.multi_reduction <maximumf>, %531, %cst_486 [0] : vector<8x1xf32> to vector<1xf32>
    %533 = vector.shape_cast %532 : vector<1xf32> to vector<1x1xf32>
    %cst_487 = arith.constant 4.8828125E-4 : f32
    %534 = vector.broadcast %cst_487 : f32 to vector<1x1xf32>
    %535 = arith.mulf %529, %534 : vector<1x1xf32>
    %536 = vector.shape_cast %535 : vector<1x1xf32> to vector<1x1xf32>
    %537 = vector.broadcast %536 : vector<1x1xf32> to vector<1x128xf32>
    %c5_488 = arith.constant 5 : index
    %c0_489 = arith.constant 0 : index
    %538 = vector.load %arg6[%c5_488, %c0_489] : memref<8x128xf32, #tpu.memory_space<vmem>>, vector<1x128xf32>
    tpu.vector_store %arg6[%c5_488, %c0_489], %537 {strides = array<i32>} : memref<8x128xf32, #tpu.memory_space<vmem>>, vector<1x128xf32>,
    %539 = vector.shape_cast %533 : vector<1x1xf32> to vector<1x1xf32>
    %540 = vector.broadcast %539 : vector<1x1xf32> to vector<1x128xf32>
    %c5_490 = arith.constant 5 : index
    %c0_491 = arith.constant 0 : index
    %541 = vector.load %arg7[%c5_490, %c0_491] : memref<8x128xf32, #tpu.memory_space<vmem>>, vector<1x128xf32>
    tpu.vector_store %arg7[%c5_490, %c0_491], %540 {strides = array<i32>} : memref<8x128xf32, #tpu.memory_space<vmem>>, vector<1x128xf32>,
    %542 = vector.extract_strided_slice %437 {offsets = [0, 1536], sizes = [8, 256], strides = [1, 1]} : vector<8x2048xf32> to vector<8x256xf32>
    %cst_492 = arith.constant dense<0.000000e+00> : vector<8xf32>
    %543 = vector.multi_reduction <add>, %542, %cst_492 [1] : vector<8x256xf32> to vector<8xf32>
    %544 = vector.shape_cast %543 : vector<8xf32> to vector<8x1xf32>
    %cst_493 = arith.constant dense<0.000000e+00> : vector<1xf32>
    %545 = vector.multi_reduction <add>, %544, %cst_493 [0] : vector<8x1xf32> to vector<1xf32>
    %546 = vector.shape_cast %545 : vector<1xf32> to vector<1x1xf32>
    %cst_494 = arith.constant dense<0xFF800000> : vector<8xf32>
    %547 = vector.multi_reduction <maximumf>, %542, %cst_494 [1] : vector<8x256xf32> to vector<8xf32>
    %548 = vector.shape_cast %547 : vector<8xf32> to vector<8x1xf32>
    %cst_495 = arith.constant dense<0xFF800000> : vector<1xf32>
    %549 = vector.multi_reduction <maximumf>, %548, %cst_495 [0] : vector<8x1xf32> to vector<1xf32>
    %550 = vector.shape_cast %549 : vector<1xf32> to vector<1x1xf32>
    %cst_496 = arith.constant 4.8828125E-4 : f32
    %551 = vector.broadcast %cst_496 : f32 to vector<1x1xf32>
    %552 = arith.mulf %546, %551 : vector<1x1xf32>
    %553 = vector.shape_cast %552 : vector<1x1xf32> to vector<1x1xf32>
    %554 = vector.broadcast %553 : vector<1x1xf32> to vector<1x128xf32>
    %c6_497 = arith.constant 6 : index
    %c0_498 = arith.constant 0 : index
    %555 = vector.load %arg6[%c6_497, %c0_498] : memref<8x128xf32, #tpu.memory_space<vmem>>, vector<1x128xf32>
    tpu.vector_store %arg6[%c6_497, %c0_498], %554 {strides = array<i32>} : memref<8x128xf32, #tpu.memory_space<vmem>>, vector<1x128xf32>,
    %556 = vector.shape_cast %550 : vector<1x1xf32> to vector<1x1xf32>
    %557 = vector.broadcast %556 : vector<1x1xf32> to vector<1x128xf32>
    %c6_499 = arith.constant 6 : index
    %c0_500 = arith.constant 0 : index
    %558 = vector.load %arg7[%c6_499, %c0_500] : memref<8x128xf32, #tpu.memory_space<vmem>>, vector<1x128xf32>
    tpu.vector_store %arg7[%c6_499, %c0_500], %557 {strides = array<i32>} : memref<8x128xf32, #tpu.memory_space<vmem>>, vector<1x128xf32>,
    %559 = vector.extract_strided_slice %437 {offsets = [0, 1792], sizes = [8, 256], strides = [1, 1]} : vector<8x2048xf32> to vector<8x256xf32>
    %cst_501 = arith.constant dense<0.000000e+00> : vector<8xf32>
    %560 = vector.multi_reduction <add>, %559, %cst_501 [1] : vector<8x256xf32> to vector<8xf32>
    %561 = vector.shape_cast %560 : vector<8xf32> to vector<8x1xf32>
    %cst_502 = arith.constant dense<0.000000e+00> : vector<1xf32>
    %562 = vector.multi_reduction <add>, %561, %cst_502 [0] : vector<8x1xf32> to vector<1xf32>
    %563 = vector.shape_cast %562 : vector<1xf32> to vector<1x1xf32>
    %cst_503 = arith.constant dense<0xFF800000> : vector<8xf32>
    %564 = vector.multi_reduction <maximumf>, %559, %cst_503 [1] : vector<8x256xf32> to vector<8xf32>
    %565 = vector.shape_cast %564 : vector<8xf32> to vector<8x1xf32>
    %cst_504 = arith.constant dense<0xFF800000> : vector<1xf32>
    %566 = vector.multi_reduction <maximumf>, %565, %cst_504 [0] : vector<8x1xf32> to vector<1xf32>
    %567 = vector.shape_cast %566 : vector<1xf32> to vector<1x1xf32>
    %cst_505 = arith.constant 4.8828125E-4 : f32
    %568 = vector.broadcast %cst_505 : f32 to vector<1x1xf32>
    %569 = arith.mulf %563, %568 : vector<1x1xf32>
    %570 = vector.shape_cast %569 : vector<1x1xf32> to vector<1x1xf32>
    %571 = vector.broadcast %570 : vector<1x1xf32> to vector<1x128xf32>
    %c7_506 = arith.constant 7 : index
    %c0_507 = arith.constant 0 : index
    %572 = vector.load %arg6[%c7_506, %c0_507] : memref<8x128xf32, #tpu.memory_space<vmem>>, vector<1x128xf32>
    tpu.vector_store %arg6[%c7_506, %c0_507], %571 {strides = array<i32>} : memref<8x128xf32, #tpu.memory_space<vmem>>, vector<1x128xf32>,
    %573 = vector.shape_cast %567 : vector<1x1xf32> to vector<1x1xf32>
    %574 = vector.broadcast %573 : vector<1x1xf32> to vector<1x128xf32>
    %c7_508 = arith.constant 7 : index
    %c0_509 = arith.constant 0 : index
    %575 = vector.load %arg7[%c7_508, %c0_509] : memref<8x128xf32, #tpu.memory_space<vmem>>, vector<1x128xf32>
    tpu.vector_store %arg7[%c7_508, %c0_509], %574 {strides = array<i32>} : memref<8x128xf32, #tpu.memory_space<vmem>>, vector<1x128xf32>,
    return
  }
  func.func @transform_0(%arg0: i32) -> (i32, i32, i32) {
    %c0_i32 = arith.constant 0 : i32
    %c0_i32_0 = arith.constant 0 : i32
    %c0_i32_1 = arith.constant 0 : i32
    return %arg0, %c0_i32, %c0_i32_0 : i32, i32, i32
  }
  func.func @transform_1(%arg0: i32) -> (i32, i32) {
    %c0_i32 = arith.constant 0 : i32
    %c0_i32_0 = arith.constant 0 : i32
    %c0_i32_1 = arith.constant 0 : i32
    return %c0_i32, %c0_i32_0 : i32, i32
  }
  func.func @transform_2(%arg0: i32) -> (i32, i32) {
    %c0_i32 = arith.constant 0 : i32
    %c0_i32_0 = arith.constant 0 : i32
    %c0_i32_1 = arith.constant 0 : i32
    return %c0_i32, %c0_i32_0 : i32, i32
  }
  func.func @transform_3(%arg0: i32) -> (i32, i32) {
    %c0_i32 = arith.constant 0 : i32
    %c0_i32_0 = arith.constant 0 : i32
    %c0_i32_1 = arith.constant 0 : i32
    return %c0_i32, %c0_i32_0 : i32, i32
  }
  func.func @transform_4(%arg0: i32) -> (i32, i32) {
    %c0_i32 = arith.constant 0 : i32
    %c0_i32_0 = arith.constant 0 : i32
    return %c0_i32, %arg0 : i32, i32
  }
  func.func @transform_5(%arg0: i32) -> (i32, i32) {
    %c0_i32 = arith.constant 0 : i32
    %c0_i32_0 = arith.constant 0 : i32
    return %arg0, %c0_i32 : i32, i32
  }
  func.func @transform_6(%arg0: i32) -> (i32, i32) {
    %c0_i32 = arith.constant 0 : i32
    %c0_i32_0 = arith.constant 0 : i32
    return %arg0, %c0_i32 : i32, i32
  }
}

module attributes {stable_mosaic.version = 11 : i64} {
  func.func @_scale_lif_kernel(%arg0: i32, %arg1: i32, %arg2: memref<2x8xf32, #tpu.memory_space<smem>>, %arg3: memref<8x2048xbf16, #tpu.memory_space<vmem>>, %arg4: memref<1x8x8x256xbf16, #tpu.memory_space<vmem>>, %arg5: memref<8x256xf32, #tpu.memory_space<vmem>>) attributes {dimension_semantics = [#tpu.dimension_semantics<parallel>, #tpu.dimension_semantics<arbitrary>], iteration_bounds = array<i64: 2, 1>, scalar_prefetch = 0 : i64, scratch_operands = 1 : i64, tpu.core_type = #tpu.core_type<tc>, window_params = [{transform_indices = @transform_0, window_bounds = array<i64: 2, 8>}, {transform_indices = @transform_1, window_bounds = array<i64: 8, 2048>}, {transform_indices = @transform_2, window_bounds = array<i64: 1, 8, 8, 256>}]} {
    %c0_i32 = arith.constant 0 : i32
    %0 = arith.cmpi eq, %arg1, %c0_i32 : i32
    %1 = arith.extui %0 : i1 to i32
    %c0_i32_0 = arith.constant 0 : i32
    %2 = arith.cmpi ne, %1, %c0_i32_0 : i32
    scf.if %2 {
      %cst_105 = arith.constant 0.000000e+00 : f32
      %211 = vector.broadcast %cst_105 : f32 to vector<8x256xf32>
      %c0_106 = arith.constant 0 : index
      %c0_107 = arith.constant 0 : index
      %212 = vector.load %arg5[%c0_106, %c0_107] : memref<8x256xf32, #tpu.memory_space<vmem>>, vector<8x256xf32>
      tpu.vector_store %arg5[%c0_106, %c0_107], %211 {strides = array<i32>} : memref<8x256xf32, #tpu.memory_space<vmem>>, vector<8x256xf32>,
    } else {
    }
    %c8_i32 = arith.constant 8 : i32
    %3 = arith.muli %arg1, %c8_i32 : i32
    %c0_i32_1 = arith.constant 0 : i32
    %4 = arith.addi %3, %c0_i32_1 : i32
    %5 = arith.index_cast %arg0 : i32 to index
    %6 = arith.index_cast %4 : i32 to index
    %7 = memref.load %arg2[%5, %6] : memref<2x8xf32, #tpu.memory_space<smem>>
    %c0 = arith.constant 0 : index
    %c0_2 = arith.constant 0 : index
    %8 = vector.load %arg3[%c0, %c0_2] : memref<8x2048xbf16, #tpu.memory_space<vmem>>, vector<8x256xbf16>
    %9 = arith.extf %8 : vector<8x256xbf16> to vector<8x256xf32>
    %10 = vector.broadcast %7 : f32 to vector<8x256xf32>
    %11 = arith.mulf %9, %10 : vector<8x256xf32>
    %c0_3 = arith.constant 0 : index
    %c0_4 = arith.constant 0 : index
    %12 = vector.load %arg5[%c0_3, %c0_4] : memref<8x256xf32, #tpu.memory_space<vmem>>, vector<8x256xf32>
    %cst = arith.constant 3.000000e-01 : f32
    %13 = vector.broadcast %cst : f32 to vector<8x256xf32>
    %14 = arith.mulf %12, %13 : vector<8x256xf32>
    %15 = arith.addf %14, %11 : vector<8x256xf32>
    %cst_5 = arith.constant 3.000000e-01 : f32
    %16 = vector.broadcast %cst_5 : f32 to vector<8x256xf32>
    %17 = arith.cmpf ogt, %15, %16 : vector<8x256xf32>
    %18 = arith.extui %17 : vector<8x256xi1> to vector<8x256xi32>
    %19 = arith.sitofp %18 : vector<8x256xi32> to vector<8x256xf32>
    %20 = arith.truncf %19 : vector<8x256xf32> to vector<8x256xbf16>
    %c0_6 = arith.constant 0 : index
    %c0_7 = arith.constant 0 : index
    %c0_8 = arith.constant 0 : index
    %c0_9 = arith.constant 0 : index
    %21 = vector.load %arg4[%c0_6, %c0_7, %c0_8, %c0_9] : memref<1x8x8x256xbf16, #tpu.memory_space<vmem>>, vector<1x1x8x256xbf16>
    %22 = vector.shape_cast %21 : vector<1x1x8x256xbf16> to vector<8x256xbf16>
    %23 = vector.shape_cast %20 : vector<8x256xbf16> to vector<1x1x8x256xbf16>
    tpu.vector_store %arg4[%c0_6, %c0_7, %c0_8, %c0_9], %23 {strides = array<i32>} : memref<1x8x8x256xbf16, #tpu.memory_space<vmem>>, vector<1x1x8x256xbf16>,
    %cst_10 = arith.constant 3.000000e-01 : f32
    %24 = vector.broadcast %cst_10 : f32 to vector<8x256xf32>
    %25 = arith.mulf %24, %15 : vector<8x256xf32>
    %cst_11 = arith.constant 0.000000e+00 : f32
    %26 = vector.broadcast %cst_11 : f32 to vector<8x256xf32>
    %27 = arith.select %17, %26, %25 : vector<8x256xi1>, vector<8x256xf32>
    %c0_12 = arith.constant 0 : index
    %c0_13 = arith.constant 0 : index
    %28 = vector.load %arg5[%c0_12, %c0_13] : memref<8x256xf32, #tpu.memory_space<vmem>>, vector<8x256xf32>
    tpu.vector_store %arg5[%c0_12, %c0_13], %27 {strides = array<i32>} : memref<8x256xf32, #tpu.memory_space<vmem>>, vector<8x256xf32>,
    %c8_i32_14 = arith.constant 8 : i32
    %29 = arith.muli %arg1, %c8_i32_14 : i32
    %c1_i32 = arith.constant 1 : i32
    %30 = arith.addi %29, %c1_i32 : i32
    %31 = arith.index_cast %arg0 : i32 to index
    %32 = arith.index_cast %30 : i32 to index
    %33 = memref.load %arg2[%31, %32] : memref<2x8xf32, #tpu.memory_space<smem>>
    %c0_15 = arith.constant 0 : index
    %c256 = arith.constant 256 : index
    %34 = vector.load %arg3[%c0_15, %c256] : memref<8x2048xbf16, #tpu.memory_space<vmem>>, vector<8x256xbf16>
    %35 = arith.extf %34 : vector<8x256xbf16> to vector<8x256xf32>
    %36 = vector.broadcast %33 : f32 to vector<8x256xf32>
    %37 = arith.mulf %35, %36 : vector<8x256xf32>
    %c0_16 = arith.constant 0 : index
    %c0_17 = arith.constant 0 : index
    %38 = vector.load %arg5[%c0_16, %c0_17] : memref<8x256xf32, #tpu.memory_space<vmem>>, vector<8x256xf32>
    %cst_18 = arith.constant 3.000000e-01 : f32
    %39 = vector.broadcast %cst_18 : f32 to vector<8x256xf32>
    %40 = arith.mulf %38, %39 : vector<8x256xf32>
    %41 = arith.addf %40, %37 : vector<8x256xf32>
    %cst_19 = arith.constant 3.000000e-01 : f32
    %42 = vector.broadcast %cst_19 : f32 to vector<8x256xf32>
    %43 = arith.cmpf ogt, %41, %42 : vector<8x256xf32>
    %44 = arith.extui %43 : vector<8x256xi1> to vector<8x256xi32>
    %45 = arith.sitofp %44 : vector<8x256xi32> to vector<8x256xf32>
    %46 = arith.truncf %45 : vector<8x256xf32> to vector<8x256xbf16>
    %c0_20 = arith.constant 0 : index
    %c1 = arith.constant 1 : index
    %c0_21 = arith.constant 0 : index
    %c0_22 = arith.constant 0 : index
    %47 = vector.load %arg4[%c0_20, %c1, %c0_21, %c0_22] : memref<1x8x8x256xbf16, #tpu.memory_space<vmem>>, vector<1x1x8x256xbf16>
    %48 = vector.shape_cast %47 : vector<1x1x8x256xbf16> to vector<8x256xbf16>
    %49 = vector.shape_cast %46 : vector<8x256xbf16> to vector<1x1x8x256xbf16>
    tpu.vector_store %arg4[%c0_20, %c1, %c0_21, %c0_22], %49 {strides = array<i32>} : memref<1x8x8x256xbf16, #tpu.memory_space<vmem>>, vector<1x1x8x256xbf16>,
    %cst_23 = arith.constant 3.000000e-01 : f32
    %50 = vector.broadcast %cst_23 : f32 to vector<8x256xf32>
    %51 = arith.mulf %50, %41 : vector<8x256xf32>
    %cst_24 = arith.constant 0.000000e+00 : f32
    %52 = vector.broadcast %cst_24 : f32 to vector<8x256xf32>
    %53 = arith.select %43, %52, %51 : vector<8x256xi1>, vector<8x256xf32>
    %c0_25 = arith.constant 0 : index
    %c0_26 = arith.constant 0 : index
    %54 = vector.load %arg5[%c0_25, %c0_26] : memref<8x256xf32, #tpu.memory_space<vmem>>, vector<8x256xf32>
    tpu.vector_store %arg5[%c0_25, %c0_26], %53 {strides = array<i32>} : memref<8x256xf32, #tpu.memory_space<vmem>>, vector<8x256xf32>,
    %c8_i32_27 = arith.constant 8 : i32
    %55 = arith.muli %arg1, %c8_i32_27 : i32
    %c2_i32 = arith.constant 2 : i32
    %56 = arith.addi %55, %c2_i32 : i32
    %57 = arith.index_cast %arg0 : i32 to index
    %58 = arith.index_cast %56 : i32 to index
    %59 = memref.load %arg2[%57, %58] : memref<2x8xf32, #tpu.memory_space<smem>>
    %c0_28 = arith.constant 0 : index
    %c512 = arith.constant 512 : index
    %60 = vector.load %arg3[%c0_28, %c512] : memref<8x2048xbf16, #tpu.memory_space<vmem>>, vector<8x256xbf16>
    %61 = arith.extf %60 : vector<8x256xbf16> to vector<8x256xf32>
    %62 = vector.broadcast %59 : f32 to vector<8x256xf32>
    %63 = arith.mulf %61, %62 : vector<8x256xf32>
    %c0_29 = arith.constant 0 : index
    %c0_30 = arith.constant 0 : index
    %64 = vector.load %arg5[%c0_29, %c0_30] : memref<8x256xf32, #tpu.memory_space<vmem>>, vector<8x256xf32>
    %cst_31 = arith.constant 3.000000e-01 : f32
    %65 = vector.broadcast %cst_31 : f32 to vector<8x256xf32>
    %66 = arith.mulf %64, %65 : vector<8x256xf32>
    %67 = arith.addf %66, %63 : vector<8x256xf32>
    %cst_32 = arith.constant 3.000000e-01 : f32
    %68 = vector.broadcast %cst_32 : f32 to vector<8x256xf32>
    %69 = arith.cmpf ogt, %67, %68 : vector<8x256xf32>
    %70 = arith.extui %69 : vector<8x256xi1> to vector<8x256xi32>
    %71 = arith.sitofp %70 : vector<8x256xi32> to vector<8x256xf32>
    %72 = arith.truncf %71 : vector<8x256xf32> to vector<8x256xbf16>
    %c0_33 = arith.constant 0 : index
    %c2 = arith.constant 2 : index
    %c0_34 = arith.constant 0 : index
    %c0_35 = arith.constant 0 : index
    %73 = vector.load %arg4[%c0_33, %c2, %c0_34, %c0_35] : memref<1x8x8x256xbf16, #tpu.memory_space<vmem>>, vector<1x1x8x256xbf16>
    %74 = vector.shape_cast %73 : vector<1x1x8x256xbf16> to vector<8x256xbf16>
    %75 = vector.shape_cast %72 : vector<8x256xbf16> to vector<1x1x8x256xbf16>
    tpu.vector_store %arg4[%c0_33, %c2, %c0_34, %c0_35], %75 {strides = array<i32>} : memref<1x8x8x256xbf16, #tpu.memory_space<vmem>>, vector<1x1x8x256xbf16>,
    %cst_36 = arith.constant 3.000000e-01 : f32
    %76 = vector.broadcast %cst_36 : f32 to vector<8x256xf32>
    %77 = arith.mulf %76, %67 : vector<8x256xf32>
    %cst_37 = arith.constant 0.000000e+00 : f32
    %78 = vector.broadcast %cst_37 : f32 to vector<8x256xf32>
    %79 = arith.select %69, %78, %77 : vector<8x256xi1>, vector<8x256xf32>
    %c0_38 = arith.constant 0 : index
    %c0_39 = arith.constant 0 : index
    %80 = vector.load %arg5[%c0_38, %c0_39] : memref<8x256xf32, #tpu.memory_space<vmem>>, vector<8x256xf32>
    tpu.vector_store %arg5[%c0_38, %c0_39], %79 {strides = array<i32>} : memref<8x256xf32, #tpu.memory_space<vmem>>, vector<8x256xf32>,
    %c8_i32_40 = arith.constant 8 : i32
    %81 = arith.muli %arg1, %c8_i32_40 : i32
    %c3_i32 = arith.constant 3 : i32
    %82 = arith.addi %81, %c3_i32 : i32
    %83 = arith.index_cast %arg0 : i32 to index
    %84 = arith.index_cast %82 : i32 to index
    %85 = memref.load %arg2[%83, %84] : memref<2x8xf32, #tpu.memory_space<smem>>
    %c0_41 = arith.constant 0 : index
    %c768 = arith.constant 768 : index
    %86 = vector.load %arg3[%c0_41, %c768] : memref<8x2048xbf16, #tpu.memory_space<vmem>>, vector<8x256xbf16>
    %87 = arith.extf %86 : vector<8x256xbf16> to vector<8x256xf32>
    %88 = vector.broadcast %85 : f32 to vector<8x256xf32>
    %89 = arith.mulf %87, %88 : vector<8x256xf32>
    %c0_42 = arith.constant 0 : index
    %c0_43 = arith.constant 0 : index
    %90 = vector.load %arg5[%c0_42, %c0_43] : memref<8x256xf32, #tpu.memory_space<vmem>>, vector<8x256xf32>
    %cst_44 = arith.constant 3.000000e-01 : f32
    %91 = vector.broadcast %cst_44 : f32 to vector<8x256xf32>
    %92 = arith.mulf %90, %91 : vector<8x256xf32>
    %93 = arith.addf %92, %89 : vector<8x256xf32>
    %cst_45 = arith.constant 3.000000e-01 : f32
    %94 = vector.broadcast %cst_45 : f32 to vector<8x256xf32>
    %95 = arith.cmpf ogt, %93, %94 : vector<8x256xf32>
    %96 = arith.extui %95 : vector<8x256xi1> to vector<8x256xi32>
    %97 = arith.sitofp %96 : vector<8x256xi32> to vector<8x256xf32>
    %98 = arith.truncf %97 : vector<8x256xf32> to vector<8x256xbf16>
    %c0_46 = arith.constant 0 : index
    %c3 = arith.constant 3 : index
    %c0_47 = arith.constant 0 : index
    %c0_48 = arith.constant 0 : index
    %99 = vector.load %arg4[%c0_46, %c3, %c0_47, %c0_48] : memref<1x8x8x256xbf16, #tpu.memory_space<vmem>>, vector<1x1x8x256xbf16>
    %100 = vector.shape_cast %99 : vector<1x1x8x256xbf16> to vector<8x256xbf16>
    %101 = vector.shape_cast %98 : vector<8x256xbf16> to vector<1x1x8x256xbf16>
    tpu.vector_store %arg4[%c0_46, %c3, %c0_47, %c0_48], %101 {strides = array<i32>} : memref<1x8x8x256xbf16, #tpu.memory_space<vmem>>, vector<1x1x8x256xbf16>,
    %cst_49 = arith.constant 3.000000e-01 : f32
    %102 = vector.broadcast %cst_49 : f32 to vector<8x256xf32>
    %103 = arith.mulf %102, %93 : vector<8x256xf32>
    %cst_50 = arith.constant 0.000000e+00 : f32
    %104 = vector.broadcast %cst_50 : f32 to vector<8x256xf32>
    %105 = arith.select %95, %104, %103 : vector<8x256xi1>, vector<8x256xf32>
    %c0_51 = arith.constant 0 : index
    %c0_52 = arith.constant 0 : index
    %106 = vector.load %arg5[%c0_51, %c0_52] : memref<8x256xf32, #tpu.memory_space<vmem>>, vector<8x256xf32>
    tpu.vector_store %arg5[%c0_51, %c0_52], %105 {strides = array<i32>} : memref<8x256xf32, #tpu.memory_space<vmem>>, vector<8x256xf32>,
    %c8_i32_53 = arith.constant 8 : i32
    %107 = arith.muli %arg1, %c8_i32_53 : i32
    %c4_i32 = arith.constant 4 : i32
    %108 = arith.addi %107, %c4_i32 : i32
    %109 = arith.index_cast %arg0 : i32 to index
    %110 = arith.index_cast %108 : i32 to index
    %111 = memref.load %arg2[%109, %110] : memref<2x8xf32, #tpu.memory_space<smem>>
    %c0_54 = arith.constant 0 : index
    %c1024 = arith.constant 1024 : index
    %112 = vector.load %arg3[%c0_54, %c1024] : memref<8x2048xbf16, #tpu.memory_space<vmem>>, vector<8x256xbf16>
    %113 = arith.extf %112 : vector<8x256xbf16> to vector<8x256xf32>
    %114 = vector.broadcast %111 : f32 to vector<8x256xf32>
    %115 = arith.mulf %113, %114 : vector<8x256xf32>
    %c0_55 = arith.constant 0 : index
    %c0_56 = arith.constant 0 : index
    %116 = vector.load %arg5[%c0_55, %c0_56] : memref<8x256xf32, #tpu.memory_space<vmem>>, vector<8x256xf32>
    %cst_57 = arith.constant 3.000000e-01 : f32
    %117 = vector.broadcast %cst_57 : f32 to vector<8x256xf32>
    %118 = arith.mulf %116, %117 : vector<8x256xf32>
    %119 = arith.addf %118, %115 : vector<8x256xf32>
    %cst_58 = arith.constant 3.000000e-01 : f32
    %120 = vector.broadcast %cst_58 : f32 to vector<8x256xf32>
    %121 = arith.cmpf ogt, %119, %120 : vector<8x256xf32>
    %122 = arith.extui %121 : vector<8x256xi1> to vector<8x256xi32>
    %123 = arith.sitofp %122 : vector<8x256xi32> to vector<8x256xf32>
    %124 = arith.truncf %123 : vector<8x256xf32> to vector<8x256xbf16>
    %c0_59 = arith.constant 0 : index
    %c4 = arith.constant 4 : index
    %c0_60 = arith.constant 0 : index
    %c0_61 = arith.constant 0 : index
    %125 = vector.load %arg4[%c0_59, %c4, %c0_60, %c0_61] : memref<1x8x8x256xbf16, #tpu.memory_space<vmem>>, vector<1x1x8x256xbf16>
    %126 = vector.shape_cast %125 : vector<1x1x8x256xbf16> to vector<8x256xbf16>
    %127 = vector.shape_cast %124 : vector<8x256xbf16> to vector<1x1x8x256xbf16>
    tpu.vector_store %arg4[%c0_59, %c4, %c0_60, %c0_61], %127 {strides = array<i32>} : memref<1x8x8x256xbf16, #tpu.memory_space<vmem>>, vector<1x1x8x256xbf16>,
    %cst_62 = arith.constant 3.000000e-01 : f32
    %128 = vector.broadcast %cst_62 : f32 to vector<8x256xf32>
    %129 = arith.mulf %128, %119 : vector<8x256xf32>
    %cst_63 = arith.constant 0.000000e+00 : f32
    %130 = vector.broadcast %cst_63 : f32 to vector<8x256xf32>
    %131 = arith.select %121, %130, %129 : vector<8x256xi1>, vector<8x256xf32>
    %c0_64 = arith.constant 0 : index
    %c0_65 = arith.constant 0 : index
    %132 = vector.load %arg5[%c0_64, %c0_65] : memref<8x256xf32, #tpu.memory_space<vmem>>, vector<8x256xf32>
    tpu.vector_store %arg5[%c0_64, %c0_65], %131 {strides = array<i32>} : memref<8x256xf32, #tpu.memory_space<vmem>>, vector<8x256xf32>,
    %c8_i32_66 = arith.constant 8 : i32
    %133 = arith.muli %arg1, %c8_i32_66 : i32
    %c5_i32 = arith.constant 5 : i32
    %134 = arith.addi %133, %c5_i32 : i32
    %135 = arith.index_cast %arg0 : i32 to index
    %136 = arith.index_cast %134 : i32 to index
    %137 = memref.load %arg2[%135, %136] : memref<2x8xf32, #tpu.memory_space<smem>>
    %c0_67 = arith.constant 0 : index
    %c1280 = arith.constant 1280 : index
    %138 = vector.load %arg3[%c0_67, %c1280] : memref<8x2048xbf16, #tpu.memory_space<vmem>>, vector<8x256xbf16>
    %139 = arith.extf %138 : vector<8x256xbf16> to vector<8x256xf32>
    %140 = vector.broadcast %137 : f32 to vector<8x256xf32>
    %141 = arith.mulf %139, %140 : vector<8x256xf32>
    %c0_68 = arith.constant 0 : index
    %c0_69 = arith.constant 0 : index
    %142 = vector.load %arg5[%c0_68, %c0_69] : memref<8x256xf32, #tpu.memory_space<vmem>>, vector<8x256xf32>
    %cst_70 = arith.constant 3.000000e-01 : f32
    %143 = vector.broadcast %cst_70 : f32 to vector<8x256xf32>
    %144 = arith.mulf %142, %143 : vector<8x256xf32>
    %145 = arith.addf %144, %141 : vector<8x256xf32>
    %cst_71 = arith.constant 3.000000e-01 : f32
    %146 = vector.broadcast %cst_71 : f32 to vector<8x256xf32>
    %147 = arith.cmpf ogt, %145, %146 : vector<8x256xf32>
    %148 = arith.extui %147 : vector<8x256xi1> to vector<8x256xi32>
    %149 = arith.sitofp %148 : vector<8x256xi32> to vector<8x256xf32>
    %150 = arith.truncf %149 : vector<8x256xf32> to vector<8x256xbf16>
    %c0_72 = arith.constant 0 : index
    %c5 = arith.constant 5 : index
    %c0_73 = arith.constant 0 : index
    %c0_74 = arith.constant 0 : index
    %151 = vector.load %arg4[%c0_72, %c5, %c0_73, %c0_74] : memref<1x8x8x256xbf16, #tpu.memory_space<vmem>>, vector<1x1x8x256xbf16>
    %152 = vector.shape_cast %151 : vector<1x1x8x256xbf16> to vector<8x256xbf16>
    %153 = vector.shape_cast %150 : vector<8x256xbf16> to vector<1x1x8x256xbf16>
    tpu.vector_store %arg4[%c0_72, %c5, %c0_73, %c0_74], %153 {strides = array<i32>} : memref<1x8x8x256xbf16, #tpu.memory_space<vmem>>, vector<1x1x8x256xbf16>,
    %cst_75 = arith.constant 3.000000e-01 : f32
    %154 = vector.broadcast %cst_75 : f32 to vector<8x256xf32>
    %155 = arith.mulf %154, %145 : vector<8x256xf32>
    %cst_76 = arith.constant 0.000000e+00 : f32
    %156 = vector.broadcast %cst_76 : f32 to vector<8x256xf32>
    %157 = arith.select %147, %156, %155 : vector<8x256xi1>, vector<8x256xf32>
    %c0_77 = arith.constant 0 : index
    %c0_78 = arith.constant 0 : index
    %158 = vector.load %arg5[%c0_77, %c0_78] : memref<8x256xf32, #tpu.memory_space<vmem>>, vector<8x256xf32>
    tpu.vector_store %arg5[%c0_77, %c0_78], %157 {strides = array<i32>} : memref<8x256xf32, #tpu.memory_space<vmem>>, vector<8x256xf32>,
    %c8_i32_79 = arith.constant 8 : i32
    %159 = arith.muli %arg1, %c8_i32_79 : i32
    %c6_i32 = arith.constant 6 : i32
    %160 = arith.addi %159, %c6_i32 : i32
    %161 = arith.index_cast %arg0 : i32 to index
    %162 = arith.index_cast %160 : i32 to index
    %163 = memref.load %arg2[%161, %162] : memref<2x8xf32, #tpu.memory_space<smem>>
    %c0_80 = arith.constant 0 : index
    %c1536 = arith.constant 1536 : index
    %164 = vector.load %arg3[%c0_80, %c1536] : memref<8x2048xbf16, #tpu.memory_space<vmem>>, vector<8x256xbf16>
    %165 = arith.extf %164 : vector<8x256xbf16> to vector<8x256xf32>
    %166 = vector.broadcast %163 : f32 to vector<8x256xf32>
    %167 = arith.mulf %165, %166 : vector<8x256xf32>
    %c0_81 = arith.constant 0 : index
    %c0_82 = arith.constant 0 : index
    %168 = vector.load %arg5[%c0_81, %c0_82] : memref<8x256xf32, #tpu.memory_space<vmem>>, vector<8x256xf32>
    %cst_83 = arith.constant 3.000000e-01 : f32
    %169 = vector.broadcast %cst_83 : f32 to vector<8x256xf32>
    %170 = arith.mulf %168, %169 : vector<8x256xf32>
    %171 = arith.addf %170, %167 : vector<8x256xf32>
    %cst_84 = arith.constant 3.000000e-01 : f32
    %172 = vector.broadcast %cst_84 : f32 to vector<8x256xf32>
    %173 = arith.cmpf ogt, %171, %172 : vector<8x256xf32>
    %174 = arith.extui %173 : vector<8x256xi1> to vector<8x256xi32>
    %175 = arith.sitofp %174 : vector<8x256xi32> to vector<8x256xf32>
    %176 = arith.truncf %175 : vector<8x256xf32> to vector<8x256xbf16>
    %c0_85 = arith.constant 0 : index
    %c6 = arith.constant 6 : index
    %c0_86 = arith.constant 0 : index
    %c0_87 = arith.constant 0 : index
    %177 = vector.load %arg4[%c0_85, %c6, %c0_86, %c0_87] : memref<1x8x8x256xbf16, #tpu.memory_space<vmem>>, vector<1x1x8x256xbf16>
    %178 = vector.shape_cast %177 : vector<1x1x8x256xbf16> to vector<8x256xbf16>
    %179 = vector.shape_cast %176 : vector<8x256xbf16> to vector<1x1x8x256xbf16>
    tpu.vector_store %arg4[%c0_85, %c6, %c0_86, %c0_87], %179 {strides = array<i32>} : memref<1x8x8x256xbf16, #tpu.memory_space<vmem>>, vector<1x1x8x256xbf16>,
    %cst_88 = arith.constant 3.000000e-01 : f32
    %180 = vector.broadcast %cst_88 : f32 to vector<8x256xf32>
    %181 = arith.mulf %180, %171 : vector<8x256xf32>
    %cst_89 = arith.constant 0.000000e+00 : f32
    %182 = vector.broadcast %cst_89 : f32 to vector<8x256xf32>
    %183 = arith.select %173, %182, %181 : vector<8x256xi1>, vector<8x256xf32>
    %c0_90 = arith.constant 0 : index
    %c0_91 = arith.constant 0 : index
    %184 = vector.load %arg5[%c0_90, %c0_91] : memref<8x256xf32, #tpu.memory_space<vmem>>, vector<8x256xf32>
    tpu.vector_store %arg5[%c0_90, %c0_91], %183 {strides = array<i32>} : memref<8x256xf32, #tpu.memory_space<vmem>>, vector<8x256xf32>,
    %c8_i32_92 = arith.constant 8 : i32
    %185 = arith.muli %arg1, %c8_i32_92 : i32
    %c7_i32 = arith.constant 7 : i32
    %186 = arith.addi %185, %c7_i32 : i32
    %187 = arith.index_cast %arg0 : i32 to index
    %188 = arith.index_cast %186 : i32 to index
    %189 = memref.load %arg2[%187, %188] : memref<2x8xf32, #tpu.memory_space<smem>>
    %c0_93 = arith.constant 0 : index
    %c1792 = arith.constant 1792 : index
    %190 = vector.load %arg3[%c0_93, %c1792] : memref<8x2048xbf16, #tpu.memory_space<vmem>>, vector<8x256xbf16>
    %191 = arith.extf %190 : vector<8x256xbf16> to vector<8x256xf32>
    %192 = vector.broadcast %189 : f32 to vector<8x256xf32>
    %193 = arith.mulf %191, %192 : vector<8x256xf32>
    %c0_94 = arith.constant 0 : index
    %c0_95 = arith.constant 0 : index
    %194 = vector.load %arg5[%c0_94, %c0_95] : memref<8x256xf32, #tpu.memory_space<vmem>>, vector<8x256xf32>
    %cst_96 = arith.constant 3.000000e-01 : f32
    %195 = vector.broadcast %cst_96 : f32 to vector<8x256xf32>
    %196 = arith.mulf %194, %195 : vector<8x256xf32>
    %197 = arith.addf %196, %193 : vector<8x256xf32>
    %cst_97 = arith.constant 3.000000e-01 : f32
    %198 = vector.broadcast %cst_97 : f32 to vector<8x256xf32>
    %199 = arith.cmpf ogt, %197, %198 : vector<8x256xf32>
    %200 = arith.extui %199 : vector<8x256xi1> to vector<8x256xi32>
    %201 = arith.sitofp %200 : vector<8x256xi32> to vector<8x256xf32>
    %202 = arith.truncf %201 : vector<8x256xf32> to vector<8x256xbf16>
    %c0_98 = arith.constant 0 : index
    %c7 = arith.constant 7 : index
    %c0_99 = arith.constant 0 : index
    %c0_100 = arith.constant 0 : index
    %203 = vector.load %arg4[%c0_98, %c7, %c0_99, %c0_100] : memref<1x8x8x256xbf16, #tpu.memory_space<vmem>>, vector<1x1x8x256xbf16>
    %204 = vector.shape_cast %203 : vector<1x1x8x256xbf16> to vector<8x256xbf16>
    %205 = vector.shape_cast %202 : vector<8x256xbf16> to vector<1x1x8x256xbf16>
    tpu.vector_store %arg4[%c0_98, %c7, %c0_99, %c0_100], %205 {strides = array<i32>} : memref<1x8x8x256xbf16, #tpu.memory_space<vmem>>, vector<1x1x8x256xbf16>,
    %cst_101 = arith.constant 3.000000e-01 : f32
    %206 = vector.broadcast %cst_101 : f32 to vector<8x256xf32>
    %207 = arith.mulf %206, %197 : vector<8x256xf32>
    %cst_102 = arith.constant 0.000000e+00 : f32
    %208 = vector.broadcast %cst_102 : f32 to vector<8x256xf32>
    %209 = arith.select %199, %208, %207 : vector<8x256xi1>, vector<8x256xf32>
    %c0_103 = arith.constant 0 : index
    %c0_104 = arith.constant 0 : index
    %210 = vector.load %arg5[%c0_103, %c0_104] : memref<8x256xf32, #tpu.memory_space<vmem>>, vector<8x256xf32>
    tpu.vector_store %arg5[%c0_103, %c0_104], %209 {strides = array<i32>} : memref<8x256xf32, #tpu.memory_space<vmem>>, vector<8x256xf32>,
    return
  }
  func.func @transform_0(%arg0: i32, %arg1: i32) -> (i32, i32) {
    %c0_i32 = arith.constant 0 : i32
    %c0_i32_0 = arith.constant 0 : i32
    %c0_i32_1 = arith.constant 0 : i32
    return %c0_i32, %c0_i32_0 : i32, i32
  }
  func.func @transform_1(%arg0: i32, %arg1: i32) -> (i32, i32) {
    %c1_i32 = arith.constant 1 : i32
    %0 = arith.muli %arg0, %c1_i32 : i32
    %1 = arith.addi %0, %arg1 : i32
    %c0_i32 = arith.constant 0 : i32
    %c0_i32_0 = arith.constant 0 : i32
    return %c0_i32, %1 : i32, i32
  }
  func.func @transform_2(%arg0: i32, %arg1: i32) -> (i32, i32, i32, i32) {
    %c0_i32 = arith.constant 0 : i32
    %c0_i32_0 = arith.constant 0 : i32
    %c0_i32_1 = arith.constant 0 : i32
    return %arg0, %arg1, %c0_i32, %c0_i32_0 : i32, i32, i32, i32
  }
}

</mosaic_0001>

<bundles_post_ra>
// kernel: squeeze.2
= control target key start
LH: loop header
LB: loop body
LE: loop exit
PB: predicated region body
PF: predicated region fallthrough
CT: control target
= control target key end

     0   :  { %vm18_vm0 = vcmask 64512   ;;  %s51_s0 = inlined_call_operand.vmem [shape: bf16[16], index: 0, kind: input, shape index: {}]   ;;  %s52_s1 = inlined_call_operand.vmem [shape: bf16[2,8], index: 1, kind: output, shape index: {}]  }
   0x1   :  { %v13_v0 = vld [vmem:[%s51_s0] sm:$0x1]  ;;  %s34_s0 = smov 120  }
   0x2   :  { %v14_v1 = vunpack.c.l.bf16 %v13_v0 }
   0x4   :  { %16 = vst [vmem:[#allocation1] sm:$0x3] %v14_v1 }
   0xb   :  { %v20_v2 = vld [vmem:[#allocation1] sm:$0x1]  }
   0xc   :  { %v17_v3 = vld [vmem:[#allocation1] sm:$0x1]   ;;  %21 = vrot.lane.b32.xlu0 %v20_v2, %s34_s0 }
   0xd   :  { %19 = vst.msk [vmem:[#allocation0] sm:$0x1] %vm18_vm0, %v17_v3  }
  0x7e   :  { %v22_v4 = vpop.permute.xlu0 %21  }
  0x7f   :  { %25 = vst.msk [vmem:[#allocation0 + $0x1] sm:$0x1] %vm18_vm0, %v22_v4  }
  0x86   :  { %v28_v5 = vld [vmem:[#allocation0] sm:$0x3] }
  0x87   :  { %v29_v6 = vpack.c.bf16 0.0, %v28_v5 }
  0x89   :  { %32 = vst [vmem:[%s52_s1] sm:$0x1] %v29_v6 }

// kernel: conv_att_lif_forward.3
= control target key start
LH: loop header
LB: loop body
LE: loop exit
PB: predicated region body
PF: predicated region fallthrough
CT: control target
= control target key end

     0   :  { %7 = vsyncpa [#allocation4], 0  ;;  %s725_s9 = smov 0   ;;  %s727_s10 = smov 0   ;;  %s826_s0 = inlined_call_operand.vmem [shape: f32[2,8], index: 0, kind: input, shape index: {}]   ;;  %s827_s1 = inlined_call_operand.vmem [shape: bf16[8,4096], index: 1, kind: input, shape index: {}]   ;;  %s828_s2 = inlined_call_operand.vmem [shape: bf16[2,8,8,256], index: 2, kind: output, shape index: {}]  }
   0x1   :  { %s729_s11 = smov 0  }
   0x2 LB: > { %s584_s12 = sadd.s32 4294967295, %s706_s11   ;;  %s25_s13 = sadd.s32 1, %s702_s10  ;;  %s706_s11 = sphi %s729_s11, %s13_s11   ;;  %s702_s10 = sphi %s727_s10, %s830_s10   ;;  %s698_s9 = sphi %s725_s9, %s829_s9  }
   0x3   : > { %p27_p0 = scmp.ge.s32.totalorder %s25_s13, 2  ;;  %p586_p1 = scmp.ge.s32.totalorder %s706_s11, 1 }
   0x4   : > { %p107_p2 = scmp.lt.s32.totalorder %s706_s11, 3  ;;  %p637_p4 = scmp.eq.s32.totalorder %s584_s12, 0 }
   0x5   : > { %s832_s13 = smov (%p27_p0, %s25_s13), 0  ;;  %s119_s16 = sshll.u32 %s826_s0, 4  ;;  %s120_s16 = int_to_ptr.vmem [resolvable:$true] %s119_s16 }
   0x6   : > { %p108_p3 = pnand %p586_p1, %p107_p2  ;;  %s708_s17 = smov [#allocation3]  }
   0x8   : > { %p633_p5 = pneg %p108_p3  ;;  %143 = sbr.rel (%p108_p3) target bundleno = 82 (0x52), region = 28 }
   0xa   : > { %p634_p6 = pnand %p637_p4, %p633_p5 }
   0xc   : > { %636 = dma.vmem_to_smem (!%p634_p6), %s120_s16, 32, %s708_s17, [#allocation4]  }
   0xd   : > { %693 = dma.done.wait (%p637_p4), [#allocation4], 32  }
   0xe   : > { %695 = vsyncadd (%p637_p4), [#allocation4], 4294967264 }
   0xf   : > { %150 = sfence }
  0x10   : > { %s591_s18 = sshll.u32 %s698_s9, 4  ;;  %p182_p7 = scmp.lt.s32.totalorder %s698_s9, 1  ;;  %v709_v11 = vmov 0.0  }
  0x11   : > { %p175_p8 = scmp.lt.s32.totalorder %s591_s18, 31  ;;  %s747_s19 = sshll.u32 %s698_s9, 7 }
  0x12   : > { %s834_s9 = smov (!%p182_p7, %s698_s9), 1  ;;  %s206_s20 = sld [smem:[#allocation3 + %s747_s19]] }
  0x13   : > { %s836_s18 = smov (!%p175_p8, %s591_s18), 31  ;;  %s240_s25 = sadd.s32 1, %s747_s19 }
  0x14   : > { %s592_s21 = sshll.u32 %s836_s18, 2  ;;  %s241_s26 = sld [smem:[#allocation3 + %s240_s25]] }
  0x15   : > { %s753_s24 = scalar_lea.vmem %s827_s1, %s592_s21  ;;  %s276_s27 = sadd.s32 2, %s747_s19 }
  0x16   : > { %v207_v0 = vld [vmem:[%s753_s24] sm:$0xff]  ;;  %v242_v1 = vld [vmem:[%s753_s24 + $0x8] sm:$0xff]  ;;  %s759_s28 = sld [smem:[#allocation3 + %s276_s27]]  ;;  %s628_s29 = sshll.u32 %s834_s9, 6  ;;  %v278_v16 = vld [vmem:[%s753_s24 + $0x10] sm:$0xff] }
  0x17   : > { %v208_v2 = vunpack.c.l.bf16 %v207_v0  ;;  %v209_v3 = vunpack.c.h.bf16 %v207_v0  ;;  %v243_v5 = vunpack.c.l.bf16 %v242_v1  ;;  %v244_v8 = vunpack.c.h.bf16 %v242_v1  ;;  %s764_s4 = scalar_lea.vmem %s828_s2, %s628_s29  ;;  %s312_s5 = sadd.s32 3, %s747_s19  ;;  %v314_v29 = vld [vmem:[%s753_s24 + $0x18] sm:$0xff]  ;;  %v350_v46 = vld [vmem:[%s753_s24 + $0x20] sm:$0xff]  ;;  %v386_v63 = vld [vmem:[%s753_s24 + $0x28] sm:$0xff] }
  0x18   : > { %v210_v4 = vstv %s206_s20  ;;  %v279_v23 = vunpack.c.l.bf16 %v278_v16  ;;  %s771_s6 = sld [smem:[#allocation3 + %s312_s5]]  ;;  %v280_v25 = vunpack.c.h.bf16 %v278_v16  ;;  %s348_s7 = sadd.s32 4, %s747_s19  ;;  %v315_v40 = vunpack.c.l.bf16 %v314_v29 }
  0x19   : > { %v211_v6 = vmul.f32 %v210_v4, %v208_v2  ;;  %v212_v7 = vmul.f32 %v210_v4, %v209_v3  ;;  %s778_s8 = sld [smem:[#allocation3 + %s348_s7]]  ;;  %v316_v42 = vunpack.c.h.bf16 %v314_v29  ;;  %s384_s9 = sadd.s32 5, %s747_s19  ;;  %v351_v57 = vunpack.c.l.bf16 %v350_v46 }
  0x1a   : > { %v245_v10 = vstv %s241_s26  ;;  %s786_s12 = sld [smem:[#allocation3 + %s384_s9]]  ;;  %v352_v59 = vunpack.c.h.bf16 %v350_v46  ;;  %s420_s14 = sadd.s32 6, %s747_s19 }
  0x1b   : > { %vm219_vm0 = vcmp.gt.f32.partialorder %v211_v6, 0.3  ;;  %vm220_vm1 = vcmp.gt.f32.partialorder %v212_v7, 0.3  ;;  %v227_v9 = vmul.f32 0.3, %v211_v6  ;;  %v246_v15 = vmul.f32 %v245_v10, %v243_v5 }
  0x1c   : > { %v596_v12 = vsel %vm219_vm0, 1.0, %v709_v11  ;;  %v597_v13 = vsel %vm220_vm1, 1.0, %v709_v11  ;;  %v228_v14 = vmul.f32 0.3, %v212_v7  ;;  %v247_v19 = vmul.f32 %v245_v10, %v244_v8  ;;  %s794_s15 = sld [smem:[#allocation3 + %s420_s14]]  ;;  %s456_s16 = sadd.s32 7, %s747_s19 }
  0x1d   : > { %v225_v17 = vpack.c.bf16 %v597_v13, %v596_v12  ;;  %v229_v18 = vsel %vm219_vm0, 0.0, %v227_v9  ;;  %v281_v26 = vstv %s759_s28  ;;  %v387_v10 = vunpack.c.l.bf16 %v386_v63  ;;  %s802_s17 = sld [smem:[#allocation3 + %s456_s16]] }
  0x1e   : > { %v230_v20 = vsel %vm220_vm1, 0.0, %v228_v14  ;;  %v250_v21 = vmul.f32 0.3, %v229_v18  ;;  %v282_v32 = vmul.f32 %v281_v26, %v279_v23  ;;  %v283_v35 = vmul.f32 %v281_v26, %v280_v25 }
  0x1f   : > { %226 = vst [vmem:[%s764_s4] sm:$0xff] %v225_v17  ;;  %v251_v22 = vmul.f32 0.3, %v230_v20  ;;  %v317_v43 = vstv %s771_s6  ;;  %v353_v60 = vstv %s778_s8  ;;  %v388_v13 = vunpack.c.h.bf16 %v386_v63  ;;  %v422_v20 = vld [vmem:[%s753_s24 + $0x30] sm:$0xff] }
  0x20   : > { %v252_v24 = vadd.f32 %v250_v21, %v246_v15  ;;  %v318_v49 = vmul.f32 %v317_v43, %v315_v40  ;;  %v319_v52 = vmul.f32 %v317_v43, %v316_v42  ;;  %v354_v2 = vmul.f32 %v353_v60, %v351_v57 }
  0x21   : > { %v253_v27 = vadd.f32 %v251_v22, %v247_v19  ;;  %v355_v5 = vmul.f32 %v353_v60, %v352_v59  ;;  %v389_v14 = vstv %s786_s12 }
  0x22   : > { %vm254_vm2 = vcmp.gt.f32.partialorder %v252_v24, 0.3  ;;  %v263_v28 = vmul.f32 0.3, %v252_v24  ;;  %v390_v19 = vmul.f32 %v389_v14, %v387_v10  ;;  %v391_v23 = vmul.f32 %v389_v14, %v388_v13 }
  0x23   : > { %vm255_vm3 = vcmp.gt.f32.partialorder %v253_v27, 0.3  ;;  %v599_v30 = vsel %vm254_vm2, 1.0, %v709_v11  ;;  %v264_v31 = vmul.f32 0.3, %v253_v27 }
  0x24   : > { %v600_v33 = vsel %vm255_vm3, 1.0, %v709_v11  ;;  %v265_v34 = vsel %vm254_vm2, 0.0, %v263_v28  ;;  %v423_v28 = vunpack.c.l.bf16 %v422_v20 }
  0x25   : > { %v260_v36 = vpack.c.bf16 %v600_v33, %v599_v30  ;;  %v266_v37 = vsel %vm255_vm3, 0.0, %v264_v31  ;;  %v286_v38 = vmul.f32 0.3, %v265_v34  ;;  %v424_v30 = vunpack.c.h.bf16 %v422_v20 }
  0x26   : > { %v287_v39 = vmul.f32 0.3, %v266_v37  ;;  %v425_v31 = vstv %s794_s15  ;;  %v458_v37 = vld [vmem:[%s753_s24 + $0x38] sm:$0xff] }
  0x27   : > { %601 = vst [vmem:[%s764_s4 + $0x8] sm:$0xff] %v260_v36  ;;  %v288_v41 = vadd.f32 %v286_v38, %v282_v32  ;;  %v426_v36 = vmul.f32 %v425_v31, %v423_v28  ;;  %v427_v40 = vmul.f32 %v425_v31, %v424_v30 }
  0x28   : > { %v289_v44 = vadd.f32 %v287_v39, %v283_v35 }
  0x29   : > { %vm290_vm4 = vcmp.gt.f32.partialorder %v288_v41, 0.3  ;;  %v299_v45 = vmul.f32 0.3, %v288_v41 }
  0x2a   : > { %vm291_vm5 = vcmp.gt.f32.partialorder %v289_v44, 0.3  ;;  %v603_v47 = vsel %vm290_vm4, 1.0, %v709_v11  ;;  %v300_v48 = vmul.f32 0.3, %v289_v44 }
  0x2b   : > { %v604_v50 = vsel %vm291_vm5, 1.0, %v709_v11  ;;  %v301_v51 = vsel %vm290_vm4, 0.0, %v299_v45  ;;  %v459_v45 = vunpack.c.l.bf16 %v458_v37 }
  0x2c   : > { %v296_v53 = vpack.c.bf16 %v604_v50, %v603_v47  ;;  %v302_v54 = vsel %vm291_vm5, 0.0, %v300_v48  ;;  %v322_v55 = vmul.f32 0.3, %v301_v51  ;;  %v460_v47 = vunpack.c.h.bf16 %v458_v37 }
  0x2d   : > { %v323_v56 = vmul.f32 0.3, %v302_v54  ;;  %v461_v48 = vstv %s802_s17 }
  0x2e   : > { %605 = vst [vmem:[%s764_s4 + $0x10] sm:$0xff] %v296_v53  ;;  %v324_v58 = vadd.f32 %v322_v55, %v318_v49  ;;  %v462_v53 = vmul.f32 %v461_v48, %v459_v45 }
  0x2f   : > { %v325_v61 = vadd.f32 %v323_v56, %v319_v52  ;;  %v463_v56 = vmul.f32 %v461_v48, %v460_v47 }
  0x30   : > { %vm326_vm6 = vcmp.gt.f32.partialorder %v324_v58, 0.3  ;;  %v335_v62 = vmul.f32 0.3, %v324_v58 }
  0x31   : > { %vm327_vm7 = vcmp.gt.f32.partialorder %v325_v61, 0.3  ;;  %v607_v0 = vsel %vm326_vm6, 1.0, %v709_v11  ;;  %v336_v1 = vmul.f32 0.3, %v325_v61 }
  0x32   : > { %v608_v3 = vsel %vm327_vm7, 1.0, %v709_v11  ;;  %v337_v4 = vsel %vm326_vm6, 0.0, %v335_v62 }
  0x33   : > { %v332_v6 = vpack.c.bf16 %v608_v3, %v607_v0  ;;  %v338_v7 = vsel %vm327_vm7, 0.0, %v336_v1  ;;  %v358_v8 = vmul.f32 0.3, %v337_v4 }
  0x34   : > { %v359_v9 = vmul.f32 0.3, %v338_v7 }
  0x35   : > { %609 = vst [vmem:[%s764_s4 + $0x18] sm:$0xff] %v332_v6  ;;  %v360_v12 = vadd.f32 %v358_v8, %v354_v2 }
  0x36   : > { %v361_v15 = vadd.f32 %v359_v9, %v355_v5 }
  0x37   : > { %vm362_vm8 = vcmp.gt.f32.partialorder %v360_v12, 0.3  ;;  %v371_v16 = vmul.f32 0.3, %v360_v12 }
  0x38   : > { %vm363_vm9 = vcmp.gt.f32.partialorder %v361_v15, 0.3  ;;  %v611_v17 = vsel %vm362_vm8, 1.0, %v709_v11  ;;  %v372_v18 = vmul.f32 0.3, %v361_v15 }
  0x39   : > { %v612_v21 = vsel %vm363_vm9, 1.0, %v709_v11  ;;  %v373_v22 = vsel %vm362_vm8, 0.0, %v371_v16 }
  0x3a   : > { %v368_v24 = vpack.c.bf16 %v612_v21, %v611_v17  ;;  %v374_v25 = vsel %vm363_vm9, 0.0, %v372_v18  ;;  %v394_v26 = vmul.f32 0.3, %v373_v22 }
  0x3b   : > { %v395_v27 = vmul.f32 0.3, %v374_v25 }
  0x3c   : > { %613 = vst [vmem:[%s764_s4 + $0x20] sm:$0xff] %v368_v24  ;;  %v396_v29 = vadd.f32 %v394_v26, %v390_v19 }
  0x3d   : > { %v397_v32 = vadd.f32 %v395_v27, %v391_v23 }
  0x3e   : > { %vm398_vm10 = vcmp.gt.f32.partialorder %v396_v29, 0.3  ;;  %v407_v33 = vmul.f32 0.3, %v396_v29 }
  0x3f   : > { %vm399_vm11 = vcmp.gt.f32.partialorder %v397_v32, 0.3  ;;  %v615_v34 = vsel %vm398_vm10, 1.0, %v709_v11  ;;  %v408_v35 = vmul.f32 0.3, %v397_v32 }
  0x40   : > { %v616_v38 = vsel %vm399_vm11, 1.0, %v709_v11  ;;  %v409_v39 = vsel %vm398_vm10, 0.0, %v407_v33 }
  0x41   : > { %v404_v41 = vpack.c.bf16 %v616_v38, %v615_v34  ;;  %v410_v42 = vsel %vm399_vm11, 0.0, %v408_v35  ;;  %v430_v43 = vmul.f32 0.3, %v409_v39 }
  0x42   : > { %v431_v44 = vmul.f32 0.3, %v410_v42 }
  0x43   : > { %617 = vst [vmem:[%s764_s4 + $0x28] sm:$0xff] %v404_v41  ;;  %v432_v46 = vadd.f32 %v430_v43, %v426_v36 }
  0x44   : > { %v433_v49 = vadd.f32 %v431_v44, %v427_v40 }
  0x45   : > { %vm434_vm12 = vcmp.gt.f32.partialorder %v432_v46, 0.3  ;;  %v443_v50 = vmul.f32 0.3, %v432_v46 }
  0x46   : > { %vm435_vm13 = vcmp.gt.f32.partialorder %v433_v49, 0.3  ;;  %v619_v51 = vsel %vm434_vm12, 1.0, %v709_v11  ;;  %v444_v52 = vmul.f32 0.3, %v433_v49 }
  0x47   : > { %v620_v54 = vsel %vm435_vm13, 1.0, %v709_v11  ;;  %v445_v55 = vsel %vm434_vm12, 0.0, %v443_v50 }
  0x48   : > { %v440_v57 = vpack.c.bf16 %v620_v54, %v619_v51  ;;  %v446_v58 = vsel %vm435_vm13, 0.0, %v444_v52  ;;  %v466_v59 = vmul.f32 0.3, %v445_v55 }
  0x49   : > { %v467_v60 = vmul.f32 0.3, %v446_v58 }
  0x4a   : > { %621 = vst [vmem:[%s764_s4 + $0x30] sm:$0xff] %v440_v57  ;;  %v468_v61 = vadd.f32 %v466_v59, %v462_v53 }
  0x4b   : > { %v469_v62 = vadd.f32 %v467_v60, %v463_v56 }
  0x4c   : > { %vm470_vm14 = vcmp.gt.f32.partialorder %v468_v61, 0.3 }
  0x4d   : > { %vm471_vm15 = vcmp.gt.f32.partialorder %v469_v62, 0.3  ;;  %v623_v63 = vsel %vm470_vm14, 1.0, %v709_v11 }
  0x4e   : > { %v624_v0 = vsel %vm471_vm15, 1.0, %v709_v11 }
  0x4f   : > { %v476_v1 = vpack.c.bf16 %v624_v0, %v623_v63 }
  0x51   : > { %625 = vst [vmem:[%s764_s4 + $0x38] sm:$0xff] %v476_v1 }
  0x52 PF: > { %s13_s11 = sadd.s32 1, %s706_s11   ;;  %s829_s9 = smov %s702_s10 }
  0x53   : > { %p10_p9 = scmp.ge.s32.totalorder %s13_s11, 4   ;;  %s830_s10 = smov %s832_s13 }
  0x55   :  { %12 = sbr.rel (!%p10_p9) target bundleno = 2 (0x2), region = 74 }
  0x5a   :  { %517 = vsyncpa [#allocation4], 1 }
  0x5b   :  { %519 = vsyncpa [#allocation4 + $0x1], 1 }

// kernel: conv_att_lif_forward.2
= control target key start
LH: loop header
LB: loop body
LE: loop exit
PB: predicated region body
PF: predicated region fallthrough
CT: control target
= control target key end

     0   :  { %s4014_s21 = smov 0   ;;  %s5281_s0 = inlined_call_operand.vmem [shape: f32[16,4,290], index: 0, kind: input, shape index: {}]   ;;  %s5282_s1 = inlined_call_operand.vmem [shape: f32[3,256], index: 1, kind: input, shape index: {}]   ;;  %s5283_s2 = inlined_call_operand.vmem [shape: bf16[8,36], index: 2, kind: input, shape index: {}]   ;;  %s5284_s3 = inlined_call_operand.vmem [shape: f32[8,1], index: 3, kind: input, shape index: {}]   ;;  %s5285_s4 = inlined_call_operand.vmem [shape: bf16[8,4096], index: 4, kind: output, shape index: {0}]   ;;  %s5286_s5 = inlined_call_operand.vmem [shape: f32[16,128], index: 5, kind: output, shape index: {1}]   ;;  %s5287_s6 = inlined_call_operand.vmem [shape: f32[16,128], index: 6, kind: output, shape index: {2}]  }
   0x1 LB: > { %s4020_s22 = sadd.s32 4294967295, %s3963_s21   ;;  %p3605_p0 = scmp.ge.s32.totalorder %s3963_s21, 1  ;;  %s3963_s21 = sphi %s4014_s21, %s17_s21  }
   0x2   : > { %p219_p1 = scmp.lt.s32.totalorder %s3963_s21, 3 }
   0x4   : > { %p220_p2 = pnand %p3605_p0, %p219_p1 }
   0x5   : > { %s3965_s9 = smov (!%p220_p2), 2   ;;  %s3966_s10 = smov (!%p220_p2), 18  }
   0x6   : > { %223 = sbr.rel (%p220_p2) target bundleno = 1140 (0x474), region = 36  ;;  %s3967_s17 = smov (!%p220_p2), 34  }
   0x7   : > { %s3968_s20 = smov (!%p220_p2), 16   ;;  %s3969_s23 = smov (!%p220_p2), 32  }
   0x8   : > { %s3606_s8 = sshll.u32 (!%p220_p2), %s4020_s22, 3  ;;  %s3970_s25 = smov (!%p220_p2), 127  }
   0x9   : > { %p259_p3 = scmp.lt.s32.totalorder (!%p220_p2), %s3606_s8, 15  ;;  %s3974_s27 = smov (!%p220_p2), 110  }
   0xa   : > { %s3975_s30 = smov (!%p220_p2), 96   ;;  %s3977_s11 = smov (!%p220_p2), 94  }
   0xb   : > { %v3612_v0 = vld [vmem:[%s5282_s1 + $0x2] ss:$4 sm:$0x3]  ;;  %v375_v3 = vld [vmem:[%s5282_s1] ss:$4 sm:$0x3] }
   0xc   : > { %v334_v1 = vperm.slane %v3612_v0, 0  ;;  %v335_v2 = vperm.slane %v3612_v0, 1  ;;  %vm286_vm0 = vcmask 1043456   ;;  %v378_v4 = vperm.slane %v375_v3, 1  ;;  %s5289_s8 = smov (!%p259_p3, %s3606_s8), 15  ;;  %p271_p5 = scmp.lt.s32.totalorder %s4020_s22, 1 }
   0xd   : > { %v3613_v5 = vld [vmem:[%s5282_s1 + $0x2] ss:$4 sm:$0x3]  ;;  %v493_v9 = vld [vmem:[%s5282_s1] ss:$4 sm:$0x3] }
   0xe   : > { %v336_v6 = vrot.slane %v335_v2, 4  ;;  %v450_v7 = vperm.slane %v3613_v5, 0  ;;  %v451_v8 = vperm.slane %v3613_v5, 1  ;;  %v496_v12 = vperm.slane %v493_v9, 1  ;;  %s3933_s24 = smul.u32 12, %s5289_s8  ;;  %s3976_s8 = smov 95  }
   0xf   : > { %v3614_v13 = vld [vmem:[%s5282_s1 + $0x2] ss:$4 sm:$0x3]  ;;  %v377_v16 = vperm.slane %v375_v3, 0  ;;  %v379_v17 = vrot.slane %v378_v4, 4  ;;  %v495_v21 = vperm.slane %v493_v9, 0 }
  0x10   : > { %v337_v10 = vsel %vm286_vm0, %v334_v1, %v336_v6  ;;  %v452_v11 = vrot.slane %v451_v8, 4  ;;  %v568_v14 = vperm.slane %v3614_v13, 0  ;;  %v569_v15 = vperm.slane %v3614_v13, 1  ;;  %v697_v20 = vld [vmem:[%s5282_s1] ss:$4 sm:$0x3]  ;;  %s4112_s7 = scalar_lea.vmem %s5281_s0, %s3933_s24 }
  0x11   : > { %338 = vrot.lane.b32.xlu0 %v337_v10, %s3965_s9  ;;  %v497_v22 = vrot.slane %v496_v12, 4  ;;  %v3620_v23 = vld [vmem:[%s5282_s1 + $0x2] ss:$4 sm:$0x3]  ;;  %v380_v27 = vsel %vm286_vm0, %v377_v16, %v379_v17  ;;  %v700_v28 = vperm.slane %v697_v20, 1  ;;  %v699_v34 = vperm.slane %v697_v20, 0 }
  0x12   : > { %v453_v18 = vsel %vm286_vm0, %v450_v7, %v452_v11  ;;  %v570_v19 = vrot.slane %v569_v15, 4  ;;  %v3627_v24 = vld [vmem:[%s5282_s1 + $0x2] ss:$4 sm:$0x3]  ;;  %v659_v26 = vperm.slane %v3620_v23, 1  ;;  %v658_v29 = vperm.slane %v3620_v23, 0 }
  0x13   : > { %454 = vrot.lane.b32.xlu1 %v453_v18, %s3966_s10  ;;  %v498_v31 = vsel %vm286_vm0, %v495_v21, %v497_v22  ;;  %v770_v32 = vperm.slane %v3627_v24, 1  ;;  %v810_v33 = vld [vmem:[%s5282_s1] ss:$4 sm:$0x3]  ;;  %v701_v35 = vrot.slane %v700_v28, 4  ;;  %v769_v39 = vperm.slane %v3627_v24, 0 }
  0x14   : > { %v571_v25 = vsel %vm286_vm0, %v568_v14, %v570_v19  ;;  %v660_v30 = vrot.slane %v659_v26, 4  ;;  %v3634_v37 = vld [vmem:[%s5282_s1 + $0x2] ss:$4 sm:$0x3]  ;;  %v813_v38 = vperm.slane %v810_v33, 1  ;;  %v812_v44 = vperm.slane %v810_v33, 0 }
  0x15   : > { %572 = vrot.lane.b32.xlu2 %v571_v25, %s3967_s17  ;;  %v771_v40 = vrot.slane %v770_v32, 4  ;;  %v3640_v41 = vld [vmem:[%s5282_s1 + $0x2] ss:$4 sm:$0x3]  ;;  %v702_v42 = vsel %vm286_vm0, %v699_v34, %v701_v35  ;;  %v883_v43 = vperm.slane %v3634_v37, 1  ;;  %v882_v49 = vperm.slane %v3634_v37, 0 }
  0x16   : > { %v661_v36 = vsel %vm286_vm0, %v658_v29, %v660_v30  ;;  %v814_v45 = vrot.slane %v813_v38, 4  ;;  %v971_v47 = vperm.slane %v3640_v41, 1  ;;  %v1009_v48 = vld [vmem:[%s5282_s1] ss:$4 sm:$0x3]  ;;  %v970_v54 = vperm.slane %v3640_v41, 0 }
  0x17   : > { %v772_v46 = vsel %vm286_vm0, %v769_v39, %v771_v40  ;;  %v884_v50 = vrot.slane %v883_v43, 4  ;;  %v3647_v52 = vld [vmem:[%s5282_s1 + $0x2] ss:$4 sm:$0x3]  ;;  %v1012_v53 = vperm.slane %v1009_v48, 1  ;;  %v1011_v59 = vperm.slane %v1009_v48, 0 }
  0x18   : > { %v815_v51 = vsel %vm286_vm0, %v812_v44, %v814_v45  ;;  %v972_v55 = vrot.slane %v971_v47, 4  ;;  %v1122_v56 = vld [vmem:[%s5282_s1] ss:$4 sm:$0x3]  ;;  %v1082_v58 = vperm.slane %v3647_v52, 1  ;;  %v1081_v0 = vperm.slane %v3647_v52, 0 }
  0x19   : > { %381 = vrot.lane.b32.xlu0 %v380_v27, %s3968_s20  ;;  %v885_v57 = vsel %vm286_vm0, %v882_v49, %v884_v50  ;;  %v1013_v60 = vrot.slane %v1012_v53, 4  ;;  %v1125_v62 = vperm.slane %v1122_v56, 1  ;;  %v3654_v63 = vld [vmem:[%s5282_s1 + $0x2] ss:$4 sm:$0x3]  ;;  %v1124_v5 = vperm.slane %v1122_v56, 0 }
  0x1a   : > { %v973_v61 = vsel %vm286_vm0, %v970_v54, %v972_v55  ;;  %v1083_v1 = vrot.slane %v1082_v58, 4  ;;  %v3660_v3 = vld [vmem:[%s5282_s1 + $0x2] ss:$4 sm:$0x3]  ;;  %v1195_v4 = vperm.slane %v3654_v63, 1  ;;  %v1194_v11 = vperm.slane %v3654_v63, 0 }
  0x1b   : > { %499 = vrot.lane.b32.xlu1 %v498_v31, %s3969_s23  ;;  %v1014_v2 = vsel %vm286_vm0, %v1011_v59, %v1013_v60  ;;  %v1126_v6 = vrot.slane %v1125_v62, 4  ;;  %v1321_v7 = vld [vmem:[%s5282_s1] ss:$4 sm:$0x3]  ;;  %v1283_v9 = vperm.slane %v3660_v3, 1  ;;  %v1282_v17 = vperm.slane %v3660_v3, 0 }
  0x1c   : > { %v1084_v8 = vsel %vm286_vm0, %v1081_v0, %v1083_v1  ;;  %v1324_v10 = vperm.slane %v1321_v7, 1  ;;  %v1196_v12 = vrot.slane %v1195_v4, 4  ;;  %v3667_v14 = vld [vmem:[%s5282_s1 + $0x2] ss:$4 sm:$0x3]  ;;  %v1323_v19 = vperm.slane %v1321_v7, 0 }
  0x1d   : > { %662 = vrot.lane.b32.xlu2 %v661_v36, %s3965_s9  ;;  %v1127_v13 = vsel %vm286_vm0, %v1124_v5, %v1126_v6  ;;  %v281_v15 = vld [vmem:[%s5282_s1] ss:$4 sm:$0x3]  ;;  %v1284_v18 = vrot.slane %v1283_v9, 4  ;;  %v1394_v22 = vperm.slane %v3667_v14, 1  ;;  %v1393_v31 = vperm.slane %v3667_v14, 0 }
  0x1e   : > { %v284_v16 = vperm.slane %v281_v15, 1  ;;  %v1197_v20 = vsel %vm286_vm0, %v1194_v11, %v1196_v12  ;;  %v1434_v21 = vld [vmem:[%s5282_s1] ss:$4 sm:$0x3]  ;;  %v1325_v23 = vrot.slane %v1324_v10, 4  ;;  %v283_v27 = vperm.slane %v281_v15, 0 }
  0x1f   : > { %v3674_v24 = vld [vmem:[%s5282_s1 + $0x2] ss:$4 sm:$0x3]  ;;  %v299_v25 = vld [vmem:[%s4112_s7 + $0x8] sm:$0xf]  ;;  %v1285_v29 = vsel %vm286_vm0, %v1282_v17, %v1284_v18  ;;  %v1437_v30 = vperm.slane %v1434_v21, 1 }
  0x20   : > { %304 = vst [vmem:[#allocation1 + $0x10] ss:$2 sm:$0xff] %v299_v25  ;;  %v4124_v26 = vld [vmem:[%s4112_s7] sm:$0xff]  ;;  %v285_v28 = vrot.slane %v284_v16, 4  ;;  %v1395_v32 = vrot.slane %v1394_v22, 4  ;;  %v1326_v34 = vsel %vm286_vm0, %v1323_v19, %v1325_v23  ;;  %v1507_v35 = vperm.slane %v3674_v24, 1 }
  0x21   : > { %703 = vrot.lane.b32.xlu0 %v702_v42, %s3968_s20  ;;  %v3680_v36 = vld [vmem:[%s5282_s1 + $0x2] ss:$4 sm:$0x3]  ;;  %v1436_v38 = vperm.slane %v1434_v21, 0  ;;  %v1438_v39 = vrot.slane %v1437_v30, 4  ;;  %v1506_v43 = vperm.slane %v3674_v24, 0 }
  0x22   : > { %v287_v33 = vsel %vm286_vm0, %v283_v27, %v285_v28  ;;  %v1396_v40 = vsel %vm286_vm0, %v1393_v31, %v1395_v32  ;;  %v1633_v41 = vld [vmem:[%s5282_s1] ss:$4 sm:$0x3]  ;;  %v1595_v42 = vperm.slane %v3680_v36, 1  ;;  %v1508_v44 = vrot.slane %v1507_v35, 4 }
  0x23   : > { %773 = vrot.lane.b32.xlu1 %v772_v46, %s3966_s10  ;;  %v289_v37 = vmul.f32 %v287_v33, %v4124_v26  ;;  %v3687_v45 = vld [vmem:[%s5282_s1 + $0x2] ss:$4 sm:$0x3]  ;;  %v1439_v46 = vsel %vm286_vm0, %v1436_v38, %v1438_v39  ;;  %v1636_v47 = vperm.slane %v1633_v41, 1  ;;  %v1594_v48 = vperm.slane %v3680_v36, 0 }
  0x24   : > { %v1596_v49 = vrot.slane %v1595_v42, 4  ;;  %v1509_v50 = vsel %vm286_vm0, %v1506_v43, %v1508_v44  ;;  %v1746_v52 = vld [vmem:[%s5282_s1] ss:$4 sm:$0x3]  ;;  %v1635_v55 = vperm.slane %v1633_v41, 0  ;;  %v1705_v60 = vperm.slane %v3687_v45, 0 }
  0x25   : > { %816 = vrot.lane.b32.xlu2 %v815_v51, %s3969_s23  ;;  %291 = vst [vmem:[#allocation1] ss:$2 sm:$0xff] %v289_v37  ;;  %v1706_v51 = vperm.slane %v3687_v45, 1  ;;  %v1637_v56 = vrot.slane %v1636_v47, 4  ;;  %v1749_v59 = vperm.slane %v1746_v52, 1  ;;  %v1748_v1 = vperm.slane %v1746_v52, 0 }
  0x26   : > { %v3694_v58 = vld [vmem:[%s5282_s1 + $0x2] ss:$4 sm:$0x3]  ;;  %v1945_v5 = vld [vmem:[%s5282_s1] ss:$4 sm:$0x3] }
  0x27   : > { %v3700_v62 = vld [vmem:[%s5282_s1 + $0x2] ss:$4 sm:$0x3]  ;;  %v1638_v63 = vsel %vm286_vm0, %v1635_v55, %v1637_v56  ;;  %v1819_v0 = vperm.slane %v3694_v58, 1  ;;  %v1818_v6 = vperm.slane %v3694_v58, 0  ;;  %v1948_v9 = vperm.slane %v1945_v5, 1 }
  0x28   : > { %v1907_v4 = vperm.slane %v3700_v62, 1  ;;  %v1906_v10 = vperm.slane %v3700_v62, 0  ;;  %v1947_v15 = vperm.slane %v1945_v5, 0  ;;  %v307_v18 = vld.sshfl [vmem:[#allocation1 + $0x10] sm:$0xff pattern:$0x75316420] }
  0x29   : > { %886 = vrot.lane.b32.xlu0 %v885_v57, %s3967_s17  ;;  %v1597_v57 = vsel %vm286_vm0, %v1594_v48, %v1596_v49  ;;  %v1820_v7 = vrot.slane %v1819_v0, 4  ;;  %v1949_v16 = vrot.slane %v1948_v9, 4  ;;  %v3714_v19 = vld [vmem:[%s5282_s1 + $0x2] ss:$4 sm:$0x3]  ;;  %v312_v21 = vpack.c.bf16 %v307_v18, %v307_v18 }
  0x2a   : > { %v1908_v11 = vrot.slane %v1907_v4, 4  ;;  %v3707_v23 = vld [vmem:[%s5282_s1 + $0x2] ss:$4 sm:$0x3]  ;;  %v2131_v24 = vperm.slane %v3714_v19, 1  ;;  %v2130_v30 = vperm.slane %v3714_v19, 0 }
  0x2b   : > { %974 = vrot.lane.b32.xlu1 %v973_v61, %s3965_s9  ;;  %v1707_v61 = vrot.slane %v1706_v51, 4  ;;  %v1821_v12 = vsel %vm286_vm0, %v1818_v6, %v1820_v7  ;;  %v1950_v22 = vsel %vm286_vm0, %v1947_v15, %v1949_v16  ;;  %v3720_v27 = vld [vmem:[%s5282_s1 + $0x2] ss:$4 sm:$0x3]  ;;  %v2018_v28 = vperm.slane %v3707_v23, 1 }
  0x2c   : > { %v4150_v53 = vld.sshfl [vmem:[#allocation1] sm:$0xff pattern:$0x75316420]  ;;  %v4152_v54 = vld.sshfl [vmem:[#allocation1 + $0x8] sm:$0xff pattern:$0x75316420]  ;;  %v1909_v17 = vsel %vm286_vm0, %v1906_v10, %v1908_v11 }
  0x2d   : > { %1015 = vrot.lane.b32.xlu2 %v1014_v2, %s3968_s20  ;;  %302 = vst [vmem:[#allocation1] ss:$2 sm:$0xff] %v4124_v26  ;;  %v1750_v2 = vrot.slane %v1749_v59, 4  ;;  %v1708_v3 = vsel %vm286_vm0, %v1705_v60, %v1707_v61  ;;  %v2132_v31 = vrot.slane %v2131_v24, 4  ;;  %v2219_v32 = vperm.slane %v3720_v27, 1 }
  0x2e   : > { %v3734_v33 = vld [vmem:[%s5282_s1 + $0x2] ss:$4 sm:$0x3]  ;;  %v2019_v35 = vrot.slane %v2018_v28, 4  ;;  %v2218_v39 = vperm.slane %v3720_v27, 0  ;;  %vm341_vm1 = vcmask 15360  }
  0x2f   : > { %v2133_v36 = vsel %vm286_vm0, %v2130_v30, %v2132_v31  ;;  %v2058_v37 = vld [vmem:[%s5282_s1] ss:$4 sm:$0x3]  ;;  %v2443_v38 = vperm.slane %v3734_v33, 1  ;;  %v2442_v44 = vperm.slane %v3734_v33, 0  ;;  %vm384_vm2 = vcmask 130048  }
  0x30   : > { %v2257_v41 = vld [vmem:[%s5282_s1] ss:$4 sm:$0x3]  ;;  %v2061_v43 = vperm.slane %v2058_v37, 1  ;;  %v2060_v48 = vperm.slane %v2058_v37, 0  ;;  %vm457_vm3 = vcmask 146432  }
  0x31   : > { %1085 = vrot.lane.b32.xlu0 %v1084_v8, %s3966_s10  ;;  %v1751_v8 = vsel %vm286_vm0, %v1748_v1, %v1750_v2  ;;  %v2444_v45 = vrot.slane %v2443_v38, 4  ;;  %v2260_v47 = vperm.slane %v2257_v41, 1  ;;  %v3727_v51 = vld [vmem:[%s5282_s1 + $0x2] ss:$4 sm:$0x3]  ;;  %v2259_v52 = vperm.slane %v2257_v41, 0 }
  0x32   : > { %v2062_v49 = vrot.slane %v2061_v43, 4  ;;  %v3740_v56 = vld [vmem:[%s5282_s1 + $0x2] ss:$4 sm:$0x3]  ;;  %v2330_v59 = vperm.slane %v3727_v51, 1  ;;  %v2329_v1 = vperm.slane %v3727_v51, 0 }
  0x33   : > { %1128 = vrot.lane.b32.xlu1 %v1127_v13, %s3969_s23  ;;  %v2261_v55 = vrot.slane %v2260_v47, 4  ;;  %v2531_v62 = vperm.slane %v3740_v56, 1  ;;  %v2370_v4 = vld [vmem:[%s5282_s1] ss:$4 sm:$0x3]  ;;  %v2530_v5 = vperm.slane %v3740_v56, 0 }
  0x34   : > { %v305_v13 = vld.sshfl [vmem:[#allocation1] sm:$0xff pattern:$0x75316420]  ;;  %v306_v14 = vld.sshfl [vmem:[#allocation1 + $0x8] sm:$0xff pattern:$0x75316420]  ;;  %v2063_v58 = vsel %vm286_vm0, %v2060_v48, %v2062_v49 }
  0x35   : > { %1198 = vrot.lane.b32.xlu2 %v1197_v20, %s3967_s17  ;;  %v311_v20 = vpack.c.bf16 %v306_v14, %v305_v13  ;;  %v2262_v61 = vsel %vm286_vm0, %v2259_v52, %v2261_v55  ;;  %v2331_v2 = vrot.slane %v2330_v59, 4  ;;  %v2532_v6 = vrot.slane %v2531_v62, 4  ;;  %v2569_v7 = vld [vmem:[%s5282_s1] ss:$4 sm:$0x3] }
  0x36   : > { %v2373_v9 = vperm.slane %v2370_v4, 1  ;;  %v2572_v11 = vperm.slane %v2569_v7, 1  ;;  %v3747_v14 = vld [vmem:[%s5282_s1 + $0x2] ss:$4 sm:$0x3]  ;;  %v2571_v15 = vperm.slane %v2569_v7, 0 }
  0x37   : > { %v315_v25 = vrot.slane %v311_v20, 6  ;;  %v2533_v10 = vsel %vm286_vm0, %v2530_v5, %v2532_v6  ;;  %v2642_v18 = vperm.slane %v3747_v14, 1  ;;  %v2641_v20 = vperm.slane %v3747_v14, 0  ;;  %v374_v38 = vld [vmem:[%s4112_s7 + $0x8] sm:$0xf] }
  0x38   : > { %v2374_v13 = vrot.slane %v2373_v9, 4  ;;  %v2573_v16 = vrot.slane %v2572_v11, 4  ;;  %v419_v52 = vld [vmem:[%s4112_s7 + $0x8] sm:$0xf]  ;;  %vm502_vm4 = vcmask 261120   ;;  %vm575_vm5 = vcmask 277504  }
  0x39   : > { %1286 = vrot.lane.b32.xlu0 %v1285_v29, %s3965_s9  ;;  %v316_v29 = vrot.slane %v312_v21, 6  ;;  %v2643_v21 = vrot.slane %v2642_v18, 4  ;;  %vm325_vm6 = vcmask 1039360   ;;  %vm369_vm7 = vcmask 1031168  }
  0x3a   : > { %v2574_v19 = vsel %vm286_vm0, %v2571_v15, %v2573_v16  ;;  %vm414_vm8 = vcmask 916480   ;;  %vm442_vm9 = vcmask 908288   ;;  %vm487_vm10 = vcmask 900096  }
  0x3b   : > { %1327 = vrot.lane.b32.xlu1 %v1326_v34, %s3968_s20  ;;  %v2017_v34 = vperm.slane %v3707_v23, 0  ;;  %v2644_v23 = vsel %vm286_vm0, %v2641_v20, %v2643_v21  ;;  %vm530_vm11 = vcmask 785408   ;;  %vm560_vm12 = vcmask 777216  }
  0x3c   : > { %vm603_vm13 = vcmask 769024   ;;  %vm3042_vm14 = vcmask 1041408   ;;  %vm3038_vm15 = vcmask 293888  }
  0x3d   : > { %1397 = vrot.lane.b32.xlu2 %v1396_v40, %s3966_s10  ;;  %v2220_v40 = vrot.slane %v2219_v32, 4  ;;  %v2020_v42 = vsel %vm286_vm0, %v2017_v34, %v2019_v35 }
  0x41   : > { %1440 = vrot.lane.b32.xlu0 %v1439_v46, %s3969_s23  ;;  %v2221_v46 = vsel %vm286_vm0, %v2218_v39, %v2220_v40 }
  0x43   : > { %1510 = vrot.lane.b32.xlu1 %v1509_v50, %s3967_s17  ;;  %v2445_v50 = vsel %vm286_vm0, %v2442_v44, %v2444_v45 }
  0x45   : > { %1598 = vrot.lane.b32.xlu2 %v1597_v57, %s3965_s9  ;;  %v3754_v57 = vld [vmem:[%s5282_s1 + $0x2] ss:$4 sm:$0x3] }
  0x46   : > { %v2755_v60 = vperm.slane %v3754_v57, 1 }
  0x48   : > { %v2756_v0 = vrot.slane %v2755_v60, 4 }
  0x49   : > { %1639 = vrot.lane.b32.xlu0 %v1638_v63, %s3968_s20  ;;  %v2754_v63 = vperm.slane %v3754_v57, 0 }
  0x4b   : > { %1709 = vrot.lane.b32.xlu1 %v1708_v3, %s3966_s10  ;;  %v2757_v3 = vsel %vm286_vm0, %v2754_v63, %v2756_v0 }
  0x4d   : > { %1752 = vrot.lane.b32.xlu2 %v1751_v8, %s3969_s23  ;;  %v2332_v8 = vsel %vm286_vm0, %v2329_v1, %v2331_v2 }
  0x51   : > { %1822 = vrot.lane.b32.xlu0 %v1821_v12, %s3967_s17  ;;  %v2372_v12 = vperm.slane %v2370_v4, 0 }
  0x53   : > { %1910 = vrot.lane.b32.xlu1 %v1909_v17, %s3965_s9  ;;  %v2375_v17 = vsel %vm286_vm0, %v2372_v12, %v2374_v13  ;;  %v492_v12 = vld [vmem:[%s4112_s7 + $0x8] sm:$0xf] }
  0x55   : > { %1951 = vrot.lane.b32.xlu2 %v1950_v22, %s3968_s20  ;;  %v2682_v22 = vld [vmem:[%s5282_s1] ss:$4 sm:$0x3] }
  0x56   : > { %v2685_v24 = vperm.slane %v2682_v22, 1 }
  0x58   : > { %v2686_v27 = vrot.slane %v2685_v24, 4 }
  0x59   : > { %317 = vrot.lane.b32.xlu0 %v315_v25, %s3970_s25  ;;  %v2684_v25 = vperm.slane %v2682_v22, 0 }
  0x5b   : > { %319 = vrot.lane.b32.xlu1 %v316_v29, %s3970_s25  ;;  %v330_v29 = vld [vmem:[%s4112_s7 + $0x8] sm:$0xf]  ;;  %v2687_v34 = vsel %vm286_vm0, %v2684_v25, %v2686_v27 }
  0x5d   : > { %2134 = vrot.lane.b32.xlu2 %v2133_v36, %s3967_s17 }
  0x61   : > { %2021 = vrot.lane.b32.xlu0 %v2020_v42, %s3966_s10 }
  0x63   : > { %2222 = vrot.lane.b32.xlu1 %v2221_v46, %s3965_s9 }
  0x65   : > { %2446 = vrot.lane.b32.xlu2 %v2445_v50, %s3967_s17 }
  0x69   : > { %2064 = vrot.lane.b32.xlu0 %v2063_v58, %s3969_s23 }
  0x6b   : > { %2263 = vrot.lane.b32.xlu1 %v2262_v61, %s3968_s20  ;;  %v447_v61 = vld [vmem:[%s4112_s7 + $0x8] sm:$0xf] }
  0x6d   : > { %2758 = vrot.lane.b32.xlu2 %v2757_v3, %s3967_s17 }
  0x6f   : > { %v4249_v36 = vpop.permute.xlu2 %572 }
  0x71   : > { %2333 = vrot.lane.b32.xlu0 %v2332_v8, %s3966_s10 }
  0x73   : > { %2534 = vrot.lane.b32.xlu1 %v2533_v10, %s3965_s9 }
  0x77   : > { %v4258_v50 = vpop.permute.xlu2 %662 }
  0x79   : > { %2376 = vrot.lane.b32.xlu0 %v2375_v17, %s3969_s23 }
  0x7b   : > { %2575 = vrot.lane.b32.xlu1 %v2574_v19, %s3968_s20  ;;  %s3972_s20 = smov 112  }
  0x7f   : > { %v4272_v4 = vpop.permute.xlu2 %816 }
  0x81   : > { %2645 = vrot.lane.b32.xlu0 %v2644_v23, %s3966_s10  ;;  %s3971_s10 = smov 126  }
  0x83   : > { %v339_v28 = vpop.permute.xlu0 %338 }
  0x84   : > { %v340_v30 = vrot.slane %v339_v28, 4 }
  0x85   : > { %v455_v31 = vpop.permute.xlu1 %454 }
  0x86   : > { %v342_v32 = vsel %vm341_vm1, %v340_v30, %v339_v28  ;;  %v346_v33 = vmul.f32 %v340_v30, %v330_v29  ;;  %v456_v55 = vrot.slane %v455_v31, 4  ;;  %v574_v29 = vrot.slane %v4249_v36, 4  ;;  %v609_v30 = vld [vmem:[%s5282_s1] ss:$4 sm:$0x3] }
  0x87   : > { %v345_v35 = vmul.f32 %v342_v32, %v4124_v26  ;;  %v4284_v20 = vpop.permute.xlu2 %1015 }
  0x88   : > { %351 = vst [vmem:[#allocation1 + $0x10] ss:$2 sm:$0xff] %v346_v33  ;;  %v458_v0 = vsel %vm457_vm3, %v456_v55, %v455_v31  ;;  %v462_v3 = vmul.f32 %v456_v55, %v447_v61  ;;  %v535_v31 = vld [vmem:[%s4112_s7 + $0x8] sm:$0xf] }
  0x89   : > { %349 = vst [vmem:[#allocation1] ss:$2 sm:$0xff] %v345_v35  ;;  %2688 = vrot.lane.b32.xlu0 %v2687_v34, %s3969_s23  ;;  %v461_v5 = vmul.f32 %v458_v0, %v4124_v26  ;;  %s3973_s23 = smov 111   ;;  %v612_v35 = vperm.slane %v609_v30, 1 }
  0x8b   : > { %v382_v37 = vpop.permute.xlu0 %381 }
  0x8c   : > { %v383_v39 = vrot.slane %v382_v37, 4 }
  0x8d   : > { %v500_v40 = vpop.permute.xlu1 %499 }
  0x8e   : > { %v385_v41 = vsel %vm384_vm2, %v383_v39, %v382_v37  ;;  %v389_v42 = vmul.f32 %v383_v39, %v374_v38  ;;  %v501_v6 = vrot.slane %v500_v40, 4  ;;  %v565_v39 = vld [vmem:[%s4112_s7 + $0x8] sm:$0xf] }
  0x8f   : > { %v354_v43 = vld.sshfl [vmem:[#allocation1 + $0x10] sm:$0xff pattern:$0x75316420]  ;;  %v388_v44 = vmul.f32 %v385_v41, %v4124_v26  ;;  %v4298_v37 = vpop.permute.xlu2 %1198 }
  0x90   : > { %v352_v45 = vld.sshfl [vmem:[#allocation1] sm:$0xff pattern:$0x75316420]  ;;  %v353_v46 = vld.sshfl [vmem:[#allocation1 + $0x8] sm:$0xff pattern:$0x75316420]  ;;  %v359_v47 = vpack.c.bf16 %v354_v43, %v354_v43  ;;  %v503_v14 = vsel %vm502_vm4, %v501_v6, %v500_v40  ;;  %v507_v16 = vmul.f32 %v501_v6, %v492_v12 }
  0x91   : > { %392 = vst [vmem:[#allocation1] ss:$2 sm:$0xff] %v388_v44  ;;  %v358_v48 = vpack.c.bf16 %v353_v46, %v352_v45  ;;  %v506_v17 = vmul.f32 %v503_v14, %v4124_v26  ;;  %v580_v44 = vmul.f32 %v574_v29, %v565_v39  ;;  %v611_v45 = vperm.slane %v609_v30, 0 }
  0x92   : > { %394 = vst [vmem:[#allocation1 + $0x10] ss:$2 sm:$0xff] %v389_v42  ;;  %364 = vrot.lane.b32.xlu1 %v359_v47, %s3971_s10  ;;  %v576_v42 = vsel %vm575_vm5, %v574_v29, %v4249_v36  ;;  %v613_v46 = vrot.slane %v612_v35, 4 }
  0x93   : > { %362 = vrot.lane.b32.xlu2 %v358_v48, %s3971_s10  ;;  %v4256_v49 = vpop.permute.xlu0 %703  ;;  %v579_v47 = vmul.f32 %v576_v42, %v4124_v26 }
  0x94   : > { %v614_v36 = vsel %vm286_vm0, %v611_v45, %v613_v46  ;;  %v3624_v45 = vld [vmem:[%s4112_s7 + $0x14] sm:$0xf] }
  0x95   : > { %v4260_v51 = vpop.permute.xlu1 %773 }
  0x98   : > { %v395_v56 = vld.sshfl [vmem:[#allocation1] sm:$0xff pattern:$0x75316420]  ;;  %v396_v57 = vld.sshfl [vmem:[#allocation1 + $0x8] sm:$0xff pattern:$0x75316420] }
  0x99   : > { %v397_v58 = vld.sshfl [vmem:[#allocation1 + $0x10] sm:$0xff pattern:$0x75316420]  ;;  %422 = vst [vmem:[#allocation1] ss:$2 sm:$0xff] %v4124_v26  ;;  %v401_v59 = vpack.c.bf16 %v396_v57, %v395_v56 }
  0x9a   : > { %424 = vst [vmem:[#allocation1 + $0x10] ss:$2 sm:$0xff] %v419_v52  ;;  %v402_v60 = vpack.c.bf16 %v397_v58, %v397_v58  ;;  %v4311_v57 = vld [vmem:[%s4112_s7 + $0xc] sm:$0xff] }
  0x9b   : > { %v405_v62 = vrot.slane %v401_v59, 6  ;;  %v4265_v63 = vpop.permute.xlu0 %886 }
  0x9c   : > { %v406_v1 = vrot.slane %v402_v60, 6  ;;  %v4314_v60 = vpop.permute.xlu2 %1397 }
  0x9d   : > { %407 = vrot.lane.b32.xlu2 %v405_v62, %s3972_s20  ;;  %v4269_v2 = vpop.permute.xlu1 %974 }
  0x9e   : > { %409 = vrot.lane.b32.xlu1 %v406_v1, %s3972_s20  ;;  %v3617_v1 = vld [vmem:[%s4112_s7 + $0x14] sm:$0xf] }
  0xa0   : > { %v425_v7 = vld.sshfl [vmem:[#allocation1] sm:$0xff pattern:$0x75316420]  ;;  %v426_v8 = vld.sshfl [vmem:[#allocation1 + $0x8] sm:$0xff pattern:$0x75316420] }
  0xa1   : > { %v427_v9 = vld.sshfl [vmem:[#allocation1 + $0x10] sm:$0xff pattern:$0x75316420]  ;;  %465 = vst [vmem:[#allocation1] ss:$2 sm:$0xff] %v461_v5  ;;  %v431_v10 = vpack.c.bf16 %v426_v8, %v425_v7  ;;  %v664_v8 = vrot.slane %v4258_v50, 4 }
  0xa2   : > { %467 = vst [vmem:[#allocation1 + $0x10] ss:$2 sm:$0xff] %v462_v3  ;;  %v432_v11 = vpack.c.bf16 %v427_v9, %v427_v9  ;;  %v3619_v9 = vld [vmem:[%s4112_s7 + $0x14] sm:$0xf] }
  0xa3   : > { %v4276_v13 = vpop.permute.xlu0 %1085 }
  0xa4   : > { %437 = vrot.lane.b32.xlu0 %v432_v11, %s3973_s23  ;;  %v669_v11 = vmul.f32 %v3619_v9, %v664_v8  ;;  %v4328_v12 = vpop.permute.xlu2 %1598 }
  0xa5   : > { %435 = vrot.lane.b32.xlu2 %v431_v10, %s3973_s23  ;;  %v4281_v15 = vpop.permute.xlu1 %1128 }
  0xa8   : > { %v468_v18 = vld.sshfl [vmem:[#allocation1] sm:$0xff pattern:$0x75316420]  ;;  %v469_v19 = vld.sshfl [vmem:[#allocation1 + $0x8] sm:$0xff pattern:$0x75316420] }
  0xa9   : > { %v470_v21 = vld.sshfl [vmem:[#allocation1 + $0x10] sm:$0xff pattern:$0x75316420]  ;;  %510 = vst [vmem:[#allocation1] ss:$2 sm:$0xff] %v506_v17  ;;  %v474_v22 = vpack.c.bf16 %v469_v19, %v468_v18 }
  0xaa   : > { %512 = vst [vmem:[#allocation1 + $0x10] ss:$2 sm:$0xff] %v507_v16  ;;  %v475_v23 = vpack.c.bf16 %v470_v21, %v470_v21  ;;  %v705_v21 = vrot.slane %v4256_v49, 4 }
  0xab   : > { %v478_v24 = vrot.slane %v474_v22, 6  ;;  %v4286_v25 = vpop.permute.xlu0 %1286 }
  0xac   : > { %v479_v27 = vrot.slane %v475_v23, 6  ;;  %v3622_v23 = vld [vmem:[%s4112_s7 + $0x14] sm:$0xf]  ;;  %v706_v42 = vsel %vm384_vm2, %v705_v21, %v4256_v49 }
  0xad   : > { %480 = vrot.lane.b32.xlu1 %v478_v24, %s3974_s27  ;;  %v4289_v28 = vpop.permute.xlu1 %1327  ;;  %v665_v24 = vsel %vm341_vm1, %v664_v8, %v4258_v50  ;;  %v710_v29 = vmul.f32 %v3622_v23, %v705_v21  ;;  %v3626_v49 = vld [vmem:[%s4112_s7 + $0x14] sm:$0xf] }
  0xae   : > { %482 = vrot.lane.b32.xlu0 %v479_v27, %s3974_s27  ;;  %v668_v30 = vmul.f32 %v4311_v57, %v665_v24  ;;  %v3629_v8 = vld [vmem:[%s4112_s7 + $0x14] sm:$0xf] }
  0xb0   : > { %v513_v32 = vld.sshfl [vmem:[#allocation1] sm:$0xff pattern:$0x75316420]  ;;  %v514_v33 = vld.sshfl [vmem:[#allocation1 + $0x8] sm:$0xff pattern:$0x75316420] }
  0xb1   : > { %v515_v34 = vld.sshfl [vmem:[#allocation1 + $0x10] sm:$0xff pattern:$0x75316420]  ;;  %538 = vst [vmem:[#allocation1] ss:$2 sm:$0xff] %v4124_v26  ;;  %v519_v40 = vpack.c.bf16 %v514_v33, %v513_v32  ;;  %v616_v26 = vmul.f32 %v4311_v57, %v614_v36  ;;  %v4345_v33 = vpop.permute.xlu2 %1752 }
  0xb2   : > { %540 = vst [vmem:[#allocation1 + $0x10] ss:$2 sm:$0xff] %v535_v31  ;;  %v520_v38 = vpack.c.bf16 %v515_v34, %v515_v34 }
  0xb3   : > { %v4301_v41 = vpop.permute.xlu0 %1440 }
  0xb4   : > { %525 = vrot.lane.b32.xlu2 %v520_v38, %s3975_s30 }
  0xb5   : > { %523 = vrot.lane.b32.xlu1 %v519_v40, %s3975_s30  ;;  %v4307_v43 = vpop.permute.xlu1 %1510 }
  0xb8   : > { %v541_v48 = vld.sshfl [vmem:[#allocation1] sm:$0xff pattern:$0x75316420]  ;;  %v542_v52 = vld.sshfl [vmem:[#allocation1 + $0x8] sm:$0xff pattern:$0x75316420] }
  0xb9   : > { %v543_v55 = vld.sshfl [vmem:[#allocation1 + $0x10] sm:$0xff pattern:$0x75316420]  ;;  %583 = vst [vmem:[#allocation1] ss:$2 sm:$0xff] %v579_v47  ;;  %v547_v56 = vpack.c.bf16 %v542_v52, %v541_v48  ;;  %v775_v52 = vrot.slane %v4260_v51, 4 }
  0xba   : > { %585 = vst [vmem:[#allocation1 + $0x10] ss:$2 sm:$0xff] %v580_v44  ;;  %v548_v58 = vpack.c.bf16 %v543_v55, %v543_v55  ;;  %v709_v44 = vmul.f32 %v4311_v57, %v706_v42  ;;  %v4358_v55 = vpop.permute.xlu2 %1951 }
  0xbb   : > { %v551_v59 = vrot.slane %v547_v56, 6  ;;  %v4316_v62 = vpop.permute.xlu0 %1639 }
  0xbc   : > { %v552_v61 = vrot.slane %v548_v58, 6 }
  0xbd   : > { %553 = vrot.lane.b32.xlu0 %v551_v59, %s3976_s8  ;;  %v4321_v0 = vpop.permute.xlu1 %1709 }
  0xbe   : > { %555 = vrot.lane.b32.xlu1 %v552_v61, %s3976_s8  ;;  %v780_v61 = vmul.f32 %v3626_v49, %v775_v52 }
  0xc0   : > { %v586_v3 = vld.sshfl [vmem:[#allocation1] sm:$0xff pattern:$0x75316420]  ;;  %v587_v5 = vld.sshfl [vmem:[#allocation1 + $0x8] sm:$0xff pattern:$0x75316420] }
  0xc1   : > { %v588_v6 = vld.sshfl [vmem:[#allocation1 + $0x10] sm:$0xff pattern:$0x75316420]  ;;  %618 = vst [vmem:[#allocation1] ss:$2 sm:$0xff] %v616_v26  ;;  %v592_v7 = vpack.c.bf16 %v587_v5, %v586_v3 }
  0xc2   : > { %631 = vst [vmem:[#allocation1 + $0x10] ss:$2 sm:$0xff] %v3617_v1  ;;  %v593_v10 = vpack.c.bf16 %v588_v6, %v588_v6 }
  0xc3   : > { %596 = vrot.lane.b32.xlu2 %v592_v7, %s3977_s11  ;;  %v4330_v14 = vpop.permute.xlu0 %1822  ;;  %v818_v7 = vrot.slane %v4272_v4, 4 }
  0xc5   : > { %598 = vrot.lane.b32.xlu0 %v593_v10, %s3977_s11  ;;  %v4336_v18 = vpop.permute.xlu1 %1910  ;;  %v776_v10 = vsel %vm457_vm3, %v775_v52, %v4260_v51  ;;  %v823_v21 = vmul.f32 %v3629_v8, %v818_v7 }
  0xc6   : > { %v779_v23 = vmul.f32 %v4311_v57, %v776_v10 }
  0xc8   : > { %v4332_v16 = vld.sshfl [vmem:[#allocation1] sm:$0xff pattern:$0x75316420]  ;;  %v4334_v17 = vld.sshfl [vmem:[#allocation1 + $0x8] sm:$0xff pattern:$0x75316420] }
  0xc9   : > { %629 = vst [vmem:[#allocation1] ss:$2 sm:$0xff] %v4311_v57  ;;  %v634_v19 = vld.sshfl [vmem:[#allocation1 + $0x10] sm:$0xff pattern:$0x75316420] }
  0xca   : > { %674 = vst [vmem:[#allocation1 + $0x10] ss:$2 sm:$0xff] %v669_v11  ;;  %v639_v22 = vpack.c.bf16 %v634_v19, %v634_v19  ;;  %v4371_v11 = vpop.permute.xlu2 %2134 }
  0xcb   : > { %v4347_v34 = vpop.permute.xlu0 %317 }
  0xcc   : > { %v643_v27 = vrot.slane %v639_v22, 6  ;;  %v321_v52 = vrot.slane %v4347_v34, 4 }
  0xcd   : > { %v4349_v50 = vpop.permute.xlu1 %319 }
  0xce   : > { %646 = vrot.lane.b32.xlu0 %v643_v27, %s3970_s25 }
  0xd0   : > { %v632_v31 = vld.sshfl [vmem:[#allocation1] sm:$0xff pattern:$0x75316420]  ;;  %v633_v32 = vld.sshfl [vmem:[#allocation1 + $0x8] sm:$0xff pattern:$0x75316420] }
  0xd1   : > { %672 = vst [vmem:[#allocation1] ss:$2 sm:$0xff] %v668_v30  ;;  %v677_v35 = vld.sshfl [vmem:[#allocation1 + $0x10] sm:$0xff pattern:$0x75316420]  ;;  %v638_v38 = vpack.c.bf16 %v633_v32, %v632_v31  ;;  %v819_v32 = vsel %vm502_vm4, %v818_v7, %v4272_v4  ;;  %v322_v4 = vrot.slane %v4349_v50, 4 }
  0xd2   : > { %715 = vst [vmem:[#allocation1 + $0x10] ss:$2 sm:$0xff] %v710_v29  ;;  %v682_v39 = vpack.c.bf16 %v677_v35, %v677_v35  ;;  %v4384_v35 = vpop.permute.xlu2 %2446  ;;  %v921_v50 = vld [vmem:[%s5282_s1] ss:$4 sm:$0x3] }
  0xd3   : > { %v642_v40 = vrot.slane %v638_v38, 6  ;;  %v4360_v56 = vpop.permute.xlu0 %2021 }
  0xd5   : > { %644 = vrot.lane.b32.xlu2 %v642_v40, %s3970_s25  ;;  %v4363_v58 = vpop.permute.xlu1 %2222  ;;  %v3631_v40 = vld [vmem:[%s4112_s7 + $0x14] sm:$0xf] }
  0xd6   : > { %687 = vrot.lane.b32.xlu0 %v682_v39, %s3971_s10  ;;  %v822_v39 = vmul.f32 %v4311_v57, %v819_v32 }
  0xd8   : > { %v675_v46 = vld.sshfl [vmem:[#allocation1] sm:$0xff pattern:$0x75316420]  ;;  %v676_v47 = vld.sshfl [vmem:[#allocation1 + $0x8] sm:$0xff pattern:$0x75316420] }
  0xd9   : > { %713 = vst [vmem:[#allocation1] ss:$2 sm:$0xff] %v709_v44  ;;  %v718_v48 = vld.sshfl [vmem:[#allocation1 + $0x10] sm:$0xff pattern:$0x75316420]  ;;  %v681_v36 = vpack.c.bf16 %v676_v47, %v675_v46 }
  0xda   : > { %744 = vst [vmem:[#allocation1 + $0x10] ss:$2 sm:$0xff] %v3624_v45  ;;  %v723_v59 = vpack.c.bf16 %v718_v48, %v718_v48  ;;  %v888_v48 = vrot.slane %v4265_v63, 4 }
  0xdb   : > { %v4373_v19 = vpop.permute.xlu0 %2064 }
  0xdc   : > { %v727_v6 = vrot.slane %v723_v59, 6  ;;  %v324_v59 = vsel %vm286_vm0, %v321_v52, %v322_v4 }
  0xdd   : > { %685 = vrot.lane.b32.xlu2 %v681_v36, %s3971_s10  ;;  %v4377_v22 = vpop.permute.xlu1 %2263  ;;  %v3633_v36 = vld [vmem:[%s4112_s7 + $0x14] sm:$0xf] }
  0xe0   : > { %v716_v26 = vld.sshfl [vmem:[#allocation1] sm:$0xff pattern:$0x75316420]  ;;  %v717_v1 = vld.sshfl [vmem:[#allocation1 + $0x8] sm:$0xff pattern:$0x75316420] }
  0xe1   : > { %742 = vst [vmem:[#allocation1] ss:$2 sm:$0xff] %v4311_v57  ;;  %v747_v3 = vld.sshfl [vmem:[#allocation1 + $0x10] sm:$0xff pattern:$0x75316420]  ;;  %v722_v5 = vpack.c.bf16 %v717_v1, %v716_v26  ;;  %v893_v26 = vmul.f32 %v3633_v36, %v888_v48 }
  0xe2   : > { %785 = vst [vmem:[#allocation1 + $0x10] ss:$2 sm:$0xff] %v780_v61  ;;  %v752_v51 = vpack.c.bf16 %v747_v3, %v747_v3  ;;  %v326_v61 = vsel %vm325_vm6, %v4347_v34, %v324_v59 }
  0xe3   : > { %v726_v9 = vrot.slane %v722_v5, 6  ;;  %v4386_v38 = vpop.permute.xlu0 %2333  ;;  %328 = vst [vmem:[#allocation2] sm:$0xcc] %v326_v61 }
  0xe5   : > { %728 = vrot.lane.b32.xlu1 %v726_v9, %s3972_s20  ;;  %730 = vrot.lane.b32.xlu2 %v727_v6, %s3972_s20  ;;  %v4390_v46 = vpop.permute.xlu1 %2534  ;;  %v4404_v6 = vpop.permute.xlu2 %2758  ;;  %v924_v9 = vperm.slane %v921_v50, 1 }
  0xe8   : > { %v745_v24 = vld.sshfl [vmem:[#allocation1] sm:$0xff pattern:$0x75316420]  ;;  %v746_v27 = vld.sshfl [vmem:[#allocation1 + $0x8] sm:$0xff pattern:$0x75316420] }
  0xe9   : > { %783 = vst [vmem:[#allocation1] ss:$2 sm:$0xff] %v779_v23  ;;  %v788_v29 = vld.sshfl [vmem:[#allocation1 + $0x10] sm:$0xff pattern:$0x75316420]  ;;  %v751_v30 = vpack.c.bf16 %v746_v27, %v745_v24  ;;  %v889_v23 = vsel %vm575_vm5, %v888_v48, %v4265_v63  ;;  %v923_v27 = vperm.slane %v921_v50, 0 }
  0xea   : > { %828 = vst [vmem:[#allocation1 + $0x10] ss:$2 sm:$0xff] %v823_v21  ;;  %v793_v31 = vpack.c.bf16 %v788_v29, %v788_v29  ;;  %v925_v29 = vrot.slane %v924_v9, 4  ;;  %v3639_v48 = vld [vmem:[%s4112_s7 + $0x20] sm:$0xf] }
  0xeb   : > { %v4406_v7 = vpop.permute.xlu0 %2376 }
  0xec   : > { %v797_v42 = vrot.slane %v793_v31, 6  ;;  %v926_v63 = vsel %vm286_vm0, %v923_v27, %v925_v29 }
  0xed   : > { %755 = vrot.lane.b32.xlu1 %v751_v30, %s3973_s23  ;;  %757 = vrot.lane.b32.xlu2 %v752_v51, %s3973_s23  ;;  %v4409_v10 = vpop.permute.xlu1 %2575  ;;  %v892_v30 = vmul.f32 %v4311_v57, %v889_v23  ;;  %v3637_v51 = vld [vmem:[%s4112_s7 + $0x20] sm:$0xf] }
  0xee   : > { %v3642_v23 = vld [vmem:[%s4112_s7 + $0x20] sm:$0xf] }
  0xf0   : > { %v786_v44 = vld.sshfl [vmem:[#allocation1] sm:$0xff pattern:$0x75316420]  ;;  %v787_v45 = vld.sshfl [vmem:[#allocation1 + $0x8] sm:$0xff pattern:$0x75316420] }
  0xf1   : > { %826 = vst [vmem:[#allocation1] ss:$2 sm:$0xff] %v822_v39  ;;  %v831_v47 = vld.sshfl [vmem:[#allocation1 + $0x10] sm:$0xff pattern:$0x75316420]  ;;  %v792_v1 = vpack.c.bf16 %v787_v45, %v786_v44  ;;  %v976_v44 = vrot.slane %v4269_v2, 4  ;;  %v363_v45 = vpop.permute.xlu2 %362 }
  0xf2   : > { %855 = vst [vmem:[#allocation1 + $0x10] ss:$2 sm:$0xff] %v3631_v40  ;;  %v836_v49 = vpack.c.bf16 %v831_v47, %v831_v47  ;;  %v366_v36 = vrot.slane %v363_v45, 4 }
  0xf3   : > { %v796_v21 = vrot.slane %v792_v1, 6  ;;  %v4422_v4 = vpop.permute.xlu0 %2645  ;;  %v981_v61 = vmul.f32 %v3639_v48, %v976_v44 }
  0xf5   : > { %841 = vrot.lane.b32.xlu1 %v836_v49, %s3975_s30  ;;  %800 = vrot.lane.b32.xlu2 %v797_v42, %s3974_s27  ;;  %v4418_v42 = vld [vmem:[%s4112_s7 + $0x18] sm:$0xff] }
  0xf6   : > { %v928_v49 = vmul.f32 %v4418_v42, %v926_v63 }
  0xf8   : > { %v829_v3 = vld.sshfl [vmem:[#allocation1] sm:$0xff pattern:$0x75316420]  ;;  %v830_v5 = vld.sshfl [vmem:[#allocation1 + $0x8] sm:$0xff pattern:$0x75316420] }
  0xf9   : > { %853 = vst [vmem:[#allocation1] ss:$2 sm:$0xff] %v4311_v57  ;;  %v858_v34 = vld.sshfl [vmem:[#allocation1 + $0x10] sm:$0xff pattern:$0x75316420]  ;;  %v835_v8 = vpack.c.bf16 %v830_v5, %v829_v3  ;;  %v408_v27 = vpop.permute.xlu2 %407 }
  0xfa   : > { %898 = vst [vmem:[#allocation1 + $0x10] ss:$2 sm:$0xff] %v893_v26  ;;  %v863_v24 = vpack.c.bf16 %v858_v34, %v858_v34  ;;  %v296_v34 = vpack.c.bf16 %v4152_v54, %v4150_v53 }
  0xfb   : > { %839 = vrot.lane.b32.xlu0 %v835_v8, %s3975_s30  ;;  %v4436_v29 = vpop.permute.xlu0 %2688 }
  0xfc   : > { %v867_v40 = vrot.slane %v863_v24, 6  ;;  %297 = vst [vmem:[#allocation2] sm:$0x33] %v296_v34 }
  0xfd   : > { %798 = vrot.lane.b32.xlu1 %v796_v21, %s3974_s27  ;;  %v1017_v21 = vrot.slane %v4284_v20, 4 }
 0x100   : > { %v856_v31 = vld.sshfl [vmem:[#allocation1] sm:$0xff pattern:$0x75316420]  ;;  %v857_v32 = vld.sshfl [vmem:[#allocation1 + $0x8] sm:$0xff pattern:$0x75316420] }
 0x101   : > { %896 = vst [vmem:[#allocation1] ss:$2 sm:$0xff] %v892_v30  ;;  %v901_v39 = vld.sshfl [vmem:[#allocation1 + $0x10] sm:$0xff pattern:$0x75316420]  ;;  %v862_v52 = vpack.c.bf16 %v857_v32, %v856_v31  ;;  %v1022_v30 = vmul.f32 %v3642_v23, %v1017_v21 }
 0x102   : > { %943 = vst [vmem:[#allocation1 + $0x10] ss:$2 sm:$0xff] %v3637_v51  ;;  %v906_v47 = vpack.c.bf16 %v901_v39, %v901_v39  ;;  %v411_v39 = vrot.slane %v408_v27, 4 }
 0x103   : > { %v866_v50 = vrot.slane %v862_v52, 6 }
 0x104   : > { %911 = vrot.lane.b32.xlu0 %v906_v47, %s3977_s11  ;;  %v365_v57 = vpop.permute.xlu1 %364 }
 0x105   : > { %v367_v59 = vrot.slane %v365_v57, 4  ;;  %870 = vrot.lane.b32.xlu1 %v867_v40, %s3976_s8  ;;  %v977_v57 = vsel %vm341_vm1, %v976_v44, %v4269_v2 }
 0x107   : > { %v368_v26 = vsel %vm286_vm0, %v366_v36, %v367_v59 }
 0x108   : > { %v899_v1 = vld.sshfl [vmem:[#allocation1] sm:$0xff pattern:$0x75316420]  ;;  %v900_v3 = vld.sshfl [vmem:[#allocation1 + $0x8] sm:$0xff pattern:$0x75316420]  ;;  %v370_v5 = vsel %vm369_vm7, %v363_v45, %v368_v26  ;;  %v436_v45 = vpop.permute.xlu2 %435 }
 0x109   : > { %930 = vst [vmem:[#allocation1] ss:$2 sm:$0xff] %v928_v49  ;;  %v946_v8 = vld.sshfl [vmem:[#allocation1 + $0x10] sm:$0xff pattern:$0x75316420]  ;;  %v905_v9 = vpack.c.bf16 %v900_v3, %v899_v1  ;;  %v439_v48 = vrot.slane %v436_v45, 4  ;;  %v980_v1 = vmul.f32 %v4418_v42, %v977_v57 }
 0x10a   : > { %986 = vst [vmem:[#allocation1 + $0x10] ss:$2 sm:$0xff] %v981_v61  ;;  %v951_v24 = vpack.c.bf16 %v946_v8, %v946_v8  ;;  %v3644_v49 = vld [vmem:[%s4112_s7 + $0x20] sm:$0xf]  ;;  %v1087_v3 = vrot.slane %v4276_v13, 4 }
 0x10b   : > { %372 = vst [vmem:[#allocation2 + $0x40] sm:$0x33] %v370_v5  ;;  %909 = vrot.lane.b32.xlu2 %v905_v9, %s3977_s11  ;;  %v3646_v26 = vld [vmem:[%s4112_s7 + $0x20] sm:$0xf] }
 0x10c   : > { %868 = vrot.lane.b32.xlu0 %v866_v50, %s3976_s8  ;;  %v955_v51 = vrot.slane %v951_v24, 6  ;;  %v1092_v9 = vmul.f32 %v3646_v26, %v1087_v3 }
 0x110   : > { %v4438_v53 = vld.sshfl [vmem:[#allocation1] sm:$0xff pattern:$0x75316420]  ;;  %v4440_v54 = vld.sshfl [vmem:[#allocation1 + $0x8] sm:$0xff pattern:$0x75316420]  ;;  %v410_v31 = vpop.permute.xlu1 %409 }
 0x111   : > { %v989_v32 = vld.sshfl [vmem:[#allocation1 + $0x10] sm:$0xff pattern:$0x75316420]  ;;  %v412_v40 = vrot.slane %v410_v31, 4  ;;  %941 = vst [vmem:[#allocation1] ss:$2 sm:$0xff] %v4418_v42 }
 0x112   : > { %1027 = vst [vmem:[#allocation1 + $0x10] ss:$2 sm:$0xff] %v1022_v30  ;;  %v994_v59 = vpack.c.bf16 %v989_v32, %v989_v32  ;;  %v1018_v30 = vsel %vm384_vm2, %v1017_v21, %v4284_v20 }
 0x113   : > { %v413_v63 = vsel %vm286_vm0, %v411_v39, %v412_v40  ;;  %958 = vrot.lane.b32.xlu2 %v955_v51, %s3970_s25  ;;  %v3649_v39 = vld [vmem:[%s4112_s7 + $0x20] sm:$0xf]  ;;  %v1130_v40 = vrot.slane %v4281_v15, 4 }
 0x114   : > { %v415_v47 = vsel %vm414_vm8, %v408_v27, %v413_v63  ;;  %v1021_v63 = vmul.f32 %v4418_v42, %v1018_v30 }
 0x115   : > { %417 = vst [vmem:[#allocation2 + $0x40] sm:$0xcc] %v415_v47  ;;  %v1135_v57 = vmul.f32 %v3649_v39, %v1130_v40  ;;  %v1088_v39 = vsel %vm457_vm3, %v1087_v3, %v4276_v13 }
 0x116   : > { %v438_v52 = vpop.permute.xlu0 %437 }
 0x117   : > { %v440_v36 = vrot.slane %v438_v52, 4 }
 0x118   : > { %v944_v34 = vld.sshfl [vmem:[#allocation1] sm:$0xff pattern:$0x75316420]  ;;  %v945_v8 = vld.sshfl [vmem:[#allocation1 + $0x8] sm:$0xff pattern:$0x75316420] }
 0x119   : > { %v1030_v61 = vld.sshfl [vmem:[#allocation1 + $0x10] sm:$0xff pattern:$0x75316420]  ;;  %v441_v50 = vsel %vm286_vm0, %v439_v48, %v440_v36  ;;  %v950_v44 = vpack.c.bf16 %v945_v8, %v944_v34  ;;  %984 = vst [vmem:[#allocation1] ss:$2 sm:$0xff] %v980_v1 }
 0x11a   : > { %1056 = vst [vmem:[#allocation1 + $0x10] ss:$2 sm:$0xff] %v3644_v49  ;;  %v443_v5 = vsel %vm442_vm9, %v436_v45, %v441_v50  ;;  %v1035_v2 = vpack.c.bf16 %v1030_v61, %v1030_v61  ;;  %v526_v61 = vpop.permute.xlu2 %525  ;;  %v3651_v1 = vld [vmem:[%s4112_s7 + $0x20] sm:$0xf] }
 0x11b   : > { %445 = vst [vmem:[#allocation2 + $0x80] sm:$0x33] %v443_v5  ;;  %999 = vrot.lane.b32.xlu2 %v994_v59, %s3971_s10  ;;  %v954_v23 = vrot.slane %v950_v44, 6  ;;  %v528_v50 = vrot.slane %v526_v61, 4 }
 0x11c   : > { %v1039_v27 = vrot.slane %v1035_v2, 6  ;;  %v1200_v2 = vrot.slane %v4298_v37, 4 }
 0x11d   : > { %956 = vrot.lane.b32.xlu1 %v954_v23, %s3970_s25 }
 0x11f   : > { %v481_v24 = vpop.permute.xlu1 %480 }
 0x120   : > { %v483_v51 = vpop.permute.xlu0 %482  ;;  %v484_v32 = vrot.slane %v481_v24, 4  ;;  %v987_v47 = vld.sshfl [vmem:[#allocation1] sm:$0xff pattern:$0x75316420] }
 0x121   : > { %v1059_v31 = vld.sshfl [vmem:[#allocation1 + $0x10] sm:$0xff pattern:$0x75316420]  ;;  %v485_v45 = vrot.slane %v483_v51, 4 }
 0x122   : > { %1097 = vst [vmem:[#allocation1 + $0x10] ss:$2 sm:$0xff] %v1092_v9  ;;  %v988_v48 = vld.sshfl [vmem:[#allocation1 + $0x8] sm:$0xff pattern:$0x75316420]  ;;  %v1064_v52 = vpack.c.bf16 %v1059_v31, %v1059_v31  ;;  %v597_v23 = vpop.permute.xlu2 %596 }
 0x123   : > { %1042 = vrot.lane.b32.xlu2 %v1039_v27, %s3972_s20  ;;  %v486_v20 = vsel %vm286_vm0, %v484_v32, %v485_v45  ;;  %v993_v21 = vpack.c.bf16 %v988_v48, %v987_v47  ;;  %1025 = vst [vmem:[#allocation1] ss:$2 sm:$0xff] %v1021_v63  ;;  %v3653_v9 = vld [vmem:[%s4112_s7 + $0x20] sm:$0xf]  ;;  %v2577_v63 = vrot.slane %v4409_v10, 4  ;;  %v2690_v47 = vrot.slane %v4436_v29, 4 }
 0x124   : > { %v488_v49 = vsel %vm487_vm10, %v481_v24, %v486_v20  ;;  %v1205_v24 = vmul.f32 %v3653_v9, %v1200_v2 }
 0x125   : > { %490 = vst [vmem:[#allocation2 + $0x80] sm:$0xcc] %v488_v49  ;;  %997 = vrot.lane.b32.xlu0 %v993_v21, %s3971_s10  ;;  %1069 = vrot.lane.b32.xlu1 %v1064_v52, %s3973_s23  ;;  %v4486_v52 = vsel %vm384_vm2, %v2577_v63, %v4409_v10  ;;  %v1091_v21 = vmul.f32 %v4418_v42, %v1088_v39 }
 0x126   : > { %v4495_v13 = vsel %vm502_vm4, %v2690_v47, %v4436_v29  ;;  %v1131_v39 = vsel %vm502_vm4, %v1130_v40, %v4281_v15 }
 0x127   : > { %v524_v36 = vpop.permute.xlu1 %523 }
 0x128   : > { %v527_v26 = vrot.slane %v524_v36, 4 }
 0x129   : > { %v1100_v59 = vld.sshfl [vmem:[#allocation1 + $0x10] sm:$0xff pattern:$0x75316420] }
 0x12a   : > { %1140 = vst [vmem:[#allocation1 + $0x10] ss:$2 sm:$0xff] %v1135_v57  ;;  %v529_v5 = vsel %vm286_vm0, %v527_v26, %v528_v50  ;;  %v1028_v27 = vld.sshfl [vmem:[#allocation1] sm:$0xff pattern:$0x75316420]  ;;  %v1105_v31 = vpack.c.bf16 %v1100_v59, %v1100_v59  ;;  %v600_v59 = vrot.slane %v597_v23, 4 }
 0x12b   : > { %v531_v44 = vsel %vm530_vm11, %v524_v36, %v529_v5  ;;  %v1029_v30 = vld.sshfl [vmem:[#allocation1 + $0x8] sm:$0xff pattern:$0x75316420]  ;;  %v1288_v36 = vrot.slane %v4286_v25, 4 }
 0x12c   : > { %533 = vst [vmem:[#allocation2 + $0xc0] sm:$0x33] %v531_v44  ;;  %v1109_v48 = vrot.slane %v1105_v31, 6  ;;  %v3657_v57 = vld [vmem:[%s4112_s7 + $0x2c] sm:$0xf]  ;;  %v1034_v61 = vpack.c.bf16 %v1029_v30, %v1028_v27 }
 0x12d   : > { %1054 = vst [vmem:[#allocation1] ss:$2 sm:$0xff] %v4418_v42 }
 0x12e   : > { %1112 = vrot.lane.b32.xlu1 %v1109_v48, %s3974_s27  ;;  %v1038_v9 = vrot.slane %v1034_v61, 6  ;;  %v3659_v48 = vld [vmem:[%s4112_s7 + $0x2c] sm:$0xf]  ;;  %v1134_v61 = vmul.f32 %v4418_v42, %v1131_v39 }
 0x12f   : > { %v554_v34 = vpop.permute.xlu0 %553  ;;  %v645_v45 = vpop.permute.xlu2 %644  ;;  %v1293_v15 = vmul.f32 %v3659_v48, %v1288_v36  ;;  %v3662_v39 = vld [vmem:[%s4112_s7 + $0x2c] sm:$0xf] }
 0x130   : > { %v556_v20 = vpop.permute.xlu1 %555  ;;  %v648_v5 = vrot.slane %v645_v45, 4  ;;  %v557_v44 = vrot.slane %v554_v34, 4  ;;  %1040 = vrot.lane.b32.xlu0 %v1038_v9, %s3972_s20 }
 0x131   : > { %v1143_v8 = vld.sshfl [vmem:[#allocation1 + $0x10] sm:$0xff pattern:$0x75316420]  ;;  %v558_v26 = vrot.slane %v556_v20, 4 }
 0x132   : > { %1167 = vst [vmem:[#allocation1 + $0x10] ss:$2 sm:$0xff] %v3651_v1 }
 0x133   : > { %v559_v27 = vsel %vm286_vm0, %v557_v44, %v558_v26 }
 0x134   : > { %v1057_v3 = vld.sshfl [vmem:[#allocation1] sm:$0xff pattern:$0x75316420]  ;;  %v1058_v49 = vld.sshfl [vmem:[#allocation1 + $0x8] sm:$0xff pattern:$0x75316420]  ;;  %v561_v20 = vsel %vm560_vm12, %v554_v34, %v559_v27 }
 0x135   : > { %1095 = vst [vmem:[#allocation1] ss:$2 sm:$0xff] %v1091_v21  ;;  %v3650_v27 = vld [vmem:[%s4112_s7 + $0x18] sm:$0xff] }
 0x136   : > { %563 = vst [vmem:[#allocation2 + $0xc0] sm:$0xcc] %v561_v20 }
 0x137   : > { %v599_v51 = vpop.permute.xlu0 %598 }
 0x138   : > { %v601_v31 = vrot.slane %v599_v51, 4 }
 0x139   : > { %v4476_v32 = vld.sshfl [vmem:[#allocation1 + $0x10] sm:$0xff pattern:$0x75316420] }
 0x13a   : > { %1210 = vst [vmem:[#allocation1 + $0x10] ss:$2 sm:$0xff] %v1205_v24  ;;  %v1148_v24 = vpack.c.bf16 %v1143_v8, %v1143_v8  ;;  %v602_v21 = vsel %vm286_vm0, %v600_v59, %v601_v31  ;;  %v1063_v59 = vpack.c.bf16 %v1058_v49, %v1057_v3  ;;  %v1329_v31 = vrot.slane %v4289_v28, 4 }
 0x13b   : > { %v604_v8 = vsel %vm603_vm13, %v597_v23, %v602_v21 }
 0x13c   : > { %1153 = vrot.lane.b32.xlu1 %v1148_v24, %s3975_s30  ;;  %606 = vst [vmem:[#allocation2 + $0x100] sm:$0x33] %v604_v8  ;;  %v1098_v34 = vld.sshfl [vmem:[#allocation1] sm:$0xff pattern:$0x75316420]  ;;  %1067 = vrot.lane.b32.xlu0 %v1063_v59, %s3973_s23  ;;  %v623_v59 = vpack.c.bf16 %v4334_v17, %v4332_v16 }
 0x13d   : > { %v1099_v26 = vld.sshfl [vmem:[#allocation1 + $0x8] sm:$0xff pattern:$0x75316420]  ;;  %v1233_v8 = vld [vmem:[%s5282_s1] ss:$4 sm:$0x3] }
 0x13e   : > { %v1104_v44 = vpack.c.bf16 %v1099_v26, %v1098_v34  ;;  %1138 = vst [vmem:[#allocation1] ss:$2 sm:$0xff] %v1134_v61  ;;  %v1236_v26 = vperm.slane %v1233_v8, 1  ;;  %v3821_v17 = vld [vmem:[#allocation2 + $0x80] sm:$0xf] }
 0x13f   : > { %624 = vst [vmem:[#allocation2 + $0x8] sm:$0x33] %v623_v59  ;;  %v4550_v59 = vld [vmem:[%s4112_s7 + $0x24] sm:$0xff] }
 0x140   : > { %v647_v50 = vpop.permute.xlu0 %646  ;;  %v1108_v24 = vrot.slane %v1104_v44, 6 }
 0x141   : > { %v4498_v1 = vld.sshfl [vmem:[#allocation1 + $0x10] sm:$0xff pattern:$0x75316420]  ;;  %v649_v30 = vrot.slane %v647_v50, 4 }
 0x142   : > { %1255 = vst [vmem:[#allocation1 + $0x10] ss:$2 sm:$0xff] %v3657_v57  ;;  %v686_v57 = vpop.permute.xlu2 %685  ;;  %1110 = vrot.lane.b32.xlu2 %v1108_v24, %s3974_s27 }
 0x143   : > { %v650_v51 = vsel %vm286_vm0, %v648_v5, %v649_v30  ;;  %v689_v50 = vrot.slane %v686_v57, 4  ;;  %v2824_v49 = vld [vmem:[#allocation2 + $0x100] sm:$0x33]  ;;  %v1334_v30 = vmul.f32 %v3662_v39, %v1329_v31  ;;  %v1201_v39 = vsel %vm575_vm5, %v1200_v2, %v4298_v37 }
 0x144   : > { %v651_v40 = vsel %vm325_vm6, %v645_v45, %v650_v51  ;;  %v1175_v45 = vpack.c.bf16 %v4476_v32, %v4476_v32  ;;  %v2942_v20 = vunpack.c.l.b16 %v2824_v49  ;;  %v2943_v21 = vunpack.c.h.b16 %v2824_v49 }
 0x145   : > { %653 = vst [vmem:[#allocation2 + $0x8] sm:$0xcc] %v651_v40  ;;  %v1141_v51 = vld.sshfl [vmem:[#allocation1] sm:$0xff pattern:$0x75316420]  ;;  %v1235_v37 = vperm.slane %v1233_v8, 0 }
 0x146   : > { %v1142_v61 = vld.sshfl [vmem:[#allocation1 + $0x8] sm:$0xff pattern:$0x75316420]  ;;  %v2990_v40 = vpack.c.b16 %v2942_v20, %v2942_v20  ;;  %v2991_v32 = vpack.c.b16 %v2943_v21, %v2943_v21  ;;  %v1237_v2 = vrot.slane %v1236_v26, 4  ;;  %v1204_v20 = vmul.f32 %v4418_v42, %v1201_v39 }
 0x147   : > { %1165 = vst [vmem:[#allocation1] ss:$2 sm:$0xff] %v3650_v27  ;;  %v3757_v27 = vld [vmem:[#allocation2] sm:$0xf] }
 0x148   : > { %v688_v23 = vpop.permute.xlu0 %687  ;;  %v3044_v44 = vsel %vm3042_vm14, %v2990_v40, 0  ;;  %v3909_v21 = vld [vmem:[#allocation2 + $0x3c] sm:$0xf0] }
 0x149   : > { %v4516_v5 = vld.sshfl [vmem:[#allocation1 + $0x10] sm:$0xff pattern:$0x75316420]  ;;  %v690_v9 = vrot.slane %v688_v23, 4  ;;  %v3047_v23 = vsel %vm3042_vm14, %v2991_v32, 0  ;;  %3096 = vmatpush.bf16.msra.mxu0 %v3044_v44  ;;  %v3758_v26 = vor.u32 %v3909_v21, %v3757_v27 }
 0x14a   : > { %1298 = vst [vmem:[#allocation1 + $0x10] ss:$2 sm:$0xff] %v1293_v15  ;;  %v1179_v15 = vrot.slane %v1175_v45, 6  ;;  %3109 = vmatpush.bf16.msra.mxu1 %v3047_v23  ;;  %v1263_v16 = vpack.c.bf16 %v4516_v5, %v4516_v5  ;;  %v3917_v45 = vld [vmem:[#allocation2 + $0x84] sm:$0xf]  ;;  %v1399_v23 = vrot.slane %v4314_v60, 4 }
 0x14b   : > { %v691_v48 = vsel %vm286_vm0, %v689_v50, %v690_v9  ;;  %v1147_v50 = vpack.c.bf16 %v1142_v61, %v1141_v51  ;;  %v3823_v9 = vld [vmem:[#allocation2 + $0xc0] sm:$0xf0] }
 0x14c   : > { %v692_v3 = vsel %vm369_vm7, %v686_v57, %v691_v48  ;;  %v3925_v57 = vld [vmem:[#allocation2 + $0xbc] sm:$0xf0]  ;;  %v731_v48 = vpop.permute.xlu2 %730  ;;  %1182 = vrot.lane.b32.xlu0 %v1179_v15, %s3976_s8  ;;  %v3826_v49 = vor.u32 %v3917_v45, %v3823_v9  ;;  %v3759_v51 = vld [vmem:[#allocation2 + $0x40] sm:$0xf0] }
 0x14d   : > { %694 = vst [vmem:[#allocation2 + $0x48] sm:$0x33] %v692_v3  ;;  %1151 = vrot.lane.b32.xlu2 %v1147_v50, %s3975_s30  ;;  %v3822_v3 = vor.u32 %v3925_v57, %v3821_v17  ;;  %v3664_v61 = vld [vmem:[%s4112_s7 + $0x2c] sm:$0xf]  ;;  %v733_v32 = vrot.slane %v731_v48, 4  ;;  %v1267_v57 = vrot.slane %v1263_v16, 6  ;;  %v1238_v50 = vsel %vm286_vm0, %v1235_v37, %v1237_v2 }
 0x14e   : > { %3110 = vmatpush.bf16.msra.mxu1 %v3826_v49  ;;  %v1168_v15 = vld.sshfl [vmem:[#allocation1] sm:$0xff pattern:$0x75316420]  ;;  %v1169_v5 = vld.sshfl [vmem:[#allocation1 + $0x8] sm:$0xff pattern:$0x75316420]  ;;  %v1240_v48 = vmul.f32 %v4550_v59, %v1238_v50  ;;  %v1289_v50 = vsel %vm341_vm1, %v1288_v36, %v4286_v25 }
 0x14f   : > { %3097 = vmatpush.bf16.msra.mxu0 %v3822_v3  ;;  %1208 = vst [vmem:[#allocation1] ss:$2 sm:$0xff] %v1204_v20 }
 0x151   : > { %v1301_v34 = vld.sshfl [vmem:[#allocation1 + $0x10] sm:$0xff pattern:$0x75316420] }
 0x152   : > { %v1306_v24 = vpack.c.bf16 %v1301_v34, %v1301_v34  ;;  %1339 = vst [vmem:[#allocation1 + $0x10] ss:$2 sm:$0xff] %v1334_v30  ;;  %v3901_v30 = vld [vmem:[#allocation2 + $0x4] sm:$0xf]  ;;  %v1218_v34 = vpack.c.bf16 %v4498_v1, %v4498_v1  ;;  %v1174_v1 = vpack.c.bf16 %v1169_v5, %v1168_v15 }
 0x153   : > { %v3762_v42 = vor.u32 %v3901_v30, %v3759_v51  ;;  %3098 = vmatpush.bf16.msra.mxu0 %v3758_v26  ;;  %v3669_v5 = vld [vmem:[%s4112_s7 + $0x2c] sm:$0xf] }
 0x154   : > { %1311 = vrot.lane.b32.xlu1 %v1306_v24, %s3971_s10  ;;  %v3666_v24 = vld [vmem:[%s4112_s7 + $0x2c] sm:$0xf]  ;;  %1223 = vrot.lane.b32.xlu0 %v1218_v34, %s3977_s11  ;;  %v758_v17 = vpop.permute.xlu2 %757  ;;  %v1178_v37 = vrot.slane %v1174_v1, 6 }
 0x155   : > { %3111 = vmatpush.bf16.msra.mxu1 %v3762_v42  ;;  %1270 = vrot.lane.b32.xlu2 %v1267_v57, %s3970_s25  ;;  %v1404_v45 = vmul.f32 %v3666_v24, %v1399_v23  ;;  %v760_v3 = vrot.slane %v758_v17, 4 }
 0x156   : > { %v1211_v49 = vld.sshfl [vmem:[#allocation1] sm:$0xff pattern:$0x75316420]  ;;  %v1212_v27 = vld.sshfl [vmem:[#allocation1 + $0x8] sm:$0xff pattern:$0x75316420] }
 0x157   : > { %v729_v40 = vpop.permute.xlu1 %728  ;;  %v1217_v2 = vpack.c.bf16 %v1212_v27, %v1211_v49  ;;  %1242 = vst [vmem:[#allocation1] ss:$2 sm:$0xff] %v1240_v48 }
 0x158   : > { %v732_v8 = vrot.slane %v729_v40, 4 }
 0x159   : > { %v1342_v44 = vld.sshfl [vmem:[#allocation1 + $0x10] sm:$0xff pattern:$0x75316420] }
 0x15a   : > { %v734_v9 = vsel %vm286_vm0, %v732_v8, %v733_v32  ;;  %1368 = vst [vmem:[#allocation1 + $0x10] ss:$2 sm:$0xff] %v3664_v61  ;;  %v1347_v16 = vpack.c.bf16 %v1342_v44, %v1342_v44  ;;  %v1442_v61 = vrot.slane %v4301_v41, 4 }
 0x15b   : > { %v735_v39 = vsel %vm414_vm8, %v729_v40, %v734_v9 }
 0x15c   : > { %737 = vst [vmem:[#allocation2 + $0x48] sm:$0xcc] %v735_v39  ;;  %v1351_v21 = vrot.slane %v1347_v16, 6  ;;  %1221 = vrot.lane.b32.xlu1 %v1217_v2, %s3977_s11  ;;  %v1447_v32 = vmul.f32 %v3669_v5, %v1442_v61  ;;  %v801_v9 = vpop.permute.xlu2 %800  ;;  %v1292_v39 = vmul.f32 %v4550_v59, %v1289_v50  ;;  %v3673_v5 = vld [vmem:[%s4112_s7 + $0x2c] sm:$0xf] }
 0x15d   : > { %1180 = vrot.lane.b32.xlu2 %v1178_v37, %s3976_s8 }
 0x15e   : > { %1354 = vrot.lane.b32.xlu0 %v1351_v21, %s3972_s20  ;;  %v4571_v8 = vld.sshfl [vmem:[#allocation1] sm:$0xff pattern:$0x75316420]  ;;  %v4573_v26 = vld.sshfl [vmem:[#allocation1 + $0x8] sm:$0xff pattern:$0x75316420]  ;;  %v1330_v21 = vsel %vm384_vm2, %v1329_v31, %v4289_v28 }
 0x15f   : > { %v756_v30 = vpop.permute.xlu1 %755  ;;  %1253 = vst [vmem:[#allocation1] ss:$2 sm:$0xff] %v4550_v59 }
 0x160   : > { %v759_v20 = vrot.slane %v756_v30, 4 }
 0x161   : > { %v1371_v51 = vld.sshfl [vmem:[#allocation1 + $0x10] sm:$0xff pattern:$0x75316420] }
 0x162   : > { %v761_v15 = vsel %vm286_vm0, %v759_v20, %v760_v3  ;;  %1409 = vst [vmem:[#allocation1 + $0x10] ss:$2 sm:$0xff] %v1404_v45  ;;  %v1376_v57 = vpack.c.bf16 %v1371_v51, %v1371_v51  ;;  %v803_v45 = vrot.slane %v801_v9, 4  ;;  %v1512_v51 = vrot.slane %v4307_v43, 4 }
 0x163   : > { %v762_v40 = vsel %vm442_vm9, %v756_v30, %v761_v15  ;;  %v3671_v30 = vld [vmem:[%s4112_s7 + $0x2c] sm:$0xf] }
 0x164   : > { %764 = vst [vmem:[#allocation2 + $0x88] sm:$0x33] %v762_v40  ;;  %1381 = vrot.lane.b32.xlu1 %v1376_v57, %s3973_s23 }
 0x165   : > { %v910_v40 = vpop.permute.xlu2 %909 }
 0x166   : > { %v1256_v48 = vld.sshfl [vmem:[#allocation1] sm:$0xff pattern:$0x75316420]  ;;  %v1257_v16 = vld.sshfl [vmem:[#allocation1 + $0x8] sm:$0xff pattern:$0x75316420] }
 0x167   : > { %v842_v34 = vpop.permute.xlu1 %841  ;;  %v1262_v3 = vpack.c.bf16 %v1257_v16, %v1256_v48  ;;  %1296 = vst [vmem:[#allocation1] ss:$2 sm:$0xff] %v1292_v39  ;;  %v913_v50 = vrot.slane %v910_v40, 4 }
 0x168   : > { %v844_v44 = vrot.slane %v842_v34, 4  ;;  %v1517_v34 = vmul.f32 %v3673_v5, %v1512_v51  ;;  %v1400_v5 = vsel %vm457_vm3, %v1399_v23, %v4314_v60 }
 0x169   : > { %v1412_v42 = vld.sshfl [vmem:[#allocation1 + $0x10] sm:$0xff pattern:$0x75316420]  ;;  %v1266_v36 = vrot.slane %v1262_v3, 6 }
 0x16a   : > { %1452 = vst [vmem:[#allocation1 + $0x10] ss:$2 sm:$0xff] %v1447_v32  ;;  %v1333_v32 = vmul.f32 %v4550_v59, %v1330_v21 }
 0x16c   : > { %1268 = vrot.lane.b32.xlu1 %v1266_v36, %s3970_s25 }
 0x16d   : > { %v840_v24 = vpop.permute.xlu0 %839 }
 0x16e   : > { %v843_v1 = vrot.slane %v840_v24, 4  ;;  %v1299_v28 = vld.sshfl [vmem:[#allocation1] sm:$0xff pattern:$0x75316420] }
 0x16f   : > { %v799_v17 = vpop.permute.xlu1 %798  ;;  %v1300_v31 = vld.sshfl [vmem:[#allocation1 + $0x8] sm:$0xff pattern:$0x75316420] }
 0x170   : > { %v845_v49 = vsel %vm286_vm0, %v843_v1, %v844_v44  ;;  %v802_v27 = vrot.slane %v799_v17, 4  ;;  %v1305_v44 = vpack.c.bf16 %v1300_v31, %v1299_v28  ;;  %1337 = vst [vmem:[#allocation1] ss:$2 sm:$0xff] %v1333_v32 }
 0x171   : > { %v846_v37 = vsel %vm530_vm11, %v840_v24, %v845_v49  ;;  %v1455_v25 = vld.sshfl [vmem:[#allocation1 + $0x10] sm:$0xff pattern:$0x75316420]  ;;  %v1417_v24 = vpack.c.bf16 %v1412_v42, %v1412_v42 }
 0x172   : > { %848 = vst [vmem:[#allocation2 + $0xc8] sm:$0x33] %v846_v37  ;;  %v804_v2 = vsel %vm286_vm0, %v802_v27, %v803_v45  ;;  %v1460_v20 = vpack.c.bf16 %v1455_v25, %v1455_v25  ;;  %1309 = vrot.lane.b32.xlu0 %v1305_v44, %s3971_s10  ;;  %v4602_v45 = vld [vmem:[%s4112_s7 + $0x24] sm:$0xff] }
 0x173   : > { %v805_v15 = vsel %vm487_vm10, %v799_v17, %v804_v2  ;;  %1479 = vst [vmem:[#allocation1 + $0x10] ss:$2 sm:$0xff] %v3671_v30  ;;  %v1421_v49 = vrot.slane %v1417_v24, 6  ;;  %v3677_v2 = vld [vmem:[%s4112_s7 + $0x38] sm:$0xf] }
 0x174   : > { %807 = vst [vmem:[#allocation2 + $0x88] sm:$0xcc] %v805_v15  ;;  %1465 = vrot.lane.b32.xlu2 %v1460_v20, %s3975_s30 }
 0x176   : > { %v912_v57 = vpop.permute.xlu0 %911 }
 0x177   : > { %v914_v9 = vrot.slane %v912_v57, 4  ;;  %v871_v16 = vpop.permute.xlu1 %870  ;;  %v1340_v37 = vld.sshfl [vmem:[#allocation1] sm:$0xff pattern:$0x75316420] }
 0x178   : > { %v873_v27 = vrot.slane %v871_v16, 4  ;;  %v1341_v25 = vld.sshfl [vmem:[#allocation1 + $0x8] sm:$0xff pattern:$0x75316420] }
 0x179   : > { %v915_v39 = vsel %vm286_vm0, %v913_v50, %v914_v9  ;;  %v1346_v42 = vpack.c.bf16 %v1341_v25, %v1340_v37  ;;  %1366 = vst [vmem:[#allocation1] ss:$2 sm:$0xff] %v4602_v45  ;;  %v1403_v50 = vmul.f32 %v4550_v59, %v1400_v5  ;;  %v3902_v5 = vld [vmem:[#allocation2 + $0xc] sm:$0xf] }
 0x17a   : > { %v1482_v1 = vld.sshfl [vmem:[#allocation1 + $0x10] sm:$0xff pattern:$0x75316420]  ;;  %v916_v48 = vsel %vm603_vm13, %v910_v40, %v915_v39  ;;  %1424 = vrot.lane.b32.xlu0 %v1421_v49, %s3974_s27  ;;  %v1600_v40 = vrot.slane %v4328_v12, 4 }
 0x17b   : > { %1522 = vst [vmem:[#allocation1 + $0x10] ss:$2 sm:$0xff] %v1517_v34  ;;  %v1487_v17 = vpack.c.bf16 %v1482_v1, %v1482_v1  ;;  %v1350_v20 = vrot.slane %v1346_v42, 6  ;;  %v3679_v34 = vld [vmem:[%s4112_s7 + $0x38] sm:$0xf] }
 0x17c   : > { %918 = vst [vmem:[#allocation2 + $0x108] sm:$0x33] %v916_v48  ;;  %v1605_v24 = vmul.f32 %v3679_v34, %v1600_v40  ;;  %v3918_v49 = vld [vmem:[#allocation2 + $0x8c] sm:$0xf]  ;;  %v3682_v42 = vld [vmem:[%s4112_s7 + $0x38] sm:$0xf] }
 0x17d   : > { %v1491_v3 = vrot.slane %v1487_v17, 6  ;;  %1352 = vrot.lane.b32.xlu2 %v1350_v20, %s3972_s20  ;;  %v3829_v17 = vld [vmem:[#allocation2 + $0x88] sm:$0xf] }
 0x17e   : > { %v869_v30 = vpop.permute.xlu0 %868 }
 0x17f   : > { %1494 = vrot.lane.b32.xlu1 %v1491_v3, %s3976_s8  ;;  %v872_v36 = vrot.slane %v869_v30, 4  ;;  %v1641_v3 = vrot.slane %v4316_v62, 4 }
 0x180   : > { %v1369_v60 = vld.sshfl [vmem:[#allocation1] sm:$0xff pattern:$0x75316420]  ;;  %v1370_v23 = vld.sshfl [vmem:[#allocation1 + $0x8] sm:$0xff pattern:$0x75316420] }
 0x181   : > { %v874_v21 = vsel %vm286_vm0, %v872_v36, %v873_v27  ;;  %v1375_v39 = vpack.c.bf16 %v1370_v23, %v1369_v60  ;;  %1407 = vst [vmem:[#allocation1] ss:$2 sm:$0xff] %v1403_v50  ;;  %v959_v36 = vpop.permute.xlu2 %958 }
 0x182   : > { %v1525_v15 = vld.sshfl [vmem:[#allocation1 + $0x10] sm:$0xff pattern:$0x75316420]  ;;  %v875_v32 = vsel %vm560_vm12, %v869_v30, %v874_v21  ;;  %v1443_v30 = vsel %vm502_vm4, %v1442_v61, %v4301_v41  ;;  %v1646_v41 = vmul.f32 %v3682_v42, %v1641_v3 }
 0x183   : > { %v2825_v57 = vld [vmem:[#allocation2 + $0x108] sm:$0x33]  ;;  %1567 = vst [vmem:[#allocation1 + $0x10] ss:$2 sm:$0xff] %v3677_v2  ;;  %v1530_v1 = vpack.c.bf16 %v1525_v15, %v1525_v15  ;;  %1379 = vrot.lane.b32.xlu0 %v1375_v39, %s3973_s23 }
 0x184   : > { %877 = vst [vmem:[#allocation2 + $0xc8] sm:$0xcc] %v875_v32  ;;  %v2944_v28 = vunpack.c.l.b16 %v2825_v57  ;;  %v2945_v31 = vunpack.c.h.b16 %v2825_v57  ;;  %v3765_v21 = vld [vmem:[#allocation2 + $0x8] sm:$0xf]  ;;  %v3767_v32 = vld [vmem:[#allocation2 + $0x48] sm:$0xf0]  ;;  %v1446_v57 = vmul.f32 %v4550_v59, %v1443_v30 }
 0x185   : > { %1535 = vrot.lane.b32.xlu2 %v1530_v1, %s3977_s11  ;;  %v3910_v15 = vld [vmem:[#allocation2 + $0x44] sm:$0xf0]  ;;  %v3770_v50 = vor.u32 %v3902_v5, %v3767_v32  ;;  %v1711_v32 = vrot.slane %v4321_v0, 4 }
 0x186   : > { %v2992_v44 = vpack.c.b16 %v2944_v28, %v2944_v28  ;;  %v2993_v9 = vpack.c.b16 %v2945_v31, %v2945_v31  ;;  %v3766_v31 = vor.u32 %v3910_v15, %v3765_v21 }
 0x188   : > { %v3050_v48 = vsel %vm3042_vm14, %v2992_v44, 0  ;;  %v3053_v16 = vsel %vm3042_vm14, %v2993_v9, 0  ;;  %v1410_v61 = vld.sshfl [vmem:[#allocation1] sm:$0xff pattern:$0x75316420]  ;;  %v961_v44 = vrot.slane %v959_v36, 4  ;;  %v935_v36 = vpack.c.bf16 %v4440_v54, %v4438_v53 }
 0x189   : > { %3122 = vmatpush.bf16.msra.mxu2 %v3050_v48  ;;  %3135 = vmatpush.bf16.msra.mxu3 %v3053_v16  ;;  %v1411_v34 = vld.sshfl [vmem:[#allocation1 + $0x8] sm:$0xff pattern:$0x75316420]  ;;  %v1000_v48 = vpop.permute.xlu2 %999 }
 0x18a   : > { %v4624_v27 = vld.sshfl [vmem:[#allocation1 + $0x10] sm:$0xff pattern:$0x75316420]  ;;  %v1416_v28 = vpack.c.bf16 %v1411_v34, %v1410_v61  ;;  %1450 = vst [vmem:[#allocation1] ss:$2 sm:$0xff] %v1446_v57 }
 0x18b   : > { %v3926_v37 = vld [vmem:[#allocation2 + $0xc4] sm:$0xf0]  ;;  %v3831_v25 = vld [vmem:[#allocation2 + $0xc8] sm:$0xf0]  ;;  %1610 = vst [vmem:[#allocation1 + $0x10] ss:$2 sm:$0xff] %v1605_v24 }
 0x18c   : > { %v3830_v2 = vor.u32 %v3926_v37, %v3829_v17  ;;  %v3834_v20 = vor.u32 %v3918_v49, %v3831_v25  ;;  %v1420_v9 = vrot.slane %v1416_v28, 6  ;;  %v1545_v17 = vld [vmem:[%s5282_s1] ss:$4 sm:$0x3]  ;;  %v3684_v25 = vld [vmem:[%s4112_s7 + $0x38] sm:$0xf] }
 0x18d   : > { %v1548_v15 = vperm.slane %v1545_v17, 1  ;;  %936 = vst [vmem:[#allocation2 + $0x10] sm:$0x33] %v935_v36  ;;  %v1547_v28 = vperm.slane %v1545_v17, 0 }
 0x18e   : > { %3123 = vmatpush.bf16.msra.mxu2 %v3830_v2  ;;  %3136 = vmatpush.bf16.msra.mxu3 %v3834_v20  ;;  %v1002_v2 = vrot.slane %v1000_v48, 4  ;;  %v1575_v20 = vpack.c.bf16 %v4624_v27, %v4624_v27 }
 0x18f   : > { %v957_v24 = vpop.permute.xlu1 %956  ;;  %1422 = vrot.lane.b32.xlu2 %v1420_v9, %s3974_s27 }
 0x190   : > { %v960_v23 = vrot.slane %v957_v24, 4  ;;  %v1579_v34 = vrot.slane %v1575_v20, 6 }
 0x191   : > { %v1453_v49 = vld.sshfl [vmem:[#allocation1] sm:$0xff pattern:$0x75316420]  ;;  %v1454_v30 = vld.sshfl [vmem:[#allocation1 + $0x8] sm:$0xff pattern:$0x75316420]  ;;  %v4657_v61 = vpop.permute.xlu2 %1042 }
 0x192   : > { %3124 = vmatpush.bf16.msra.mxu2 %v3766_v31  ;;  %3137 = vmatpush.bf16.msra.mxu3 %v3770_v50  ;;  %v1613_v60 = vld.sshfl [vmem:[#allocation1 + $0x10] sm:$0xff pattern:$0x75316420]  ;;  %v962_v1 = vsel %vm286_vm0, %v960_v23, %v961_v44  ;;  %v1459_v37 = vpack.c.bf16 %v1454_v30, %v1453_v49  ;;  %1477 = vst [vmem:[#allocation1] ss:$2 sm:$0xff] %v4602_v45  ;;  %v1549_v31 = vrot.slane %v1548_v15, 4 }
 0x193   : > { %v1618_v39 = vpack.c.bf16 %v1613_v60, %v1613_v60  ;;  %1651 = vst [vmem:[#allocation1 + $0x10] ss:$2 sm:$0xff] %v1646_v41  ;;  %v963_v16 = vsel %vm325_vm6, %v957_v24, %v962_v1  ;;  %v1513_v45 = vsel %vm575_vm5, %v1512_v51, %v4307_v43  ;;  %v3686_v41 = vld [vmem:[%s4112_s7 + $0x38] sm:$0xf]  ;;  %v4665_v24 = vld [vmem:[%s4112_s7 + $0x30] sm:$0xff] }
 0x194   : > { %965 = vst [vmem:[#allocation2 + $0x10] sm:$0xcc] %v963_v16  ;;  %1463 = vrot.lane.b32.xlu1 %v1459_v37, %s3975_s30  ;;  %v1516_v50 = vmul.f32 %v4550_v59, %v1513_v45  ;;  %v1716_v43 = vmul.f32 %v3686_v41, %v1711_v32  ;;  %v1550_v60 = vsel %vm286_vm0, %v1547_v28, %v1549_v31  ;;  %v3689_v59 = vld [vmem:[%s4112_s7 + $0x38] sm:$0xf]  ;;  %v4687_v28 = vld [vmem:[%s4112_s7 + $0x30] sm:$0xff] }
 0x195   : > { %1623 = vrot.lane.b32.xlu0 %v1618_v39, %s3971_s10  ;;  %v1754_v39 = vrot.slane %v4345_v33, 4  ;;  %v1552_v48 = vmul.f32 %v4665_v24, %v1550_v60  ;;  %v3691_v15 = vld [vmem:[%s4112_s7 + $0x38] sm:$0xf]  ;;  %v1601_v31 = vsel %vm341_vm1, %v1600_v40, %v4328_v12  ;;  %v1045_v60 = vrot.slane %v4657_v61, 4 }
 0x197   : > { %v998_v42 = vpop.permute.xlu0 %997  ;;  %v4672_v16 = vpop.permute.xlu1 %1069  ;;  %v1759_v49 = vmul.f32 %v3689_v59, %v1754_v39 }
 0x198   : > { %v1001_v21 = vrot.slane %v998_v42, 4 }
 0x199   : > { %v1480_v51 = vld.sshfl [vmem:[#allocation1] sm:$0xff pattern:$0x75316420]  ;;  %v1481_v44 = vld.sshfl [vmem:[#allocation1 + $0x8] sm:$0xff pattern:$0x75316420] }
 0x19a   : > { %v1654_v5 = vld.sshfl [vmem:[#allocation1 + $0x10] sm:$0xff pattern:$0x75316420]  ;;  %v1003_v53 = vsel %vm286_vm0, %v1001_v21, %v1002_v2  ;;  %v1486_v9 = vpack.c.bf16 %v1481_v44, %v1480_v51  ;;  %1520 = vst [vmem:[#allocation1] ss:$2 sm:$0xff] %v1516_v50  ;;  %v1824_v50 = vrot.slane %v4330_v14, 4 }
 0x19b   : > { %v1659_v57 = vpack.c.bf16 %v1654_v5, %v1654_v5  ;;  %1680 = vst [vmem:[#allocation1 + $0x10] ss:$2 sm:$0xff] %v3684_v25  ;;  %v1004_v54 = vsel %vm369_vm7, %v998_v42, %v1003_v53  ;;  %v3693_v51 = vld [vmem:[%s4112_s7 + $0x38] sm:$0xf] }
 0x19c   : > { %1006 = vst [vmem:[#allocation2 + $0x50] sm:$0x33] %v1004_v54  ;;  %1582 = vrot.lane.b32.xlu1 %v1579_v34, %s3970_s25  ;;  %v1490_v1 = vrot.slane %v1486_v9, 6  ;;  %v1111_v17 = vpop.permute.xlu2 %1110  ;;  %v1604_v9 = vmul.f32 %v4687_v28, %v1601_v31 }
 0x19d   : > { %v1663_v27 = vrot.slane %v1659_v57, 6  ;;  %v1114_v41 = vrot.slane %v1111_v17, 4 }
 0x19e   : > { %1492 = vrot.lane.b32.xlu0 %v1490_v1, %s3976_s8  ;;  %v1829_v1 = vmul.f32 %v3693_v51, %v1824_v50 }
 0x19f   : > { %1666 = vrot.lane.b32.xlu2 %v1663_v27, %s3972_s20 }
 0x1a0   : > { %v1113_v45 = vpop.permute.xlu1 %1112 }
 0x1a1   : > { %v1523_v30 = vld.sshfl [vmem:[#allocation1] sm:$0xff pattern:$0x75316420]  ;;  %v1524_v37 = vld.sshfl [vmem:[#allocation1 + $0x8] sm:$0xff pattern:$0x75316420] }
 0x1a2   : > { %v1683_v23 = vld.sshfl [vmem:[#allocation1 + $0x10] sm:$0xff pattern:$0x75316420]  ;;  %v1529_v25 = vpack.c.bf16 %v1524_v37, %v1523_v30  ;;  %1554 = vst [vmem:[#allocation1] ss:$2 sm:$0xff] %v1552_v48  ;;  %v1115_v53 = vrot.slane %v1113_v45, 4  ;;  %v1041_v44 = vpop.permute.xlu0 %1040 }
 0x1a3   : > { %1721 = vst [vmem:[#allocation1 + $0x10] ss:$2 sm:$0xff] %v1716_v43  ;;  %v1688_v42 = vpack.c.bf16 %v1683_v23, %v1683_v23  ;;  %v1044_v23 = vrot.slane %v1041_v44, 4 }
 0x1a4   : > { %1533 = vrot.lane.b32.xlu1 %v1529_v25, %s3977_s11  ;;  %v1116_v27 = vsel %vm286_vm0, %v1114_v41, %v1115_v53 }
 0x1a5   : > { %v1117_v43 = vsel %vm487_vm10, %v1111_v17, %v1116_v27  ;;  %v1046_v17 = vsel %vm286_vm0, %v1044_v23, %v1045_v60 }
 0x1a6   : > { %1693 = vrot.lane.b32.xlu0 %v1688_v42, %s3973_s23  ;;  %1119 = vst [vmem:[#allocation2 + $0x90] sm:$0xcc] %v1117_v43  ;;  %v1047_v25 = vsel %vm414_vm8, %v1041_v44, %v1046_v17  ;;  %v1912_v44 = vrot.slane %v4336_v18, 4 }
 0x1a7   : > { %v1152_v21 = vpop.permute.xlu2 %1151  ;;  %1049 = vst [vmem:[#allocation2 + $0x50] sm:$0xcc] %v1047_v25 }
 0x1a9   : > { %v4680_v5 = vld.sshfl [vmem:[#allocation1] sm:$0xff pattern:$0x75316420]  ;;  %v4682_v57 = vld.sshfl [vmem:[#allocation1 + $0x8] sm:$0xff pattern:$0x75316420] }
 0x1aa   : > { %v1724_v36 = vld.sshfl [vmem:[#allocation1 + $0x10] sm:$0xff pattern:$0x75316420]  ;;  %1565 = vst [vmem:[#allocation1] ss:$2 sm:$0xff] %v4665_v24 }
 0x1ab   : > { %v1729_v2 = vpack.c.bf16 %v1724_v36, %v1724_v36  ;;  %1764 = vst [vmem:[#allocation1 + $0x10] ss:$2 sm:$0xff] %v1759_v49  ;;  %v1155_v49 = vrot.slane %v1152_v21, 4 }
 0x1ad   : > { %v1733_v20 = vrot.slane %v1729_v2, 6  ;;  %v1642_v2 = vsel %vm384_vm2, %v1641_v3, %v4316_v62 }
 0x1ae   : > { %v1154_v59 = vpop.permute.xlu1 %1153  ;;  %v1068_v41 = vpop.permute.xlu0 %1067  ;;  %v1645_v53 = vmul.f32 %v4687_v28, %v1642_v2  ;;  %v1953_v2 = vrot.slane %v4358_v55, 4 }
 0x1af   : > { %1736 = vrot.lane.b32.xlu2 %v1733_v20, %s3974_s27  ;;  %v4701_v48 = vpop.permute.xlu2 %1270  ;;  %v1156_v30 = vrot.slane %v1154_v59, 4 }
 0x1b1   : > { %v1568_v12 = vld.sshfl [vmem:[#allocation1] sm:$0xff pattern:$0x75316420]  ;;  %v1569_v40 = vld.sshfl [vmem:[#allocation1 + $0x8] sm:$0xff pattern:$0x75316420]  ;;  %v1157_v61 = vsel %vm286_vm0, %v1155_v49, %v1156_v30 }
 0x1b2   : > { %v1767_v54 = vld.sshfl [vmem:[#allocation1 + $0x10] sm:$0xff pattern:$0x75316420]  ;;  %1608 = vst [vmem:[#allocation1] ss:$2 sm:$0xff] %v1604_v9  ;;  %v1574_v37 = vpack.c.bf16 %v1569_v40, %v1568_v12  ;;  %v1158_v20 = vsel %vm530_vm11, %v1152_v21, %v1157_v61 }
 0x1b3   : > { %v1772_v34 = vpack.c.bf16 %v1767_v54, %v1767_v54  ;;  %1791 = vst [vmem:[#allocation1 + $0x10] ss:$2 sm:$0xff] %v3691_v15  ;;  %v1072_v15 = vrot.slane %v4672_v16, 4  ;;  %v1071_v54 = vrot.slane %v1068_v41, 4  ;;  %v3697_v21 = vld [vmem:[%s4112_s7 + $0x44] sm:$0xf] }
 0x1b4   : > { %v1578_v36 = vrot.slane %v1574_v37, 6  ;;  %1160 = vst [vmem:[#allocation2 + $0xd0] sm:$0x33] %v1158_v20  ;;  %v3699_v9 = vld [vmem:[%s4112_s7 + $0x44] sm:$0xf] }
 0x1b5   : > { %1777 = vrot.lane.b32.xlu1 %v1772_v34, %s3975_s30  ;;  %v1073_v31 = vsel %vm286_vm0, %v1071_v54, %v1072_v15  ;;  %v1917_v12 = vmul.f32 %v3699_v9, %v1912_v44  ;;  %v3702_v15 = vld [vmem:[%s4112_s7 + $0x44] sm:$0xf]  ;;  %v1247_v9 = vpack.c.bf16 %v4573_v26, %v4571_v8 }
 0x1b6   : > { %1580 = vrot.lane.b32.xlu0 %v1578_v36, %s3970_s25  ;;  %v1074_v43 = vsel %vm442_vm9, %v1068_v41, %v1073_v31  ;;  %v1712_v36 = vsel %vm457_vm3, %v1711_v32, %v4321_v0 }
 0x1b7   : > { %v1181_v16 = vpop.permute.xlu2 %1180  ;;  %1076 = vst [vmem:[#allocation2 + $0x90] sm:$0x33] %v1074_v43  ;;  %v1715_v41 = vmul.f32 %v4687_v28, %v1712_v36 }
 0x1b8   : > { %v1184_v60 = vrot.slane %v1181_v16, 4  ;;  %1248 = vst [vmem:[#allocation2 + $0x18] sm:$0x33] %v1247_v9  ;;  %v1273_v9 = vrot.slane %v4701_v48, 4 }
 0x1b9   : > { %v1611_v27 = vld.sshfl [vmem:[#allocation1] sm:$0xff pattern:$0x75316420]  ;;  %v1612_v34 = vld.sshfl [vmem:[#allocation1 + $0x8] sm:$0xff pattern:$0x75316420] }
 0x1ba   : > { %v1794_v42 = vld.sshfl [vmem:[#allocation1 + $0x10] sm:$0xff pattern:$0x75316420]  ;;  %v1617_v62 = vpack.c.bf16 %v1612_v34, %v1611_v27  ;;  %1649 = vst [vmem:[#allocation1] ss:$2 sm:$0xff] %v1645_v53  ;;  %v1958_v53 = vmul.f32 %v3702_v15, %v1953_v2 }
 0x1bb   : > { %1834 = vst [vmem:[#allocation1 + $0x10] ss:$2 sm:$0xff] %v1829_v1  ;;  %v1799_v45 = vpack.c.bf16 %v1794_v42, %v1794_v42 }
 0x1bc   : > { %1621 = vrot.lane.b32.xlu2 %v1617_v62, %s3971_s10 }
 0x1bd   : > { %v1803_v3 = vrot.slane %v1799_v45, 6 }
 0x1be   : > { %v1183_v23 = vpop.permute.xlu0 %1182 }
 0x1bf   : > { %1806 = vrot.lane.b32.xlu0 %v1803_v3, %s3976_s8  ;;  %v1185_v1 = vrot.slane %v1183_v23, 4  ;;  %v1755_v3 = vsel %vm502_vm4, %v1754_v39, %v4345_v33 }
 0x1c1   : > { %v1652_v40 = vld.sshfl [vmem:[#allocation1] sm:$0xff pattern:$0x75316420]  ;;  %v1653_v49 = vld.sshfl [vmem:[#allocation1 + $0x8] sm:$0xff pattern:$0x75316420]  ;;  %v1186_v17 = vsel %vm286_vm0, %v1184_v60, %v1185_v1  ;;  %v1758_v60 = vmul.f32 %v4687_v28, %v1755_v3 }
 0x1c2   : > { %v1837_v51 = vld.sshfl [vmem:[#allocation1 + $0x10] sm:$0xff pattern:$0x75316420]  ;;  %v1658_v30 = vpack.c.bf16 %v1653_v49, %v1652_v40  ;;  %1678 = vst [vmem:[#allocation1] ss:$2 sm:$0xff] %v4665_v24  ;;  %v1187_v37 = vsel %vm560_vm12, %v1181_v16, %v1186_v17  ;;  %v2023_v17 = vrot.slane %v4360_v56, 4 }
 0x1c3   : > { %1879 = vst [vmem:[#allocation1 + $0x10] ss:$2 sm:$0xff] %v3697_v21  ;;  %v1842_v59 = vpack.c.bf16 %v1837_v51, %v1837_v51  ;;  %v3704_v40 = vld [vmem:[%s4112_s7 + $0x44] sm:$0xf] }
 0x1c4   : > { %1189 = vst [vmem:[#allocation2 + $0xd0] sm:$0xcc] %v1187_v37  ;;  %v1662_v42 = vrot.slane %v1658_v30, 6  ;;  %v3706_v30 = vld [vmem:[%s4112_s7 + $0x44] sm:$0xf] }
 0x1c5   : > { %1847 = vrot.lane.b32.xlu2 %v1842_v59, %s3977_s11  ;;  %v2028_v36 = vmul.f32 %v3706_v30, %v2023_v17 }
 0x1c6   : > { %v4726_v25 = vpop.permute.xlu1 %1311  ;;  %1664 = vrot.lane.b32.xlu1 %v1662_v42, %s3972_s20  ;;  %v1224_v0 = vpop.permute.xlu0 %1223 }
 0x1c7   : > { %v1226_v21 = vrot.slane %v1224_v0, 4 }
 0x1c9   : > { %v1681_v54 = vld.sshfl [vmem:[#allocation1] sm:$0xff pattern:$0x75316420]  ;;  %v1682_v27 = vld.sshfl [vmem:[#allocation1 + $0x8] sm:$0xff pattern:$0x75316420] }
 0x1ca   : > { %v1882_v61 = vld.sshfl [vmem:[#allocation1 + $0x10] sm:$0xff pattern:$0x75316420]  ;;  %1719 = vst [vmem:[#allocation1] ss:$2 sm:$0xff] %v1715_v41  ;;  %v1687_v34 = vpack.c.bf16 %v1682_v27, %v1681_v54 }
 0x1cb   : > { %v1887_v20 = vpack.c.bf16 %v1882_v61, %v1882_v61  ;;  %1922 = vst [vmem:[#allocation1 + $0x10] ss:$2 sm:$0xff] %v1917_v12 }
 0x1cd   : > { %v1891_v45 = vrot.slane %v1887_v20, 6  ;;  %1691 = vrot.lane.b32.xlu2 %v1687_v34, %s3973_s23 }
 0x1ce   : > { %v1222_v31 = vpop.permute.xlu1 %1221  ;;  %v4741_v62 = vpop.permute.xlu2 %1465 }
 0x1cf   : > { %1894 = vrot.lane.b32.xlu0 %v1891_v45, %s3970_s25  ;;  %v1225_v43 = vrot.slane %v1222_v31, 4  ;;  %v1857_v45 = vld [vmem:[%s5282_s1] ss:$4 sm:$0x3] }
 0x1d0   : > { %v1355_v33 = vpop.permute.xlu0 %1354 }
 0x1d1   : > { %v1227_v16 = vsel %vm286_vm0, %v1225_v43, %v1226_v21  ;;  %v1722_v1 = vld.sshfl [vmem:[#allocation1] sm:$0xff pattern:$0x75316420]  ;;  %v1723_v59 = vld.sshfl [vmem:[#allocation1 + $0x8] sm:$0xff pattern:$0x75316420] }
 0x1d2   : > { %v1925_v32 = vld.sshfl [vmem:[#allocation1 + $0x10] sm:$0xff pattern:$0x75316420]  ;;  %v1228_v23 = vsel %vm603_vm13, %v1222_v31, %v1227_v16  ;;  %v1728_v12 = vpack.c.bf16 %v1723_v59, %v1722_v1  ;;  %1762 = vst [vmem:[#allocation1] ss:$2 sm:$0xff] %v1758_v60  ;;  %v1357_v37 = vrot.slane %v1355_v33, 4  ;;  %v1825_v16 = vsel %vm575_vm5, %v1824_v50, %v4330_v14 }
 0x1d3   : > { %1963 = vst [vmem:[#allocation1 + $0x10] ss:$2 sm:$0xff] %v1958_v53  ;;  %v1930_v51 = vpack.c.bf16 %v1925_v32, %v1925_v32  ;;  %v2066_v31 = vrot.slane %v4373_v19, 4  ;;  %v3927_v1 = vld [vmem:[#allocation2 + $0xcc] sm:$0xf0]  ;;  %v1828_v50 = vmul.f32 %v4687_v28, %v1825_v16 }
 0x1d4   : > { %1230 = vst [vmem:[#allocation2 + $0x110] sm:$0x33] %v1228_v23  ;;  %v1732_v39 = vrot.slane %v1728_v12, 6  ;;  %v3839_v59 = vld [vmem:[#allocation2 + $0xd0] sm:$0xf0] }
 0x1d5   : > { %1935 = vrot.lane.b32.xlu2 %v1930_v51, %s3971_s10  ;;  %v3709_v51 = vld [vmem:[%s4112_s7 + $0x44] sm:$0xf]  ;;  %v3773_v14 = vld [vmem:[#allocation2 + $0x10] sm:$0xf] }
 0x1d6   : > { %v4755_v8 = vpop.permute.xlu1 %1381  ;;  %1734 = vrot.lane.b32.xlu1 %v1732_v39, %s3974_s27  ;;  %v2071_v48 = vmul.f32 %v3709_v51, %v2066_v31  ;;  %v3837_v39 = vld [vmem:[#allocation2 + $0x90] sm:$0xf] }
 0x1d7   : > { %v1353_v42 = vpop.permute.xlu2 %1352  ;;  %v3838_v30 = vor.u32 %v3927_v1, %v3837_v39 }
 0x1d8   : > { %v1356_v61 = vrot.slane %v1353_v42, 4 }
 0x1d9   : > { %v1765_v41 = vld.sshfl [vmem:[#allocation1] sm:$0xff pattern:$0x75316420]  ;;  %v1766_v53 = vld.sshfl [vmem:[#allocation1 + $0x8] sm:$0xff pattern:$0x75316420] }
 0x1da   : > { %v1966_v49 = vld.sshfl [vmem:[#allocation1 + $0x10] sm:$0xff pattern:$0x75316420]  ;;  %v1358_v54 = vsel %vm286_vm0, %v1356_v61, %v1357_v37  ;;  %v1771_v0 = vpack.c.bf16 %v1766_v53, %v1765_v41  ;;  %1789 = vst [vmem:[#allocation1] ss:$2 sm:$0xff] %v4665_v24  ;;  %v1860_v24 = vperm.slane %v1857_v45, 1 }
 0x1db   : > { %v1971_v26 = vpack.c.bf16 %v1966_v49, %v1966_v49  ;;  %1992 = vst [vmem:[#allocation1 + $0x10] ss:$2 sm:$0xff] %v3704_v40  ;;  %v2826_v15 = vld [vmem:[#allocation2 + $0x110] sm:$0x33]  ;;  %v1359_v32 = vsel %vm414_vm8, %v1353_v42, %v1358_v54 }
 0x1dc   : > { %v2946_v27 = vunpack.c.l.b16 %v2826_v15  ;;  %v2947_v34 = vunpack.c.h.b16 %v2826_v15  ;;  %1361 = vst [vmem:[#allocation2 + $0x58] sm:$0xcc] %v1359_v32  ;;  %1775 = vrot.lane.b32.xlu0 %v1771_v0, %s3975_s30  ;;  %v3919_v49 = vld [vmem:[#allocation2 + $0x94] sm:$0xf]  ;;  %v3911_v42 = vld [vmem:[#allocation2 + $0x4c] sm:$0xf0] }
 0x1dd   : > { %v1975_v20 = vrot.slane %v1971_v26, 6  ;;  %v3903_v26 = vld [vmem:[#allocation2 + $0x14] sm:$0xf]  ;;  %v3842_v37 = vor.u32 %v3919_v49, %v3839_v59  ;;  %v3774_v0 = vor.u32 %v3911_v42, %v3773_v14  ;;  %v3711_v59 = vld [vmem:[%s4112_s7 + $0x44] sm:$0xf]  ;;  %v2136_v42 = vrot.slane %v4371_v11, 4 }
 0x1de   : > { %v2994_v3 = vpack.c.b16 %v2946_v27, %v2946_v27  ;;  %v2995_v21 = vpack.c.b16 %v2947_v34, %v2947_v34  ;;  %v1269_v40 = vpop.permute.xlu1 %1268  ;;  %v3775_v61 = vld [vmem:[#allocation2 + $0x50] sm:$0xf0]  ;;  %v1314_v34 = vrot.slane %v4726_v25, 4 }
 0x1df   : > { %1978 = vrot.lane.b32.xlu1 %v1975_v20, %s3972_s20  ;;  %v4778_v12 = vpop.permute.xlu2 %1535  ;;  %v1272_v33 = vrot.slane %v1269_v40, 4  ;;  %v1861_v20 = vrot.slane %v1860_v24, 4 }
 0x1e0   : > { %v3056_v60 = vsel %vm3042_vm14, %v2994_v3, 0  ;;  %v3059_v23 = vsel %vm3042_vm14, %v2995_v21, 0  ;;  %v4787_v21 = vld [vmem:[%s4112_s7 + $0x3c] sm:$0xff] }
 0x1e1   : > { %3148 = vmatpush.bf16.msrb.mxu0 %v3056_v60  ;;  %3161 = vmatpush.bf16.msrb.mxu1 %v3059_v23  ;;  %v1792_v15 = vld.sshfl [vmem:[#allocation1] sm:$0xff pattern:$0x75316420]  ;;  %v1793_v41 = vld.sshfl [vmem:[#allocation1 + $0x8] sm:$0xff pattern:$0x75316420]  ;;  %v1274_v53 = vsel %vm286_vm0, %v1272_v33, %v1273_v9 }
 0x1e2   : > { %v1995_v43 = vld.sshfl [vmem:[#allocation1 + $0x10] sm:$0xff pattern:$0x75316420]  ;;  %1832 = vst [vmem:[#allocation1] ss:$2 sm:$0xff] %v1828_v50  ;;  %v1275_v28 = vsel %vm325_vm6, %v1269_v40, %v1274_v53  ;;  %v1798_v27 = vpack.c.bf16 %v1793_v41, %v1792_v15  ;;  %v1384_v41 = vrot.slane %v4755_v8, 4 }
 0x1e3   : > { %2033 = vst [vmem:[#allocation1 + $0x10] ss:$2 sm:$0xff] %v2028_v36  ;;  %v1859_v36 = vperm.slane %v1857_v45, 0  ;;  %v2000_v54 = vpack.c.bf16 %v1995_v43, %v1995_v43  ;;  %v3778_v45 = vor.u32 %v3903_v26, %v3775_v61 }
 0x1e4   : > { %1277 = vst [vmem:[#allocation2 + $0x18] sm:$0xcc] %v1275_v28  ;;  %v1310_v3 = vpop.permute.xlu0 %1309  ;;  %v1802_v51 = vrot.slane %v1798_v27, 6  ;;  %v4812_v27 = vld [vmem:[%s4112_s7 + $0x3c] sm:$0xff] }
 0x1e5   : > { %3149 = vmatpush.bf16.msrb.mxu0 %v3838_v30  ;;  %3162 = vmatpush.bf16.msrb.mxu1 %v3842_v37  ;;  %v1862_v16 = vsel %vm286_vm0, %v1859_v36, %v1861_v20  ;;  %v1313_v9 = vrot.slane %v1310_v3, 4  ;;  %v3713_v30 = vld [vmem:[%s4112_s7 + $0x44] sm:$0xf] }
 0x1e6   : > { %v1864_v60 = vmul.f32 %v4787_v21, %v1862_v16  ;;  %1804 = vrot.lane.b32.xlu2 %v1802_v51, %s3976_s8  ;;  %v2141_v36 = vmul.f32 %v3713_v30, %v2136_v42 }
 0x1e7   : > { %2005 = vrot.lane.b32.xlu1 %v2000_v54, %s3973_s23  ;;  %v1315_v25 = vsel %vm286_vm0, %v1313_v9, %v1314_v34  ;;  %v1913_v34 = vsel %vm341_vm1, %v1912_v44, %v4336_v18  ;;  %v1954_v18 = vsel %vm384_vm2, %v1953_v2, %v4358_v55  ;;  %v3719_v44 = vld [vmem:[%s4112_s7 + $0x50] sm:$0xf] }
 0x1e8   : > { %v1316_v23 = vsel %vm369_vm7, %v1310_v3, %v1315_v25  ;;  %v1916_v8 = vmul.f32 %v4812_v27, %v1913_v34  ;;  %v3717_v3 = vld [vmem:[%s4112_s7 + $0x50] sm:$0xf] }
 0x1e9   : > { %3150 = vmatpush.bf16.msrb.mxu0 %v3774_v0  ;;  %3163 = vmatpush.bf16.msrb.mxu1 %v3778_v45  ;;  %v1423_v1 = vpop.permute.xlu2 %1422  ;;  %1318 = vst [vmem:[#allocation2 + $0x58] sm:$0x33] %v1316_v23  ;;  %v1835_v40 = vld.sshfl [vmem:[#allocation1] sm:$0xff pattern:$0x75316420]  ;;  %v1957_v23 = vmul.f32 %v4812_v27, %v1954_v18 }
 0x1ea   : > { %v2036_v32 = vld.sshfl [vmem:[#allocation1 + $0x10] sm:$0xff pattern:$0x75316420]  ;;  %v1836_v14 = vld.sshfl [vmem:[#allocation1 + $0x8] sm:$0xff pattern:$0x75316420] }
 0x1eb   : > { %v2041_v43 = vpack.c.bf16 %v2036_v32, %v2036_v32  ;;  %2076 = vst [vmem:[#allocation1 + $0x10] ss:$2 sm:$0xff] %v2071_v48  ;;  %v1426_v50 = vrot.slane %v1423_v1, 4  ;;  %v1841_v48 = vpack.c.bf16 %v1836_v14, %v1835_v40 }
 0x1ec   : > { %1866 = vst [vmem:[#allocation1] ss:$2 sm:$0xff] %v1864_v60  ;;  %v1425_v39 = vpop.permute.xlu0 %1424  ;;  %v2224_v60 = vrot.slane %v4363_v58, 4 }
 0x1ed   : > { %v2045_v24 = vrot.slane %v2041_v43, 6  ;;  %v1427_v26 = vrot.slane %v1425_v39, 4 }
 0x1ef   : > { %2048 = vrot.lane.b32.xlu0 %v2045_v24, %s3974_s27  ;;  %1845 = vrot.lane.b32.xlu1 %v1841_v48, %s3977_s11  ;;  %v1428_v37 = vsel %vm286_vm0, %v1426_v50, %v1427_v26  ;;  %v1468_v48 = vrot.slane %v4741_v62, 4  ;;  %v3722_v26 = vld [vmem:[%s4112_s7 + $0x50] sm:$0xf] }
 0x1f0   : > { %v1429_v61 = vsel %vm487_vm10, %v1423_v1, %v1428_v37  ;;  %v2265_v37 = vrot.slane %v4377_v22, 4 }
 0x1f1   : > { %1431 = vst [vmem:[#allocation2 + $0x98] sm:$0xcc] %v1429_v61  ;;  %v1495_v51 = vpop.permute.xlu1 %1494 }
 0x1f2   : > { %v2079_v33 = vld.sshfl [vmem:[#allocation1 + $0x10] sm:$0xff pattern:$0x75316420] }
 0x1f3   : > { %v2084_v49 = vpack.c.bf16 %v2079_v33, %v2079_v33  ;;  %2103 = vst [vmem:[#allocation1 + $0x10] ss:$2 sm:$0xff] %v3711_v59  ;;  %v4805_v20 = vld.sshfl [vmem:[#allocation1] sm:$0xff pattern:$0x75316420]  ;;  %v2229_v59 = vmul.f32 %v3719_v44, %v2224_v60 }
 0x1f4   : > { %v4807_v15 = vld.sshfl [vmem:[#allocation1 + $0x8] sm:$0xff pattern:$0x75316420] }
 0x1f5   : > { %2089 = vrot.lane.b32.xlu2 %v2084_v49, %s3975_s30  ;;  %1877 = vst [vmem:[#allocation1] ss:$2 sm:$0xff] %v4787_v21  ;;  %v1380_v54 = vpop.permute.xlu0 %1379 }
 0x1f6   : > { %v1383_v28 = vrot.slane %v1380_v54, 4 }
 0x1f8   : > { %v1385_v0 = vsel %vm286_vm0, %v1383_v28, %v1384_v41  ;;  %v2270_v41 = vmul.f32 %v3722_v26, %v2265_v37 }
 0x1f9   : > { %v1386_v32 = vsel %vm442_vm9, %v1380_v54, %v1385_v0  ;;  %v4831_v1 = vpop.permute.xlu2 %1666 }
 0x1fa   : > { %v2106_v53 = vld.sshfl [vmem:[#allocation1 + $0x10] sm:$0xff pattern:$0x75316420]  ;;  %1388 = vst [vmem:[#allocation2 + $0x98] sm:$0x33] %v1386_v32 }
 0x1fb   : > { %2146 = vst [vmem:[#allocation1 + $0x10] ss:$2 sm:$0xff] %v2141_v36  ;;  %v2111_v49 = vpack.c.bf16 %v2106_v53, %v2106_v53 }
 0x1fc   : > { %v1880_v45 = vld.sshfl [vmem:[#allocation1] sm:$0xff pattern:$0x75316420]  ;;  %v1881_v16 = vld.sshfl [vmem:[#allocation1 + $0x8] sm:$0xff pattern:$0x75316420] }
 0x1fd   : > { %1920 = vst [vmem:[#allocation1] ss:$2 sm:$0xff] %v1916_v8  ;;  %v1886_v9 = vpack.c.bf16 %v1881_v16, %v1880_v45  ;;  %v2115_v36 = vrot.slane %v2111_v49, 6  ;;  %v2024_v8 = vsel %vm457_vm3, %v2023_v17, %v4360_v56  ;;  %v2335_v49 = vrot.slane %v4386_v38, 4 }
 0x1ff   : > { %v1890_v25 = vrot.slane %v1886_v9, 6  ;;  %v3724_v9 = vld [vmem:[%s4112_s7 + $0x50] sm:$0xf] }
 0x201   : > { %1892 = vrot.lane.b32.xlu2 %v1890_v25, %s3970_s25 }
 0x202   : > { %v2149_v43 = vld.sshfl [vmem:[#allocation1 + $0x10] sm:$0xff pattern:$0x75316420] }
 0x203   : > { %v2154_v24 = vpack.c.bf16 %v2149_v43, %v2149_v43  ;;  %2191 = vst [vmem:[#allocation1 + $0x10] ss:$2 sm:$0xff] %v3717_v3  ;;  %v1497_v3 = vrot.slane %v1495_v51, 4  ;;  %v2027_v43 = vmul.f32 %v4812_v27, %v2024_v8 }
 0x204   : > { %v1923_v40 = vld.sshfl [vmem:[#allocation1] sm:$0xff pattern:$0x75316420]  ;;  %v1924_v14 = vld.sshfl [vmem:[#allocation1 + $0x8] sm:$0xff pattern:$0x75316420] }
 0x205   : > { %2159 = vrot.lane.b32.xlu0 %v2154_v24, %s3977_s11  ;;  %v1929_v50 = vpack.c.bf16 %v1924_v14, %v1923_v40  ;;  %1961 = vst [vmem:[#allocation1] ss:$2 sm:$0xff] %v1957_v23  ;;  %v1538_v40 = vrot.slane %v4778_v12, 4 }
 0x206   : > { %v1464_v2 = vpop.permute.xlu1 %1463 }
 0x207   : > { %1933 = vrot.lane.b32.xlu1 %v1929_v50, %s3971_s10  ;;  %v1467_v33 = vrot.slane %v1464_v2, 4  ;;  %v1624_v39 = vpop.permute.xlu0 %1623 }
 0x208   : > { %v1626_v56 = vrot.slane %v1624_v39, 4 }
 0x209   : > { %v1469_v30 = vsel %vm286_vm0, %v1467_v33, %v1468_v48  ;;  %v4847_v34 = vpop.permute.xlu2 %1736  ;;  %v3726_v48 = vld [vmem:[%s4112_s7 + $0x50] sm:$0xf] }
 0x20a   : > { %v4835_v55 = vld.sshfl [vmem:[#allocation1 + $0x10] sm:$0xff pattern:$0x75316420]  ;;  %v1470_v61 = vsel %vm530_vm11, %v1464_v2, %v1469_v30  ;;  %v2067_v2 = vsel %vm502_vm4, %v2066_v31, %v4373_v19  ;;  %v2340_v19 = vmul.f32 %v3726_v48, %v2335_v49 }
 0x20b   : > { %2234 = vst [vmem:[#allocation1 + $0x10] ss:$2 sm:$0xff] %v2229_v59  ;;  %v2070_v30 = vmul.f32 %v4812_v27, %v2067_v2 }
 0x20c   : > { %1472 = vst [vmem:[#allocation2 + $0xd8] sm:$0x33] %v1470_v61  ;;  %v1964_v54 = vld.sshfl [vmem:[#allocation1] sm:$0xff pattern:$0x75316420] }
 0x20d   : > { %v1965_v62 = vld.sshfl [vmem:[#allocation1 + $0x8] sm:$0xff pattern:$0x75316420] }
 0x20e   : > { %v1970_v53 = vpack.c.bf16 %v1965_v62, %v1964_v54  ;;  %1990 = vst [vmem:[#allocation1] ss:$2 sm:$0xff] %v4787_v21  ;;  %v4850_v0 = vpop.permute.xlu1 %1582 }
 0x20f   : > { %2118 = vrot.lane.b32.xlu1 %v2115_v36, %s3976_s8 }
 0x210   : > { %v1974_v32 = vrot.slane %v1970_v53, 6  ;;  %v1493_v45 = vpop.permute.xlu0 %1492  ;;  %v3729_v53 = vld [vmem:[%s4112_s7 + $0x50] sm:$0xf] }
 0x211   : > { %v1496_v16 = vrot.slane %v1493_v45, 4 }
 0x212   : > { %v4845_v28 = vld.sshfl [vmem:[#allocation1 + $0x10] sm:$0xff pattern:$0x75316420]  ;;  %1976 = vrot.lane.b32.xlu0 %v1974_v32, %s3972_s20  ;;  %v2378_v32 = vrot.slane %v4406_v7, 4 }
 0x213   : > { %2275 = vst [vmem:[#allocation1 + $0x10] ss:$2 sm:$0xff] %v2270_v41  ;;  %v1498_v24 = vsel %vm286_vm0, %v1496_v16, %v1497_v3  ;;  %v2169_v16 = vld [vmem:[%s5282_s1] ss:$4 sm:$0x3] }
 0x214   : > { %v1499_v44 = vsel %vm560_vm12, %v1493_v45, %v1498_v24 }
 0x215   : > { %v1993_v25 = vld.sshfl [vmem:[#allocation1] sm:$0xff pattern:$0x75316420]  ;;  %v1994_v18 = vld.sshfl [vmem:[#allocation1 + $0x8] sm:$0xff pattern:$0x75316420] }
 0x216   : > { %v1999_v23 = vpack.c.bf16 %v1994_v18, %v1993_v25  ;;  %2031 = vst [vmem:[#allocation1] ss:$2 sm:$0xff] %v2027_v43  ;;  %v1534_v17 = vpop.permute.xlu1 %1533  ;;  %v1622_v51 = vpop.permute.xlu2 %1621  ;;  %v1559_v43 = vpack.c.bf16 %v4682_v57, %v4680_v5 }
 0x217   : > { %1501 = vst [vmem:[#allocation2 + $0xd8] sm:$0xcc] %v1499_v44  ;;  %v1537_v14 = vrot.slane %v1534_v17, 4  ;;  %v1625_v50 = vrot.slane %v1622_v51, 4 }
 0x218   : > { %v4879_v54 = vpop.permute.xlu0 %1693  ;;  %1560 = vst [vmem:[#allocation2 + $0x20] sm:$0x33] %v1559_v43 }
 0x219   : > { %v1539_v33 = vsel %vm286_vm0, %v1537_v14, %v1538_v40  ;;  %v1627_v39 = vsel %vm286_vm0, %v1625_v50, %v1626_v56  ;;  %v1585_v40 = vrot.slane %v4850_v0, 4  ;;  %v2172_v50 = vperm.slane %v2169_v16, 1 }
 0x21a   : > { %v4862_v59 = vld.sshfl [vmem:[#allocation1 + $0x10] sm:$0xff pattern:$0x75316420]  ;;  %2003 = vrot.lane.b32.xlu0 %v1999_v23, %s3973_s23  ;;  %v1540_v26 = vsel %vm603_vm13, %v1534_v17, %v1539_v33  ;;  %v1628_v12 = vsel %vm369_vm7, %v1622_v51, %v1627_v39  ;;  %v3845_v33 = vld [vmem:[#allocation2 + $0x98] sm:$0xf] }
 0x21b   : > { %2304 = vst [vmem:[#allocation1 + $0x10] ss:$2 sm:$0xff] %v3724_v9  ;;  %v2383_v9 = vmul.f32 %v3729_v53, %v2378_v32  ;;  %v3920_v39 = vld [vmem:[#allocation2 + $0x9c] sm:$0xf] }
 0x21c   : > { %1542 = vst [vmem:[#allocation2 + $0x118] sm:$0x33] %v1540_v26  ;;  %v3781_v26 = vld [vmem:[#allocation2 + $0x18] sm:$0xf]  ;;  %v3783_v53 = vld [vmem:[#allocation2 + $0x58] sm:$0xf0] }
 0x21d   : > { %v2034_v61 = vld.sshfl [vmem:[#allocation1] sm:$0xff pattern:$0x75316420]  ;;  %1630 = vst [vmem:[#allocation2 + $0x60] sm:$0x33] %v1628_v12 }
 0x21e   : > { %v2035_v31 = vld.sshfl [vmem:[#allocation1 + $0x8] sm:$0xff pattern:$0x75316420]  ;;  %v3928_v14 = vld [vmem:[#allocation2 + $0xd4] sm:$0xf0] }
 0x21f   : > { %v2040_v36 = vpack.c.bf16 %v2035_v31, %v2034_v61  ;;  %2074 = vst [vmem:[#allocation1] ss:$2 sm:$0xff] %v2070_v30  ;;  %v4892_v17 = vpop.permute.xlu2 %1847  ;;  %v3847_v2 = vld [vmem:[#allocation2 + $0xd8] sm:$0xf0]  ;;  %v3846_v30 = vor.u32 %v3928_v14, %v3845_v33  ;;  %v3733_v14 = vld [vmem:[%s4112_s7 + $0x50] sm:$0xf] }
 0x220   : > { %v3850_v61 = vor.u32 %v3920_v39, %v3847_v2  ;;  %v3904_v31 = vld [vmem:[#allocation2 + $0x1c] sm:$0xf] }
 0x221   : > { %v2044_v62 = vrot.slane %v2040_v36, 6  ;;  %v2171_v36 = vperm.slane %v2169_v16, 0  ;;  %v1696_v16 = vrot.slane %v4879_v54, 4 }
 0x222   : > { %v2307_v41 = vld.sshfl [vmem:[#allocation1 + $0x10] sm:$0xff pattern:$0x75316420] }
 0x223   : > { %2345 = vst [vmem:[#allocation1 + $0x10] ss:$2 sm:$0xff] %v2340_v19  ;;  %2046 = vrot.lane.b32.xlu2 %v2044_v62, %s3974_s27  ;;  %v2827_v8 = vld [vmem:[#allocation2 + $0x118] sm:$0x33]  ;;  %v2312_v56 = vpack.c.bf16 %v2307_v41, %v2307_v41  ;;  %v2173_v41 = vrot.slane %v2172_v50, 4 }
 0x224   : > { %v2948_v3 = vunpack.c.l.b16 %v2827_v8  ;;  %v2949_v45 = vunpack.c.h.b16 %v2827_v8  ;;  %v3912_v19 = vld [vmem:[#allocation2 + $0x54] sm:$0xf0]  ;;  %v3731_v8 = vld [vmem:[%s4112_s7 + $0x50] sm:$0xf] }
 0x226   : > { %v2077_v24 = vld.sshfl [vmem:[#allocation1] sm:$0xff pattern:$0x75316420]  ;;  %v2078_v25 = vld.sshfl [vmem:[#allocation1 + $0x8] sm:$0xff pattern:$0x75316420]  ;;  %v2996_v44 = vpack.c.b16 %v2948_v3, %v2948_v3  ;;  %v2997_v23 = vpack.c.b16 %v2949_v45, %v2949_v45 }
 0x227   : > { %v2083_v18 = vpack.c.bf16 %v2078_v25, %v2077_v24  ;;  %2101 = vst [vmem:[#allocation1] ss:$2 sm:$0xff] %v4787_v21  ;;  %v2137_v21 = vsel %vm575_vm5, %v2136_v42, %v4371_v11  ;;  %v4908_v25 = vpop.permute.xlu1 %1777 }
 0x228   : > { %v3062_v5 = vsel %vm3042_vm14, %v2996_v44, 0  ;;  %v3065_v57 = vsel %vm3042_vm14, %v2997_v23, 0  ;;  %v1581_v0 = vpop.permute.xlu0 %1580  ;;  %v2140_v62 = vmul.f32 %v4812_v27, %v2137_v21  ;;  %v3782_v27 = vor.u32 %v3912_v19, %v3781_v26  ;;  %v4911_v44 = vld [vmem:[%s4112_s7 + $0x48] sm:$0xff] }
 0x229   : > { %2087 = vrot.lane.b32.xlu1 %v2083_v18, %s3975_s30  ;;  %3174 = vmatpush.bf16.msrb.mxu2 %v3062_v5  ;;  %v1584_v12 = vrot.slane %v1581_v0, 4  ;;  %v3786_v18 = vor.u32 %v3904_v31, %v3783_v53  ;;  %v2174_v23 = vsel %vm286_vm0, %v2171_v36, %v2173_v41  ;;  %v2448_v5 = vrot.slane %v4384_v35, 4  ;;  %v3737_v36 = vld [vmem:[%s4112_s7 + $0x5c] sm:$0xf] }
 0x22a   : > { %v2348_v51 = vld.sshfl [vmem:[#allocation1 + $0x10] sm:$0xff pattern:$0x75316420]  ;;  %3187 = vmatpush.bf16.msrb.mxu3 %v3065_v57  ;;  %v2176_v54 = vmul.f32 %v4911_v44, %v2174_v23 }
 0x22b   : > { %2388 = vst [vmem:[#allocation1 + $0x10] ss:$2 sm:$0xff] %v2383_v9  ;;  %v2353_v48 = vpack.c.bf16 %v2348_v51, %v2348_v51  ;;  %2317 = vrot.lane.b32.xlu2 %v2312_v56, %s3973_s23  ;;  %v1586_v42 = vsel %vm286_vm0, %v1584_v12, %v1585_v40  ;;  %v1692_v51 = vpop.permute.xlu2 %1691  ;;  %v2453_v21 = vmul.f32 %v3733_v14, %v2448_v5  ;;  %v1669_v12 = vrot.slane %v4831_v1, 4 }
 0x22c   : > { %v1587_v43 = vsel %vm325_vm6, %v1581_v0, %v1586_v42  ;;  %v1695_v40 = vrot.slane %v1692_v51, 4  ;;  %v4939_v42 = vld [vmem:[%s4112_s7 + $0x48] sm:$0xff]  ;;  %v2449_v29 = vsel %vm575_vm5, %v2448_v5, %v4384_v35 }
 0x22d   : > { %v2357_v11 = vrot.slane %v2353_v48, 6  ;;  %3175 = vmatpush.bf16.msrb.mxu2 %v3846_v30  ;;  %1589 = vst [vmem:[#allocation2 + $0x20] sm:$0xcc] %v1587_v43 }
 0x22e   : > { %3188 = vmatpush.bf16.msrb.mxu3 %v3850_v61  ;;  %v2104_v3 = vld.sshfl [vmem:[#allocation1] sm:$0xff pattern:$0x75316420]  ;;  %v2105_v45 = vld.sshfl [vmem:[#allocation1 + $0x8] sm:$0xff pattern:$0x75316420]  ;;  %v1697_v50 = vsel %vm286_vm0, %v1695_v40, %v1696_v16 }
 0x22f   : > { %v2110_v9 = vpack.c.bf16 %v2105_v45, %v2104_v3  ;;  %2144 = vst [vmem:[#allocation1] ss:$2 sm:$0xff] %v2140_v62  ;;  %v1698_v57 = vsel %vm442_vm9, %v1692_v51, %v1697_v50  ;;  %v3739_v45 = vld [vmem:[%s4112_s7 + $0x5c] sm:$0xf]  ;;  %v1739_v50 = vrot.slane %v4847_v34, 4 }
 0x230   : > { %1700 = vst [vmem:[#allocation2 + $0xa0] sm:$0x33] %v1698_v57 }
 0x231   : > { %v2114_v56 = vrot.slane %v2110_v9, 6  ;;  %2360 = vrot.lane.b32.xlu1 %v2357_v11, %s3974_s27  ;;  %3176 = vmatpush.bf16.msrb.mxu2 %v3782_v27  ;;  %v1807_v31 = vpop.permute.xlu0 %1806 }
 0x232   : > { %v2391_v24 = vld.sshfl [vmem:[#allocation1 + $0x10] sm:$0xff pattern:$0x75316420]  ;;  %3189 = vmatpush.bf16.msrb.mxu3 %v3786_v18  ;;  %v1809_v3 = vrot.slane %v1807_v31, 4 }
 0x233   : > { %2415 = vst [vmem:[#allocation1 + $0x10] ss:$2 sm:$0xff] %v3731_v8  ;;  %2116 = vrot.lane.b32.xlu0 %v2114_v56, %s3976_s8  ;;  %v2396_v33 = vpack.c.bf16 %v2391_v24, %v2391_v24  ;;  %v4928_v61 = vpop.permute.xlu2 %1935  ;;  %v2225_v8 = vsel %vm341_vm1, %v2224_v60, %v4363_v58  ;;  %v2536_v24 = vrot.slane %v4390_v46, 4 }
 0x234   : > { %v2228_v9 = vmul.f32 %v4939_v42, %v2225_v8 }
 0x235   : > { %v2541_v23 = vmul.f32 %v3739_v45, %v2536_v24  ;;  %v2336_v45 = vsel %vm457_vm3, %v2335_v49, %v4386_v38 }
 0x236   : > { %v2147_v2 = vld.sshfl [vmem:[#allocation1] sm:$0xff pattern:$0x75316420]  ;;  %v2148_v48 = vld.sshfl [vmem:[#allocation1 + $0x8] sm:$0xff pattern:$0x75316420] }
 0x237   : > { %v2153_v0 = vpack.c.bf16 %v2148_v48, %v2147_v2  ;;  %2178 = vst [vmem:[#allocation1] ss:$2 sm:$0xff] %v2176_v54  ;;  %v2266_v54 = vsel %vm384_vm2, %v2265_v37, %v4377_v22  ;;  %v3742_v48 = vld [vmem:[%s4112_s7 + $0x5c] sm:$0xf] }
 0x238   : > { %v1665_v26 = vpop.permute.xlu1 %1664  ;;  %v2582_v37 = vmul.f32 %v3742_v48, %v2577_v63  ;;  %v3744_v63 = vld [vmem:[%s4112_s7 + $0x5c] sm:$0xf] }
 0x239   : > { %2157 = vrot.lane.b32.xlu2 %v2153_v0, %s3977_s11  ;;  %v1668_v30 = vrot.slane %v1665_v26, 4 }
 0x23a   : > { %v4923_v39 = vld.sshfl [vmem:[#allocation1 + $0x10] sm:$0xff pattern:$0x75316420] }
 0x23b   : > { %2458 = vst [vmem:[#allocation1 + $0x10] ss:$2 sm:$0xff] %v2453_v21  ;;  %2401 = vrot.lane.b32.xlu0 %v2396_v33, %s3975_s30  ;;  %v1670_v19 = vsel %vm286_vm0, %v1668_v30, %v1669_v12  ;;  %v2269_v21 = vmul.f32 %v4939_v42, %v2266_v54 }
 0x23c   : > { %v1671_v53 = vsel %vm414_vm8, %v1665_v26, %v1670_v19  ;;  %v1780_v19 = vrot.slane %v4908_v25, 4 }
 0x23d   : > { %1673 = vst [vmem:[#allocation2 + $0x60] sm:$0xcc] %v1671_v53 }
 0x23e   : > { %v4932_v41 = vld.sshfl [vmem:[#allocation1] sm:$0xff pattern:$0x75316420]  ;;  %v4934_v62 = vld.sshfl [vmem:[#allocation1 + $0x8] sm:$0xff pattern:$0x75316420] }
 0x23f   : > { %2189 = vst [vmem:[#allocation1] ss:$2 sm:$0xff] %v4911_v44 }
 0x240   : > { %v1805_v43 = vpop.permute.xlu2 %1804 }
 0x241   : > { %v1808_v16 = vrot.slane %v1805_v43, 4  ;;  %v1895_v58 = vpop.permute.xlu0 %1894 }
 0x242   : > { %v2461_v1 = vld.sshfl [vmem:[#allocation1 + $0x10] sm:$0xff pattern:$0x75316420] }
 0x243   : > { %v2466_v11 = vpack.c.bf16 %v2461_v1, %v2461_v1  ;;  %2503 = vst [vmem:[#allocation1 + $0x10] ss:$2 sm:$0xff] %v3737_v36  ;;  %v1810_v60 = vsel %vm286_vm0, %v1808_v16, %v1809_v3 }
 0x244   : > { %v1811_v51 = vsel %vm560_vm12, %v1805_v43, %v1810_v60  ;;  %v2339_v60 = vmul.f32 %v4939_v42, %v2336_v45 }
 0x245   : > { %2471 = vrot.lane.b32.xlu1 %v2466_v11, %s3977_s11  ;;  %1813 = vst [vmem:[#allocation2 + $0xe0] sm:$0xcc] %v1811_v51  ;;  %v2647_v51 = vrot.slane %v4422_v4, 4 }
 0x246   : > { %v4949_v27 = vld.sshfl [vmem:[#allocation1] sm:$0xff pattern:$0x75316420]  ;;  %v4951_v18 = vld.sshfl [vmem:[#allocation1 + $0x8] sm:$0xff pattern:$0x75316420] }
 0x247   : > { %2232 = vst [vmem:[#allocation1] ss:$2 sm:$0xff] %v2228_v9  ;;  %v1897_v9 = vrot.slane %v1895_v58, 4 }
 0x248   : > { %v1735_v14 = vpop.permute.xlu1 %1734 }
 0x249   : > { %v1738_v57 = vrot.slane %v1735_v14, 4 }
 0x24a   : > { %v2506_v56 = vld.sshfl [vmem:[#allocation1 + $0x10] sm:$0xff pattern:$0x75316420] }
 0x24b   : > { %2546 = vst [vmem:[#allocation1 + $0x10] ss:$2 sm:$0xff] %v2541_v23  ;;  %v2511_v40 = vpack.c.bf16 %v2506_v56, %v2506_v56  ;;  %v1740_v0 = vsel %vm286_vm0, %v1738_v57, %v1739_v50  ;;  %v3746_v56 = vld [vmem:[%s4112_s7 + $0x5c] sm:$0xf] }
 0x24c   : > { %v1741_v22 = vsel %vm487_vm10, %v1735_v14, %v1740_v0  ;;  %v2652_v38 = vmul.f32 %v3746_v56, %v2647_v51  ;;  %v1850_v0 = vrot.slane %v4892_v17, 4 }
 0x24d   : > { %v2515_v2 = vrot.slane %v2511_v40, 6  ;;  %1743 = vst [vmem:[#allocation2 + $0xa0] sm:$0xcc] %v1741_v22 }
 0x24e   : > { %v4966_v33 = vld.sshfl [vmem:[#allocation1] sm:$0xff pattern:$0x75316420]  ;;  %v4968_v26 = vld.sshfl [vmem:[#allocation1 + $0x8] sm:$0xff pattern:$0x75316420]  ;;  %v1776_v12 = vpop.permute.xlu0 %1775 }
 0x24f   : > { %2518 = vrot.lane.b32.xlu2 %v2515_v2, %s3970_s25  ;;  %2273 = vst [vmem:[#allocation1] ss:$2 sm:$0xff] %v2269_v21  ;;  %v1779_v31 = vrot.slane %v1776_v12, 4  ;;  %v4978_v1 = vpop.permute.xlu2 %2089  ;;  %v5005_v2 = vld [vmem:[%s5283_s2] sm:$0xf]  ;;  %v2379_v21 = vsel %vm502_vm4, %v2378_v32, %v4406_v7 }
 0x250   : > { %3883 = vmatmul.msk.bf16.vlgmr.msra.gmra.mxu0 %vm3038_vm15, %v5005_v2  ;;  %3884 = vmatmul.msk.bf16.vlgmr.msra.gmra.mxu1 %vm3038_vm15, %v5005_v2 }
 0x251   : > { %v4974_v36 = vpop.permute.xlu1 %1978  ;;  %v1781_v53 = vsel %vm286_vm0, %v1779_v31, %v1780_v19  ;;  %3885 = vmatmul.msk.bf16.vlgmr.msra.gmra.mxu2 %vm3038_vm15, %v5005_v2  ;;  %3886 = vmatmul.msk.bf16.vlgmr.msra.gmra.mxu3 %vm3038_vm15, %v5005_v2 }
 0x252   : > { %v2549_v34 = vld.sshfl [vmem:[#allocation1 + $0x10] sm:$0xff pattern:$0x75316420]  ;;  %v1782_v10 = vsel %vm530_vm11, %v1776_v12, %v1781_v53  ;;  %v2382_v12 = vmul.f32 %v4939_v42, %v2379_v21 }
 0x253   : > { %v2554_v30 = vpack.c.bf16 %v2549_v34, %v2549_v34  ;;  %2587 = vst [vmem:[#allocation1 + $0x10] ss:$2 sm:$0xff] %v2582_v37  ;;  %v3749_v37 = vld [vmem:[%s4112_s7 + $0x5c] sm:$0xf] }
 0x254   : > { %1784 = vst [vmem:[#allocation2 + $0xe0] sm:$0x33] %v1782_v10  ;;  %v2695_v32 = vmul.f32 %v3749_v37, %v2690_v47  ;;  %v2481_v10 = vld [vmem:[%s5282_s1] ss:$4 sm:$0x3] }
 0x255   : > { %2559 = vrot.lane.b32.xlu1 %v2554_v30, %s3971_s10  ;;  %v3853_v21 = vld [vmem:[#allocation2 + $0xa0] sm:$0xf]  ;;  %v3905_v37 = vld [vmem:[#allocation2 + $0x24] sm:$0xf] }
 0x256   : > { %v4982_v11 = vld.sshfl [vmem:[#allocation1] sm:$0xff pattern:$0x75316420]  ;;  %v4984_v8 = vld.sshfl [vmem:[#allocation1 + $0x8] sm:$0xff pattern:$0x75316420] }
 0x257   : > { %2302 = vst [vmem:[#allocation1] ss:$2 sm:$0xff] %v4911_v44 }
 0x259   : > { %v4991_v43 = vpop.permute.xlu1 %2005 }
 0x25a   : > { %v2590_v25 = vld.sshfl [vmem:[#allocation1 + $0x10] sm:$0xff pattern:$0x75316420] }
 0x25b   : > { %v2595_v3 = vpack.c.bf16 %v2590_v25, %v2590_v25  ;;  %2616 = vst [vmem:[#allocation1 + $0x10] ss:$2 sm:$0xff] %v3744_v63  ;;  %v1893_v23 = vpop.permute.xlu2 %1892  ;;  %v3751_v25 = vld [vmem:[%s4112_s7 + $0x5c] sm:$0xf] }
 0x25c   : > { %v1896_v40 = vrot.slane %v1893_v23, 4 }
 0x25d   : > { %v2599_v16 = vrot.slane %v2595_v3, 6 }
 0x25e   : > { %v2305_v54 = vld.sshfl [vmem:[#allocation1] sm:$0xff pattern:$0x75316420]  ;;  %v2306_v14 = vld.sshfl [vmem:[#allocation1 + $0x8] sm:$0xff pattern:$0x75316420]  ;;  %v1898_v57 = vsel %vm286_vm0, %v1896_v40, %v1897_v9 }
 0x25f   : > { %2602 = vrot.lane.b32.xlu0 %v2599_v16, %s3972_s20  ;;  %2343 = vst [vmem:[#allocation1] ss:$2 sm:$0xff] %v2339_v60  ;;  %v2311_v50 = vpack.c.bf16 %v2306_v14, %v2305_v54  ;;  %v1899_v49 = vsel %vm325_vm6, %v1893_v23, %v1898_v57  ;;  %v1871_v54 = vpack.c.bf16 %v4807_v15, %v4805_v20  ;;  %v3753_v20 = vld [vmem:[%s4112_s7 + $0x5c] sm:$0xf] }
 0x260   : > { %1901 = vst [vmem:[#allocation2 + $0x28] sm:$0xcc] %v1899_v49  ;;  %3887 = vmatmul.msk.bf16.vlgmr.msrb.gmra.mxu0 %vm3038_vm15, %v5005_v2  ;;  %v3855_v49 = vld [vmem:[#allocation2 + $0xe0] sm:$0xf0]  ;;  %3888 = vmatmul.msk.bf16.vlgmr.msrb.gmra.mxu1 %vm3038_vm15, %v5005_v2  ;;  %v2452_v15 = vmul.f32 %v4939_v42, %v2449_v29 }
 0x261   : > { %2315 = vrot.lane.b32.xlu1 %v2311_v50, %s3973_s23  ;;  %v1846_v48 = vpop.permute.xlu1 %1845  ;;  %v2049_v14 = vpop.permute.xlu0 %2048  ;;  %1872 = vst [vmem:[#allocation2 + $0x28] sm:$0x33] %v1871_v54  ;;  %3889 = vmatmul.msk.bf16.vlgmr.msrb.gmra.mxu2 %vm3038_vm15, %v5005_v2 }
 0x262   : > { %v2619_v58 = vld.sshfl [vmem:[#allocation1 + $0x10] sm:$0xff pattern:$0x75316420]  ;;  %v1849_v22 = vrot.slane %v1846_v48, 4  ;;  %3890 = vmatmul.msk.bf16.vlgmr.msrb.gmra.mxu3 %vm3038_vm15, %v5005_v2 }
 0x263   : > { %2657 = vst [vmem:[#allocation1 + $0x10] ss:$2 sm:$0xff] %v2652_v38  ;;  %v2624_v9 = vpack.c.bf16 %v2619_v58, %v2619_v58  ;;  %v2484_v38 = vperm.slane %v2481_v10, 1  ;;  %v2760_v58 = vrot.slane %v4404_v6, 4 }
 0x264   : > { %v1851_v34 = vsel %vm286_vm0, %v1849_v22, %v1850_v0  ;;  %v3921_v0 = vld [vmem:[#allocation2 + $0xa4] sm:$0xf]  ;;  %v3789_v22 = vld [vmem:[#allocation2 + $0x20] sm:$0xf] }
 0x265   : > { %v1852_v30 = vsel %vm603_vm13, %v1846_v48, %v1851_v34  ;;  %v2483_v48 = vperm.slane %v2481_v10, 0 }
 0x266   : > { %v2346_v19 = vld.sshfl [vmem:[#allocation1] sm:$0xff pattern:$0x75316420]  ;;  %v2347_v31 = vld.sshfl [vmem:[#allocation1 + $0x8] sm:$0xff pattern:$0x75316420] }
 0x267   : > { %1854 = vst [vmem:[#allocation2 + $0x120] sm:$0x33] %v1852_v30  ;;  %v2352_v7 = vpack.c.bf16 %v2347_v31, %v2346_v19  ;;  %v3858_v19 = vor.u32 %v3921_v0, %v3855_v49  ;;  %v3913_v31 = vld [vmem:[#allocation2 + $0x5c] sm:$0xf0] }
 0x268   : > { %2386 = vst [vmem:[#allocation1] ss:$2 sm:$0xff] %v2382_v12  ;;  %v2485_v12 = vrot.slane %v2484_v38, 4 }
 0x269   : > { %v2356_v17 = vrot.slane %v2352_v7, 6  ;;  %v3791_v7 = vld [vmem:[#allocation2 + $0x60] sm:$0xf0] }
 0x26a   : > { %v2660_v53 = vld.sshfl [vmem:[#allocation1 + $0x10] sm:$0xff pattern:$0x75316420] }
 0x26b   : > { %2700 = vst [vmem:[#allocation1 + $0x10] ss:$2 sm:$0xff] %v2695_v32  ;;  %2358 = vrot.lane.b32.xlu0 %v2356_v17, %s3974_s27  ;;  %v2665_v50 = vpack.c.bf16 %v2660_v53, %v2660_v53  ;;  %v2765_v17 = vmul.f32 %v3753_v20, %v2760_v58  ;;  %v1981_v20 = vrot.slane %v4974_v36, 4 }
 0x26d   : > { %v2669_v34 = vrot.slane %v2665_v50, 6 }
 0x26e   : > { %v2828_v63 = vld [vmem:[#allocation2 + $0x120] sm:$0x33] }
 0x26f   : > { %v2389_v3 = vld.sshfl [vmem:[#allocation1] sm:$0xff pattern:$0x75316420]  ;;  %v2390_v45 = vld.sshfl [vmem:[#allocation1 + $0x8] sm:$0xff pattern:$0x75316420]  ;;  %v2950_v16 = vunpack.c.l.b16 %v2828_v63  ;;  %v2951_v23 = vunpack.c.h.b16 %v2828_v63 }
 0x270   : > { %v2395_v60 = vpack.c.bf16 %v2390_v45, %v2389_v3  ;;  %2413 = vst [vmem:[#allocation1] ss:$2 sm:$0xff] %v4911_v44  ;;  %v3929_v44 = vld [vmem:[#allocation2 + $0xdc] sm:$0xf0]  ;;  %v5062_v63 = vld [vmem:[%s4112_s7 + $0x54] sm:$0xff]  ;;  %v3790_v45 = vor.u32 %v3913_v31, %v3789_v22 }
 0x271   : > { %v2998_v47 = vpack.c.b16 %v2950_v16, %v2950_v16  ;;  %v2999_v56 = vpack.c.b16 %v2951_v23, %v2951_v23  ;;  %v3854_v30 = vor.u32 %v3929_v44, %v3853_v21  ;;  %v1938_v16 = vrot.slane %v4928_v61, 4  ;;  %v5094_v31 = vld [vmem:[%s4112_s7 + $0x54] sm:$0xff] }
 0x272   : > { %v2703_v40 = vld.sshfl [vmem:[#allocation1 + $0x10] sm:$0xff pattern:$0x75316420]  ;;  %2399 = vrot.lane.b32.xlu2 %v2395_v60, %s3975_s30 }
 0x273   : > { %v2708_v57 = vpack.c.bf16 %v2703_v40, %v2703_v40  ;;  %2727 = vst [vmem:[#allocation1 + $0x10] ss:$2 sm:$0xff] %v3751_v25  ;;  %2629 = vrot.lane.b32.xlu0 %v2624_v9, %s3973_s23  ;;  %v3068_v35 = vsel %vm3042_vm14, %v2998_v47, 0  ;;  %v3071_v5 = vsel %vm3042_vm14, %v2999_v56, 0  ;;  %v2486_v25 = vsel %vm286_vm0, %v2483_v48, %v2485_v12 }
 0x274   : > { %3200 = vmatpush.bf16.msra.mxu0 %v3068_v35  ;;  %3213 = vmatpush.bf16.msra.mxu1 %v3071_v5  ;;  %v3794_v9 = vor.u32 %v3905_v37, %v3791_v7  ;;  %v2488_v47 = vmul.f32 %v5062_v63, %v2486_v25  ;;  %v2051_v56 = vrot.slane %v2049_v14, 4  ;;  %v2008_v12 = vrot.slane %v4991_v43, 4 }
 0x275   : > { %2713 = vrot.lane.b32.xlu1 %v2708_v57, %s3975_s30 }
 0x277   : > { %v5054_v42 = vld.sshfl [vmem:[#allocation1] sm:$0xff pattern:$0x75316420]  ;;  %v5056_v32 = vld.sshfl [vmem:[#allocation1 + $0x8] sm:$0xff pattern:$0x75316420]  ;;  %v2160_v3 = vpop.permute.xlu0 %2159 }
 0x278   : > { %2456 = vst [vmem:[#allocation1] ss:$2 sm:$0xff] %v2452_v15  ;;  %3201 = vmatpush.bf16.msra.mxu0 %v3854_v30  ;;  %3214 = vmatpush.bf16.msra.mxu1 %v3858_v19  ;;  %v2537_v30 = vsel %vm341_vm1, %v2536_v24, %v4390_v46 }
 0x279   : > { %v1934_v10 = vpop.permute.xlu1 %1933 }
 0x27a   : > { %v2730_v53 = vld.sshfl [vmem:[#allocation1 + $0x10] sm:$0xff pattern:$0x75316420]  ;;  %2672 = vrot.lane.b32.xlu2 %v2669_v34, %s3974_s27  ;;  %v1937_v23 = vrot.slane %v1934_v10, 4 }
 0x27b   : > { %2770 = vst [vmem:[#allocation1 + $0x10] ss:$2 sm:$0xff] %v2765_v17  ;;  %v2735_v14 = vpack.c.bf16 %v2730_v53, %v2730_v53  ;;  %v2540_v17 = vmul.f32 %v5094_v31, %v2537_v30 }
 0x27c   : > { %3202 = vmatpush.bf16.msra.mxu0 %v3790_v45  ;;  %3215 = vmatpush.bf16.msra.mxu1 %v3794_v9  ;;  %v1939_v60 = vsel %vm286_vm0, %v1937_v23, %v1938_v16  ;;  %v2162_v23 = vrot.slane %v2160_v3, 4 }
 0x27d   : > { %v2047_v29 = vpop.permute.xlu2 %2046  ;;  %v1940_v40 = vsel %vm369_vm7, %v1934_v10, %v1939_v60  ;;  %v2739_v21 = vrot.slane %v2735_v14, 6 }
 0x27e   : > { %v2050_v54 = vrot.slane %v2047_v29, 4  ;;  %1942 = vst [vmem:[#allocation2 + $0x68] sm:$0x33] %v1940_v40 }
 0x27f   : > { %v2459_v50 = vld.sshfl [vmem:[#allocation1] sm:$0xff pattern:$0x75316420]  ;;  %v2460_v38 = vld.sshfl [vmem:[#allocation1 + $0x8] sm:$0xff pattern:$0x75316420]  ;;  %3891 = vmatmul.msk.bf16.vlgmr.msra.gmra.mxu0 %vm3038_vm15, %v5005_v2  ;;  %3892 = vmatmul.msk.bf16.vlgmr.msra.gmra.mxu1 %vm3038_vm15, %v5005_v2 }
 0x280   : > { %v2052_v57 = vsel %vm286_vm0, %v2050_v54, %v2051_v56  ;;  %v2465_v61 = vpack.c.bf16 %v2460_v38, %v2459_v50  ;;  %2490 = vst [vmem:[#allocation1] ss:$2 sm:$0xff] %v2488_v47  ;;  %v2092_v50 = vrot.slane %v4978_v1, 4 }
 0x281   : > { %v2053_v44 = vsel %vm487_vm10, %v2047_v29, %v2052_v57  ;;  %v2119_v43 = vpop.permute.xlu1 %2118  ;;  %v2581_v29 = vmul.f32 %v5094_v31, %v4486_v52 }
 0x282   : > { %v2773_v35 = vld.sshfl [vmem:[#allocation1 + $0x10] sm:$0xff pattern:$0x75316420]  ;;  %2055 = vst [vmem:[#allocation2 + $0xa8] sm:$0xcc] %v2053_v44  ;;  %2469 = vrot.lane.b32.xlu0 %v2465_v61, %s3977_s11 }
 0x283   : > { %v2778_v5 = vpack.c.bf16 %v2773_v35, %v2773_v35 }
 0x284   : > { %v1977_v49 = vpop.permute.xlu0 %1976 }
 0x285   : > { %2783 = vrot.lane.b32.xlu2 %v2778_v5, %s3977_s11  ;;  %v1980_v15 = vrot.slane %v1977_v49, 4  ;;  %v5085_v34 = vpop.permute.xlu2 %2317 }
 0x287   : > { %v1982_v48 = vsel %vm286_vm0, %v1980_v15, %v1981_v20  ;;  %v5079_v0 = vld.sshfl [vmem:[#allocation1] sm:$0xff pattern:$0x75316420]  ;;  %v5081_v22 = vld.sshfl [vmem:[#allocation1 + $0x8] sm:$0xff pattern:$0x75316420] }
 0x288   : > { %v1983_v37 = vsel %vm414_vm8, %v1977_v49, %v1982_v48  ;;  %2501 = vst [vmem:[#allocation1] ss:$2 sm:$0xff] %v5062_v63  ;;  %v2121_v15 = vrot.slane %v2119_v43, 4 }
 0x289   : > { %1985 = vst [vmem:[#allocation2 + $0x68] sm:$0xcc] %v1983_v37 }
 0x28a   : > { %2742 = vrot.lane.b32.xlu0 %v2739_v21, %s3976_s8 }
 0x28c   : > { %v2004_v36 = vpop.permute.xlu0 %2003 }
 0x28d   : > { %v2007_v19 = vrot.slane %v2004_v36, 4 }
 0x28f   : > { %v2009_v7 = vsel %vm286_vm0, %v2007_v19, %v2008_v12  ;;  %v2504_v10 = vld.sshfl [vmem:[#allocation1] sm:$0xff pattern:$0x75316420]  ;;  %v2505_v25 = vld.sshfl [vmem:[#allocation1 + $0x8] sm:$0xff pattern:$0x75316420]  ;;  %v2648_v12 = vsel %vm457_vm3, %v2647_v51, %v4422_v4  ;;  %v2694_v4 = vmul.f32 %v5094_v31, %v4495_v13 }
 0x290   : > { %v2010_v53 = vsel %vm442_vm9, %v2004_v36, %v2009_v7  ;;  %v2510_v45 = vpack.c.bf16 %v2505_v25, %v2504_v10  ;;  %2544 = vst [vmem:[#allocation1] ss:$2 sm:$0xff] %v2540_v17  ;;  %v2651_v19 = vmul.f32 %v5094_v31, %v2648_v12 }
 0x291   : > { %2012 = vst [vmem:[#allocation2 + $0xa8] sm:$0x33] %v2010_v53 }
 0x292   : > { %v2514_v16 = vrot.slane %v2510_v45, 6 }
 0x293   : > { %v2158_v9 = vpop.permute.xlu2 %2157 }
 0x294   : > { %v2161_v60 = vrot.slane %v2158_v9, 4  ;;  %2516 = vrot.lane.b32.xlu1 %v2514_v16, %s3970_s25  ;;  %v3906_v16 = vld [vmem:[#allocation2 + $0x2c] sm:$0xf] }
 0x296   : > { %v2163_v46 = vsel %vm286_vm0, %v2161_v60, %v2162_v23 }
 0x297   : > { %v2164_v24 = vsel %vm603_vm13, %v2158_v9, %v2163_v46  ;;  %v2547_v47 = vld.sshfl [vmem:[#allocation1] sm:$0xff pattern:$0x75316420]  ;;  %v2548_v56 = vld.sshfl [vmem:[#allocation1 + $0x8] sm:$0xff pattern:$0x75316420] }
 0x298   : > { %2166 = vst [vmem:[#allocation2 + $0x128] sm:$0x33] %v2164_v24  ;;  %v2553_v40 = vpack.c.bf16 %v2548_v56, %v2547_v47  ;;  %v3861_v25 = vld [vmem:[#allocation2 + $0xa8] sm:$0xf]  ;;  %v3922_v43 = vld [vmem:[#allocation2 + $0xac] sm:$0xf] }
 0x299   : > { %2585 = vst [vmem:[#allocation1] ss:$2 sm:$0xff] %v2581_v29  ;;  %v3797_v9 = vld [vmem:[#allocation2 + $0x28] sm:$0xf]  ;;  %v3799_v56 = vld [vmem:[#allocation2 + $0x68] sm:$0xf0] }
 0x29a   : > { %2557 = vrot.lane.b32.xlu0 %v2553_v40, %s3971_s10  ;;  %v3914_v47 = vld [vmem:[#allocation2 + $0x64] sm:$0xf0] }
 0x29b   : > { %v2088_v54 = vpop.permute.xlu1 %2087 }
 0x29c   : > { %v2091_v3 = vrot.slane %v2088_v54, 4 }
 0x29e   : > { %v2093_v57 = vsel %vm286_vm0, %v2091_v3, %v2092_v50  ;;  %v3802_v50 = vor.u32 %v3906_v16, %v3799_v56 }
 0x29f   : > { %v2094_v38 = vsel %vm530_vm11, %v2088_v54, %v2093_v57  ;;  %v2829_v44 = vld [vmem:[#allocation2 + $0x128] sm:$0x33]  ;;  %v3798_v54 = vor.u32 %v3914_v47, %v3797_v9 }
 0x2a0   : > { %2096 = vst [vmem:[#allocation2 + $0xe8] sm:$0x33] %v2094_v38  ;;  %v2952_v61 = vunpack.c.l.b16 %v2829_v44  ;;  %v2953_v35 = vunpack.c.h.b16 %v2829_v44  ;;  %v2588_v52 = vld.sshfl [vmem:[#allocation1] sm:$0xff pattern:$0x75316420]  ;;  %v2198_v44 = vpack.c.bf16 %v4951_v18, %v4949_v27  ;;  %v2423_v27 = vpack.c.bf16 %v4923_v39, %v4923_v39 }
 0x2a1   : > { %v2589_v5 = vld.sshfl [vmem:[#allocation1 + $0x8] sm:$0xff pattern:$0x75316420]  ;;  %v2422_v39 = vpack.c.bf16 %v5056_v32, %v5054_v42  ;;  %v2199_v42 = vpack.c.bf16 %v4835_v55, %v4835_v55  ;;  %v2282_v55 = vpack.c.bf16 %v4984_v8, %v4982_v11 }
 0x2a2   : > { %v2594_v14 = vpack.c.bf16 %v2589_v5, %v2588_v52  ;;  %2614 = vst [vmem:[#allocation1] ss:$2 sm:$0xff] %v5062_v63  ;;  %v3000_v49 = vpack.c.b16 %v2952_v61, %v2952_v61  ;;  %v3001_v20 = vpack.c.b16 %v2953_v35, %v2953_v35  ;;  %v2761_v61 = vsel %vm575_vm5, %v2760_v58, %v4404_v6 }
 0x2a3   : > { %v2361_v57 = vpop.permute.xlu1 %2360  ;;  %v2764_v35 = vmul.f32 %v5094_v31, %v2761_v61  ;;  %v2202_v52 = vrot.slane %v2198_v44, 6 }
 0x2a4   : > { %v2598_v1 = vrot.slane %v2594_v14, 6  ;;  %v3074_v48 = vsel %vm3042_vm14, %v3000_v49, 0  ;;  %v3077_v21 = vsel %vm3042_vm14, %v3001_v20, 0  ;;  %v2363_v9 = vrot.slane %v2361_v57, 4 }
 0x2a5   : > { %3226 = vmatpush.bf16.msra.mxu2 %v3074_v48  ;;  %3239 = vmatpush.bf16.msra.mxu3 %v3077_v21  ;;  %v2117_v37 = vpop.permute.xlu0 %2116  ;;  %v2427_v48 = vrot.slane %v2423_v27, 6 }
 0x2a6   : > { %2600 = vrot.lane.b32.xlu2 %v2598_v1, %s3972_s20  ;;  %v2120_v36 = vrot.slane %v2117_v37, 4  ;;  %v2242_v1 = vpack.c.bf16 %v4845_v28, %v4845_v28  ;;  %v2426_v28 = vrot.slane %v2422_v39, 6  ;;  %v3978_v39 = vmov 0  }
 0x2a7   : > { %3956 = vset.pattern.permute.xlu0 %v3978_v39 }
 0x2a8   : > { %v2122_v30 = vsel %vm286_vm0, %v2120_v36, %v2121_v15 }
 0x2a9   : > { %v2123_v7 = vsel %vm560_vm12, %v2117_v37, %v2122_v30  ;;  %v2617_v17 = vld.sshfl [vmem:[#allocation1] sm:$0xff pattern:$0x75316420]  ;;  %v2618_v53 = vld.sshfl [vmem:[#allocation1 + $0x8] sm:$0xff pattern:$0x75316420] }
 0x2aa   : > { %2125 = vst [vmem:[#allocation2 + $0xe8] sm:$0xcc] %v2123_v7  ;;  %v2623_v10 = vpack.c.bf16 %v2618_v53, %v2617_v17  ;;  %v2320_v7 = vrot.slane %v5085_v34, 4  ;;  %v2283_v34 = vpack.c.bf16 %v4862_v59, %v4862_v59 }
 0x2ab   : > { %2655 = vst [vmem:[#allocation1] ss:$2 sm:$0xff] %v2651_v19 }
 0x2ad   : > { %v2402_v18 = vpop.permute.xlu0 %2401 }
 0x2ae   : > { %2627 = vrot.lane.b32.xlu2 %v2623_v10, %s3973_s23  ;;  %v2404_v12 = vrot.slane %v2402_v18, 4 }
 0x2b1   : > { %v3930_v51 = vld [vmem:[#allocation2 + $0xe4] sm:$0xf0]  ;;  %v3863_v45 = vld [vmem:[#allocation2 + $0xe8] sm:$0xf0] }
 0x2b2   : > { %v2658_v23 = vld.sshfl [vmem:[#allocation1] sm:$0xff pattern:$0x75316420]  ;;  %v2659_v60 = vld.sshfl [vmem:[#allocation1 + $0x8] sm:$0xff pattern:$0x75316420]  ;;  %v3862_v46 = vor.u32 %v3930_v51, %v3861_v25  ;;  %v3866_v24 = vor.u32 %v3922_v43, %v3863_v45  ;;  %v2241_v25 = vpack.c.bf16 %v4968_v26, %v4966_v33 }
 0x2b3   : > { %v2664_v29 = vpack.c.bf16 %v2659_v60, %v2658_v23  ;;  %2698 = vst [vmem:[#allocation1] ss:$2 sm:$0xff] %v2694_v4  ;;  %v2203_v51 = vrot.slane %v2199_v42, 6  ;;  %v2287_v43 = vrot.slane %v2283_v34, 6  ;;  %v2286_v23 = vrot.slane %v2282_v55, 6 }
 0x2b4   : > { %3227 = vmatpush.bf16.msra.mxu2 %v3862_v46  ;;  %3240 = vmatpush.bf16.msra.mxu3 %v3866_v24  ;;  %v2495_v46 = vpack.c.bf16 %v5081_v22, %v5079_v0 }
 0x2b5   : > { %v2668_v40 = vrot.slane %v2664_v29, 6 }
 0x2b6   : > { %2496 = vst [vmem:[#allocation2 + $0x38] sm:$0x33] %v2495_v46 }
 0x2b7   : > { %2670 = vrot.lane.b32.xlu1 %v2668_v40, %s3974_s27  ;;  %v2472_v49 = vpop.permute.xlu1 %2471 }
 0x2b8   : > { %3228 = vmatpush.bf16.msra.mxu2 %v3798_v54  ;;  %3241 = vmatpush.bf16.msra.mxu3 %v3802_v50  ;;  %v2474_v29 = vrot.slane %v2472_v49, 4 }
 0x2ba   : > { %v2701_v13 = vld.sshfl [vmem:[#allocation1] sm:$0xff pattern:$0x75316420]  ;;  %v2702_v3 = vld.sshfl [vmem:[#allocation1 + $0x8] sm:$0xff pattern:$0x75316420] }
 0x2bb   : > { %v2707_v38 = vpack.c.bf16 %v2702_v3, %v2701_v13  ;;  %2725 = vst [vmem:[#allocation1] ss:$2 sm:$0xff] %v5062_v63  ;;  %3893 = vmatmul.msk.bf16.vlgmr.msra.gmra.mxu2 %vm3038_vm15, %v5005_v2  ;;  %3894 = vmatmul.msk.bf16.vlgmr.msra.gmra.mxu3 %vm3038_vm15, %v5005_v2  ;;  %v5136_v63 = vpop.permute.xlu2 %2518 }
 0x2bd   : > { %2711 = vrot.lane.b32.xlu0 %v2707_v38, %s3975_s30 }
 0x2c2   : > { %v2728_v5 = vld.sshfl [vmem:[#allocation1] sm:$0xff pattern:$0x75316420]  ;;  %v2729_v14 = vld.sshfl [vmem:[#allocation1 + $0x8] sm:$0xff pattern:$0x75316420] }
 0x2c3   : > { %v2734_v20 = vpack.c.bf16 %v2729_v14, %v2728_v5  ;;  %2768 = vst [vmem:[#allocation1] ss:$2 sm:$0xff] %v2764_v35 }
 0x2c5   : > { %2204 = vrot.lane.b32.xlu0 %v2202_v52, %s3970_s25  ;;  %v2738_v15 = vrot.slane %v2734_v20, 6  ;;  %v2521_v52 = vrot.slane %v5136_v63, 4 }
 0x2c7   : > { %2740 = vrot.lane.b32.xlu2 %v2738_v15, %s3976_s8  ;;  %v5144_v21 = vpop.permute.xlu1 %2559 }
 0x2ca   : > { %v2771_v6 = vld.sshfl [vmem:[#allocation1] sm:$0xff pattern:$0x75316420]  ;;  %v2772_v58 = vld.sshfl [vmem:[#allocation1 + $0x8] sm:$0xff pattern:$0x75316420] }
 0x2cb   : > { %v2777_v31 = vpack.c.bf16 %v2772_v58, %v2771_v6 }
 0x2cc   : > { %v2400_v37 = vpop.permute.xlu2 %2399 }
 0x2cd   : > { %2781 = vrot.lane.b32.xlu1 %v2777_v31, %s3977_s11  ;;  %2247 = vrot.lane.b32.xlu0 %v2242_v1, %s3971_s10  ;;  %v2403_v36 = vrot.slane %v2400_v37, 4 }
 0x2cf   : > { %v2405_v30 = vsel %vm286_vm0, %v2403_v36, %v2404_v12  ;;  %2430 = vrot.lane.b32.xlu2 %v2427_v48, %s3976_s8  ;;  %v2562_v48 = vrot.slane %v5144_v21, 4 }
 0x2d0   : > { %v2406_v19 = vsel %vm530_vm11, %v2400_v37, %v2405_v30  ;;  %v2832_v30 = vld [vmem:[%s5284_s3] sm:$0xff] }
 0x2d1   : > { %2408 = vst [vmem:[#allocation2 + $0xf0] sm:$0x33] %v2406_v19  ;;  %v2603_v17 = vpop.permute.xlu0 %2602 }
 0x2d2   : > { %v2605_v50 = vrot.slane %v2603_v17, 4 }
 0x2d3   : > { %v2316_v53 = vpop.permute.xlu1 %2315 }
 0x2d4   : > { %v2319_v10 = vrot.slane %v2316_v53, 4  ;;  %v2673_v60 = vpop.permute.xlu2 %2672 }
 0x2d5   : > { %2428 = vrot.lane.b32.xlu1 %v2426_v28, %s3976_s8  ;;  %2835 = vperm.xlu0 %3956, %v2832_v30  }
 0x2d6   : > { %v2321_v32 = vsel %vm286_vm0, %v2319_v10, %v2320_v7  ;;  %v2675_v10 = vrot.slane %v2673_v60, 4 }
 0x2d7   : > { %2245 = vrot.lane.b32.xlu2 %v2241_v25, %s3971_s10  ;;  %v2322_v4 = vsel %vm442_vm9, %v2316_v53, %v2321_v32  ;;  %s3608_s10 = sshll.u32 %s4020_s22, 4  ;;  %s5293_s22 = smov (!%p271_p5, %s4020_s22), 1 }
 0x2d8   : > { %2324 = vst [vmem:[#allocation2 + $0xb0] sm:$0x33] %v2322_v4  ;;  %p266_p4 = scmp.lt.s32.totalorder %s3608_s10, 31  ;;  %s3610_s8 = sshll.u32 %s5293_s22, 3 }
 0x2d9   : > { %s5255_s14 = scalar_lea.vmem %s5286_s5, %s3610_s8  ;;  %s5263_s16 = scalar_lea.vmem %s5287_s6, %s3610_s8 }
 0x2da   : > { %s5291_s10 = smov (!%p266_p4, %s3608_s10), 31 }
 0x2dd   : > { %2206 = vrot.lane.b32.xlu1 %v2203_v51, %s3970_s25  ;;  %v2359_v45 = vpop.permute.xlu0 %2358 }
 0x2de   : > { %v2362_v33 = vrot.slane %v2359_v45, 4 }
 0x2df   : > { %2290 = vrot.lane.b32.xlu2 %v2287_v43, %s3972_s20  ;;  %v5173_v56 = vpop.permute.xlu2 %2783 }
 0x2e0   : > { %v2364_v26 = vsel %vm286_vm0, %v2362_v33, %v2363_v9  ;;  %v2183_v33 = vpack.c.bf16 %v4934_v62, %v4932_v41 }
 0x2e1   : > { %v2365_v16 = vsel %vm487_vm10, %v2359_v45, %v2364_v26 }
 0x2e2   : > { %2367 = vst [vmem:[#allocation2 + $0xb0] sm:$0xcc] %v2365_v16 }
 0x2e3   : > { %2184 = vst [vmem:[#allocation2 + $0x30] sm:$0x33] %v2183_v33 }
 0x2e5   : > { %2288 = vrot.lane.b32.xlu1 %v2286_v23, %s3972_s20  ;;  %v2630_v59 = vpop.permute.xlu0 %2629  ;;  %s3609_s20 = sshll.u32 %s5291_s10, 2 }
 0x2e6   : > { %v2632_v49 = vrot.slane %v2630_v59, 4  ;;  %v2786_v59 = vrot.slane %v5173_v56, 4  ;;  %s5237_s30 = scalar_lea.vmem %s5285_s4, %s3609_s20 }
 0x2e7   : > { %v2714_v40 = vpop.permute.xlu1 %2713 }
 0x2e8   : > { %v2716_v51 = vrot.slane %v2714_v40, 4 }
 0x2f4   : > { %v2470_v24 = vpop.permute.xlu0 %2469 }
 0x2f5   : > { %v2473_v47 = vrot.slane %v2470_v24, 4 }
 0x2f7   : > { %v2475_v11 = vsel %vm286_vm0, %v2473_v47, %v2474_v29 }
 0x2f8   : > { %v2476_v8 = vsel %vm603_vm13, %v2470_v24, %v2475_v11 }
 0x2f9   : > { %2478 = vst [vmem:[#allocation2 + $0x130] sm:$0x33] %v2476_v8 }
 0x2fc   : > { %v2743_v44 = vpop.permute.xlu0 %2742 }
 0x2fd   : > { %v2745_v19 = vrot.slane %v2743_v44, 4 }
 0x300   : > { %v2601_v54 = vpop.permute.xlu2 %2600  ;;  %v2830_v3 = vld [vmem:[#allocation2 + $0x130] sm:$0x33] }
 0x301   : > { %v2604_v13 = vrot.slane %v2601_v54, 4  ;;  %v2954_v57 = vunpack.c.l.b16 %v2830_v3  ;;  %v2955_v38 = vunpack.c.h.b16 %v2830_v3  ;;  %v5212_v3 = vpop.f32.mrf.mxu3 }
 0x303   : > { %v2606_v0 = vsel %vm286_vm0, %v2604_v13, %v2605_v50  ;;  %v3002_v61 = vpack.c.b16 %v2954_v57, %v2954_v57  ;;  %v3003_v35 = vpack.c.b16 %v2955_v38, %v2955_v38  ;;  %v5207_v50 = vpop.f32.mrf.mxu1  ;;  %v5210_v13 = vpop.f32.mrf.mxu2 }
 0x304   : > { %v2607_v22 = vsel %vm414_vm8, %v2601_v54, %v2606_v0  ;;  %v5205_v54 = vpop.f32.mrf.mxu0 }
 0x305   : > { %2609 = vst [vmem:[#allocation2 + $0x78] sm:$0xcc] %v2607_v22  ;;  %v3080_v5 = vsel %vm3042_vm14, %v3002_v61, 0  ;;  %v3083_v14 = vsel %vm3042_vm14, %v3003_v35, 0 }
 0x306   : > { %3252 = vmatpush.bf16.msrb.mxu0 %v3080_v5  ;;  %3265 = vmatpush.bf16.msrb.mxu1 %v3083_v14  ;;  %v2517_v20 = vpop.permute.xlu1 %2516 }
 0x307   : > { %v2520_v15 = vrot.slane %v2517_v20, 4 }
 0x308   : > { %v2628_v27 = vpop.permute.xlu2 %2627 }
 0x309   : > { %v2631_v18 = vrot.slane %v2628_v27, 4  ;;  %v2522_v6 = vsel %vm286_vm0, %v2520_v15, %v2521_v52 }
 0x30a   : > { %v2523_v58 = vsel %vm325_vm6, %v2517_v20, %v2522_v6 }
 0x30b   : > { %v2633_v31 = vsel %vm286_vm0, %v2631_v18, %v2632_v49  ;;  %2525 = vst [vmem:[#allocation2 + $0x38] sm:$0xcc] %v2523_v58  ;;  %v3923_v18 = vld [vmem:[#allocation2 + $0xb4] sm:$0xf]  ;;  %v3115_v58 = vpop.f32.mrf.mxu1 }
 0x30c   : > { %v2634_v63 = vsel %vm442_vm9, %v2628_v27, %v2633_v31  ;;  %v2558_v1 = vpop.permute.xlu0 %2557  ;;  %v3869_v27 = vld [vmem:[#allocation2 + $0xb0] sm:$0xf]  ;;  %v3102_v6 = vpop.f32.mrf.mxu0 }
 0x30d   : > { %2636 = vst [vmem:[#allocation2 + $0xb8] sm:$0x33] %v2634_v63  ;;  %v2561_v37 = vrot.slane %v2558_v1, 4 }
 0x30f   : > { %v2563_v12 = vsel %vm286_vm0, %v2561_v37, %v2562_v48  ;;  %v3128_v37 = vpop.f32.mrf.mxu2 }
 0x310   : > { %v2564_v36 = vsel %vm369_vm7, %v2558_v1, %v2563_v12  ;;  %v3141_v12 = vpop.f32.mrf.mxu3 }
 0x311   : > { %2566 = vst [vmem:[#allocation2 + $0x78] sm:$0x33] %v2564_v36 }
 0x312   : > { %v3813_v48 = vld [vmem:[#allocation2 + $0x38] sm:$0xf] }
 0x321   : > { %v2741_v28 = vpop.permute.xlu2 %2740 }
 0x322   : > { %v2744_v7 = vrot.slane %v2741_v28, 4 }
 0x324   : > { %v2746_v17 = vsel %vm286_vm0, %v2744_v7, %v2745_v19  ;;  %v3908_v7 = vld [vmem:[#allocation2 + $0x3c] sm:$0xf] }
 0x325   : > { %v2747_v21 = vsel %vm560_vm12, %v2741_v28, %v2746_v17 }
 0x326   : > { %2749 = vst [vmem:[#allocation2 + $0xf8] sm:$0xcc] %v2747_v21 }
 0x329   : > { %v2671_v53 = vpop.permute.xlu1 %2670  ;;  %v2431_v45 = vpop.permute.xlu2 %2430 }
 0x32a   : > { %v2674_v25 = vrot.slane %v2671_v53, 4  ;;  %v2433_v41 = vrot.slane %v2431_v45, 4 }
 0x32c   : > { %v2676_v42 = vsel %vm286_vm0, %v2674_v25, %v2675_v10  ;;  %v3815_v10 = vld [vmem:[#allocation2 + $0x78] sm:$0xf0] }
 0x32d   : > { %v2677_v32 = vsel %vm487_vm10, %v2671_v53, %v2676_v42  ;;  %v3916_v53 = vld [vmem:[#allocation2 + $0x74] sm:$0xf0] }
 0x32e   : > { %2679 = vst [vmem:[#allocation2 + $0xb8] sm:$0xcc] %v2677_v32  ;;  %v3814_v32 = vor.u32 %v3916_v53, %v3813_v48 }
 0x32f   : > { %v2712_v4 = vpop.permute.xlu0 %2711 }
 0x330   : > { %v2715_v34 = vrot.slane %v2712_v4, 4 }
 0x331   : > { %v2246_v26 = vpop.permute.xlu2 %2245 }
 0x332   : > { %v2717_v43 = vsel %vm286_vm0, %v2715_v34, %v2716_v51  ;;  %v2249_v60 = vrot.slane %v2246_v26, 4 }
 0x333   : > { %v2718_v9 = vsel %vm530_vm11, %v2712_v4, %v2717_v43  ;;  %v3818_v4 = vor.u32 %v3908_v7, %v3815_v10 }
 0x334   : > { %2720 = vst [vmem:[#allocation2 + $0xf8] sm:$0x33] %v2718_v9 }
 0x335   : > { %v3877_v63 = vld [vmem:[#allocation2 + $0xb8] sm:$0xf]  ;;  %v3924_v1 = vld [vmem:[#allocation2 + $0xbc] sm:$0xf] }
 0x337   : > { %v2205_v55 = vpop.permute.xlu0 %2204 }
 0x338   : > { %v2208_v44 = vrot.slane %v2205_v55, 4 }
 0x339   : > { %v2291_v25 = vpop.permute.xlu2 %2290 }
 0x33a   : > { %v2293_v51 = vrot.slane %v2291_v25, 4 }
 0x33b   : > { %v3932_v5 = vld [vmem:[#allocation2 + $0xf4] sm:$0xf0]  ;;  %v3879_v15 = vld [vmem:[#allocation2 + $0xf8] sm:$0xf0] }
 0x33c   : > { %v3878_v39 = vor.u32 %v3932_v5, %v3877_v63  ;;  %v3882_v30 = vor.u32 %v3924_v1, %v3879_v15 }
 0x33f   : > { %v2782_v16 = vpop.permute.xlu1 %2781  ;;  %v2248_v23 = vpop.permute.xlu0 %2247 }
 0x340   : > { %v2785_v46 = vrot.slane %v2782_v16, 4  ;;  %v2250_v24 = vrot.slane %v2248_v23, 4 }
 0x342   : > { %v2787_v29 = vsel %vm286_vm0, %v2785_v46, %v2786_v59  ;;  %v2251_v47 = vsel %vm286_vm0, %v2249_v60, %v2250_v24  ;;  %v3152_v59 = vpop.f32.mrf.mxu0  ;;  %v3165_v60 = vpop.f32.mrf.mxu1 }
 0x343   : > { %v2788_v11 = vsel %vm603_vm13, %v2782_v16, %v2787_v29  ;;  %v2252_v8 = vsel %vm369_vm7, %v2246_v26, %v2251_v47  ;;  %v3178_v46 = vpop.f32.mrf.mxu2  ;;  %v3191_v24 = vpop.f32.mrf.mxu3 }
 0x344   : > { %2790 = vst [vmem:[#allocation2 + $0x138] sm:$0x33] %v2788_v11 }
 0x345   : > { %2254 = vst [vmem:[#allocation2 + $0x70] sm:$0x33] %v2252_v8 }
 0x347   : > { %v2429_v62 = vpop.permute.xlu1 %2428 }
 0x348   : > { %v2432_v40 = vrot.slane %v2429_v62, 4 }
 0x34a   : > { %v2434_v56 = vsel %vm286_vm0, %v2432_v40, %v2433_v41  ;;  %v3154_v29 = vpop.f32.mrf.mxu0  ;;  %v3167_v47 = vpop.f32.mrf.mxu1 }
 0x34b   : > { %v2435_v57 = vsel %vm560_vm12, %v2429_v62, %v2434_v56  ;;  %v2831_v38 = vld [vmem:[#allocation2 + $0x138] sm:$0x33]  ;;  %v3180_v11 = vpop.f32.mrf.mxu2  ;;  %v3193_v8 = vpop.f32.mrf.mxu3 }
 0x34c   : > { %2437 = vst [vmem:[#allocation2 + $0xf0] sm:$0xcc] %v2435_v57  ;;  %v2956_v0 = vunpack.c.l.b16 %v2831_v38  ;;  %v2957_v22 = vunpack.c.h.b16 %v2831_v38 }
 0x34e   : > { %v3004_v61 = vpack.c.b16 %v2956_v0, %v2956_v0  ;;  %v3005_v35 = vpack.c.b16 %v2957_v22, %v2957_v22 }
 0x34f   : > { %v2207_v52 = vpop.permute.xlu1 %2206 }
 0x350   : > { %v2209_v14 = vrot.slane %v2207_v52, 4  ;;  %v3086_v49 = vsel %vm3042_vm14, %v3004_v61, 0  ;;  %v3089_v20 = vsel %vm3042_vm14, %v3005_v35, 0 }
 0x351   : > { %3278 = vmatpush.bf16.msrb.mxu2 %v3086_v49  ;;  %3291 = vmatpush.bf16.msrb.mxu3 %v3089_v20 }
 0x352   : > { %v2210_v31 = vsel %vm286_vm0, %v2208_v44, %v2209_v14  ;;  %v3204_v41 = vpop.f32.mrf.mxu0  ;;  %v3217_v62 = vpop.f32.mrf.mxu1 }
 0x353   : > { %v2211_v36 = vsel %vm325_vm6, %v2205_v55, %v2210_v31  ;;  %v3931_v19 = vld [vmem:[#allocation2 + $0xec] sm:$0xf0]  ;;  %v3871_v28 = vld [vmem:[#allocation2 + $0xf0] sm:$0xf0]  ;;  %v3230_v40 = vpop.f32.mrf.mxu2  ;;  %v3243_v56 = vpop.f32.mrf.mxu3 }
 0x354   : > { %2213 = vst [vmem:[#allocation2 + $0x30] sm:$0xcc] %v2211_v36  ;;  %v3870_v17 = vor.u32 %v3931_v19, %v3869_v27  ;;  %v3874_v21 = vor.u32 %v3923_v18, %v3871_v28  ;;  %v2836_v44 = vpop.permute.xlu0 %2835 }
 0x355   : > { %3279 = vmatpush.bf16.msrb.mxu2 %v3878_v39  ;;  %3292 = vmatpush.bf16.msrb.mxu3 %v3882_v30  ;;  %v3166_v61 = vadd.f32 %v3165_v60, %v2836_v44  ;;  %v3127_v35 = vadd.f32 %v5210_v13, %v2836_v44  ;;  %v3140_v52 = vadd.f32 %v5212_v3, %v2836_v44 }
 0x356   : > { %3253 = vmatpush.bf16.msrb.mxu0 %v3870_v17  ;;  %3266 = vmatpush.bf16.msrb.mxu1 %v3874_v21  ;;  %v3101_v5 = vadd.f32 %v5205_v54, %v2836_v44  ;;  %v3114_v14 = vadd.f32 %v5207_v50, %v2836_v44  ;;  %v3179_v49 = vadd.f32 %v3178_v46, %v2836_v44 }
 0x357   : > { %v2289_v42 = vpop.permute.xlu1 %2288  ;;  %v3192_v20 = vadd.f32 %v3191_v24, %v2836_v44  ;;  %v3336_v27 = vadd.f32 %v3140_v52, %v3127_v35  ;;  %v3300_v18 = vpack.c.bf16 %v3140_v52, %v3127_v35  ;;  %v3205_v58 = vadd.f32 %v3204_v41, %v2836_v44 }
 0x358   : > { %v2292_v34 = vrot.slane %v2289_v42, 4  ;;  %v3315_v3 = vadd.f32 %v3114_v14, %v3101_v5  ;;  %v3299_v6 = vpack.c.bf16 %v3114_v14, %v3101_v5  ;;  %v3324_v50 = vmax.f32 %v3101_v5, %v3114_v14 }
 0x359   : > { %3280 = vmatpush.bf16.msrb.mxu2 %v3814_v32  ;;  %3293 = vmatpush.bf16.msrb.mxu3 %v3818_v4  ;;  %v3302_v54 = vpack.c.bf16 %v3192_v20, %v3179_v49  ;;  %3308 = vst [vmem:[%s5237_s30 + $0x8] sm:$0xff] %v3300_v18  ;;  %v3218_v31 = vadd.f32 %v3217_v62, %v2836_v44 }
 0x35a   : > { %v2294_v43 = vsel %vm286_vm0, %v2292_v34, %v2293_v51  ;;  %v3206_v57 = vpop.f32.mrf.mxu0  ;;  %v3219_v38 = vpop.f32.mrf.mxu1  ;;  %3337 = vadd.xlane.f32.xlu2 %v3336_v27  ;;  %3316 = vadd.xlane.f32.xlu1 %v3315_v3  ;;  %3307 = vst [vmem:[%s5237_s30] sm:$0xff] %v3299_v6  ;;  %v3231_v63 = vadd.f32 %v3230_v40, %v2836_v44 }
 0x35b   : > { %v2295_v45 = vsel %vm414_vm8, %v2289_v42, %v2294_v43  ;;  %v3805_v9 = vld [vmem:[#allocation2 + $0x30] sm:$0xf]  ;;  %v3907_v55 = vld [vmem:[#allocation2 + $0x34] sm:$0xf]  ;;  %v3232_v0 = vpop.f32.mrf.mxu2  ;;  %v3245_v22 = vpop.f32.mrf.mxu3  ;;  %v3244_v1 = vadd.f32 %v3243_v56, %v2836_v44  ;;  %3310 = vst [vmem:[%s5237_s30 + $0x18] sm:$0xff] %v3302_v54  ;;  %v3303_v48 = vpack.c.bf16 %v3218_v31, %v3205_v58  ;;  %v3378_v37 = vadd.f32 %v3192_v20, %v3179_v49 }
 0x35c   : > { %2297 = vst [vmem:[#allocation2 + $0x70] sm:$0xcc] %v2295_v45  ;;  %3897 = vmatmul.msk.bf16.vlgmr.msrb.gmra.mxu2 %vm3038_vm15, %v5005_v2  ;;  %3898 = vmatmul.msk.bf16.vlgmr.msrb.gmra.mxu3 %vm3038_vm15, %v5005_v2  ;;  %v3345_v36 = vmax.f32 %v3127_v35, %v3140_v52  ;;  %v3387_v30 = vmax.f32 %v3179_v49, %v3192_v20 }
 0x35d   : > { %v3304_v12 = vpack.c.bf16 %v3244_v1, %v3231_v63  ;;  %3311 = vst [vmem:[%s5237_s30 + $0x20] sm:$0xff] %v3303_v48  ;;  %v3399_v19 = vadd.f32 %v3218_v31, %v3205_v58  ;;  %v3420_v28 = vadd.f32 %v3244_v1, %v3231_v63  ;;  %v3408_v7 = vmax.f32 %v3205_v58, %v3218_v31 }
 0x35e   : > { %v3429_v17 = vmax.f32 %v3231_v63, %v3244_v1 }
 0x35f   : > { %3312 = vst [vmem:[%s5237_s30 + $0x28] sm:$0xff] %v3304_v12 }
 0x362   : > { %3379 = vadd.xlane.f32.xlu2 %v3378_v37  ;;  %3346 = vmax.xlane.f32.xlu1 %v3345_v36 }
 0x363   : > { %v3915_v33 = vld [vmem:[#allocation2 + $0x6c] sm:$0xf0]  ;;  %v3807_v26 = vld [vmem:[#allocation2 + $0x70] sm:$0xf0] }
 0x364   : > { %v3806_v16 = vor.u32 %v3915_v33, %v3805_v9  ;;  %v3810_v23 = vor.u32 %v3907_v55, %v3807_v26 }
 0x366   : > { %3254 = vmatpush.bf16.msrb.mxu0 %v3806_v16  ;;  %3267 = vmatpush.bf16.msrb.mxu1 %v3810_v23 }
 0x369   : > { %3895 = vmatmul.msk.bf16.vlgmr.msrb.gmra.mxu0 %vm3038_vm15, %v5005_v2  ;;  %3896 = vmatmul.msk.bf16.vlgmr.msrb.gmra.mxu1 %vm3038_vm15, %v5005_v2  ;;  %v3153_v2 = vadd.f32 %v3152_v59, %v2836_v44 }
 0x36a   : > { %3400 = vadd.xlane.f32.xlu1 %v3399_v19 }
 0x36b   : > { %v3301_v15 = vpack.c.bf16 %v3166_v61, %v3153_v2  ;;  %v3357_v13 = vadd.f32 %v3166_v61, %v3153_v2  ;;  %v3366_v39 = vmax.f32 %v3153_v2, %v3166_v61 }
 0x36d   : > { %3309 = vst [vmem:[%s5237_s30 + $0x10] sm:$0xff] %v3301_v15  ;;  %3358 = vadd.xlane.f32.xlu0 %v3357_v13  ;;  %3367 = vmax.xlane.f32.xlu2 %v3366_v39 }
 0x372   : > { %3409 = vmax.xlane.f32.xlu1 %v3408_v7 }
 0x375   : > { %3325 = vmax.xlane.f32.xlu0 %v3324_v50  ;;  %3421 = vadd.xlane.f32.xlu2 %v3420_v28 }
 0x37d   : > { %3388 = vmax.xlane.f32.xlu0 %v3387_v30 }
 0x3cd   : > { %v3338_v60 = vpop.xlane.xlu2 %3337  ;;  %v3317_v47 = vpop.xlane.xlu1 %3316 }
 0x3ce   : > { %v3339_v24 = vrot.slane %v3338_v60, 4  ;;  %v3318_v11 = vrot.slane %v3317_v47, 4 }
 0x3d0   : > { %v3340_v8 = vadd.f32 %v3339_v24, %v3338_v60  ;;  %v3319_v62 = vadd.f32 %v3318_v11, %v3317_v47 }
 0x3d2   : > { %v3341_v40 = vrot.slane %v3340_v8, 2  ;;  %v3320_v57 = vrot.slane %v3319_v62, 2 }
 0x3d4   : > { %v3342_v38 = vadd.f32 %v3341_v40, %v3340_v8  ;;  %v3321_v22 = vadd.f32 %v3320_v57, %v3319_v62 }
 0x3d5   : > { %v3347_v14 = vpop.xlane.xlu1 %3346 }
 0x3d6   : > { %v3343_v61 = vrot.slane %v3342_v38, 1  ;;  %v3322_v49 = vrot.slane %v3321_v22, 1  ;;  %v3348_v20 = vrot.slane %v3347_v14, 4 }
 0x3d8   : > { %v3344_v15 = vadd.f32 %v3343_v61, %v3342_v38  ;;  %v3323_v3 = vadd.f32 %v3322_v49, %v3321_v22  ;;  %v3349_v6 = vmax.f32 %v3347_v14, %v3348_v20 }
 0x3da   : > { %v3354_v54 = vmul.f32 0.00048828125, %v3344_v15  ;;  %v3333_v63 = vmul.f32 0.00048828125, %v3323_v3  ;;  %v3350_v1 = vrot.slane %v3349_v6, 2 }
 0x3dc   : > { %3355 = vst [vmem:[%s5255_s14 + $0x1] sm:$0x1] %v3354_v54  ;;  %v3351_v12 = vmax.f32 %v3349_v6, %v3350_v1 }
 0x3dd   : > { %3334 = vst [vmem:[%s5255_s14] sm:$0x1] %v3333_v63  ;;  %v3401_v7 = vpop.xlane.xlu1 %3400 }
 0x3df   : > { %v3282_v21 = vpop.f32.mrf.mxu2  ;;  %v3295_v53 = vpop.f32.mrf.mxu3 }
 0x3e0   : > { %v3283_v10 = vadd.f32 %v3282_v21, %v2836_v44  ;;  %v3296_v25 = vadd.f32 %v3295_v53, %v2836_v44  ;;  %v3359_v46 = vpop.xlane.xlu0 %3358  ;;  %v3352_v21 = vrot.slane %v3351_v12, 1  ;;  %v3402_v53 = vrot.slane %v3401_v7, 4 }
 0x3e1   : > { %v3360_v29 = vrot.slane %v3359_v46, 4 }
 0x3e2   : > { %v3306_v42 = vpack.c.bf16 %v3296_v25, %v3283_v10  ;;  %v3462_v32 = vadd.f32 %v3296_v25, %v3283_v10  ;;  %v3471_v59 = vmax.f32 %v3283_v10, %v3296_v25 }
 0x3e3   : > { %v3361_v41 = vadd.f32 %v3360_v29, %v3359_v46 }
 0x3e4   : > { %3314 = vst [vmem:[%s5237_s30 + $0x38] sm:$0xff] %v3306_v42  ;;  %3463 = vadd.xlane.f32.xlu2 %v3462_v32 }
 0x3e5   : > { %v3362_v56 = vrot.slane %v3361_v41, 2  ;;  %v3410_v46 = vpop.xlane.xlu1 %3409 }
 0x3e6   : > { %v3256_v4 = vpop.f32.mrf.mxu0  ;;  %v3269_v51 = vpop.f32.mrf.mxu1  ;;  %v3411_v29 = vrot.slane %v3410_v46, 4 }
 0x3e7   : > { %v3257_v34 = vadd.f32 %v3256_v4, %v2836_v44  ;;  %v3270_v43 = vadd.f32 %v3269_v51, %v2836_v44  ;;  %v3284_v45 = vpop.f32.mrf.mxu2  ;;  %v3297_v9 = vpop.f32.mrf.mxu3  ;;  %v3363_v0 = vadd.f32 %v3362_v56, %v3361_v41  ;;  %v3353_v4 = vmax.f32 %v3351_v12, %v3352_v21 }
 0x3e8   : > { %v3380_v44 = vpop.xlane.xlu2 %3379  ;;  %v3326_v2 = vpop.xlane.xlu0 %3325  ;;  %v3403_v51 = vadd.f32 %v3402_v53, %v3401_v7  ;;  %v3412_v62 = vmax.f32 %v3410_v46, %v3411_v29 }
 0x3e9   : > { %v3305_v33 = vpack.c.bf16 %v3270_v43, %v3257_v34  ;;  %v3450_v55 = vmax.f32 %v3257_v34, %v3270_v43  ;;  %v3441_v26 = vadd.f32 %v3270_v43, %v3257_v34  ;;  %v3364_v35 = vrot.slane %v3363_v0, 1  ;;  %3356 = vst [vmem:[%s5263_s16 + $0x1] sm:$0x1] %v3353_v4 }
 0x3ea   : > { %v3381_v52 = vrot.slane %v3380_v44, 4  ;;  %v3327_v5 = vrot.slane %v3326_v2, 4  ;;  %v3404_v9 = vrot.slane %v3403_v51, 2  ;;  %v3413_v57 = vrot.slane %v3412_v62, 2 }
 0x3eb   : > { %3313 = vst [vmem:[%s5237_s30 + $0x30] sm:$0xff] %v3305_v33  ;;  %3451 = vmax.xlane.f32.xlu0 %v3450_v55  ;;  %3442 = vadd.xlane.f32.xlu1 %v3441_v26  ;;  %v3365_v27 = vadd.f32 %v3364_v35, %v3363_v0 }
 0x3ec   : > { %3430 = vmax.xlane.f32.xlu2 %v3429_v17  ;;  %v3382_v18 = vadd.f32 %v3381_v52, %v3380_v44  ;;  %v3328_v13 = vmax.f32 %v3326_v2, %v3327_v5  ;;  %v3405_v26 = vadd.f32 %v3404_v9, %v3403_v51  ;;  %v3414_v0 = vmax.f32 %v3412_v62, %v3413_v57 }
 0x3ed   : > { %v3375_v50 = vmul.f32 0.00048828125, %v3365_v27 }
 0x3ee   : > { %v3258_v16 = vpop.f32.mrf.mxu0  ;;  %v3271_v23 = vpop.f32.mrf.mxu1  ;;  %v3383_v58 = vrot.slane %v3382_v18, 2  ;;  %v3329_v31 = vrot.slane %v3328_v13, 2  ;;  %v3406_v24 = vrot.slane %v3405_v26, 1  ;;  %v3415_v44 = vrot.slane %v3414_v0, 1 }
 0x3ef   : > { %3376 = vst [vmem:[%s5255_s14 + $0x2] sm:$0x1] %v3375_v50 }
 0x3f0   : > { %v3384_v48 = vadd.f32 %v3383_v58, %v3382_v18  ;;  %v3330_v37 = vmax.f32 %v3328_v13, %v3329_v31  ;;  %v3368_v36 = vpop.xlane.xlu2 %3367  ;;  %v3389_v39 = vpop.xlane.xlu0 %3388  ;;  %v3407_v41 = vadd.f32 %v3406_v24, %v3405_v26  ;;  %v3416_v61 = vmax.f32 %v3414_v0, %v3415_v44 }
 0x3f1   : > { %v3369_v28 = vrot.slane %v3368_v36, 4  ;;  %v3390_v17 = vrot.slane %v3389_v39, 4 }
 0x3f2   : > { %v3385_v30 = vrot.slane %v3384_v48, 1  ;;  %v3331_v19 = vrot.slane %v3330_v37, 1  ;;  %v3417_v56 = vmul.f32 0.00048828125, %v3407_v41  ;;  %3419 = vst [vmem:[%s5263_s16 + $0x4] sm:$0x1] %v3416_v61 }
 0x3f3   : > { %3472 = vmax.xlane.f32.xlu1 %v3471_v59  ;;  %v3370_v42 = vmax.f32 %v3368_v36, %v3369_v28  ;;  %v3391_v32 = vmax.f32 %v3389_v39, %v3390_v17 }
 0x3f4   : > { %v3386_v10 = vadd.f32 %v3385_v30, %v3384_v48  ;;  %v3332_v25 = vmax.f32 %v3330_v37, %v3331_v19  ;;  %3418 = vst [vmem:[%s5255_s14 + $0x4] sm:$0x1] %v3417_v56 }
 0x3f5   : > { %v3371_v43 = vrot.slane %v3370_v42, 2  ;;  %v3392_v45 = vrot.slane %v3391_v32, 2 }
 0x3f6   : > { %v3396_v34 = vmul.f32 0.00048828125, %v3386_v10  ;;  %3335 = vst [vmem:[%s5263_s16] sm:$0x1] %v3332_v25 }
 0x3f7   : > { %v3372_v33 = vmax.f32 %v3370_v42, %v3371_v43  ;;  %v3393_v55 = vmax.f32 %v3391_v32, %v3392_v45 }
 0x3f8   : > { %3397 = vst [vmem:[%s5255_s14 + $0x3] sm:$0x1] %v3396_v34  ;;  %v3422_v16 = vpop.xlane.xlu2 %3421 }
 0x3f9   : > { %v3373_v23 = vrot.slane %v3372_v33, 1  ;;  %v3423_v59 = vrot.slane %v3422_v16, 4  ;;  %v3394_v60 = vrot.slane %v3393_v55, 1 }
 0x3fb   : > { %v3374_v47 = vmax.f32 %v3372_v33, %v3373_v23  ;;  %v3424_v11 = vadd.f32 %v3423_v59, %v3422_v16  ;;  %v3395_v8 = vmax.f32 %v3393_v55, %v3394_v60 }
 0x3fd   : > { %3377 = vst [vmem:[%s5263_s16 + $0x2] sm:$0x1] %v3374_v47  ;;  %v3425_v40 = vrot.slane %v3424_v11, 2 }
 0x3fe   : > { %3398 = vst [vmem:[%s5263_s16 + $0x3] sm:$0x1] %v3395_v8 }
 0x3ff   : > { %v3426_v38 = vadd.f32 %v3425_v40, %v3424_v11 }
 0x401   : > { %v3427_v22 = vrot.slane %v3426_v38, 1 }
 0x403   : > { %v3428_v2 = vadd.f32 %v3427_v22, %v3426_v38 }
 0x405   : > { %v3438_v35 = vmul.f32 0.00048828125, %v3428_v2 }
 0x407   : > { %3439 = vst [vmem:[%s5255_s14 + $0x5] sm:$0x1] %v3438_v35 }
 0x457   : > { %v3464_v52 = vpop.xlane.xlu2 %3463 }
 0x458   : > { %v3465_v5 = vrot.slane %v3464_v52, 4 }
 0x45a   : > { %v3466_v14 = vadd.f32 %v3465_v5, %v3464_v52 }
 0x45c   : > { %v3467_v49 = vrot.slane %v3466_v14, 2 }
 0x45e   : > { %v3468_v20 = vadd.f32 %v3467_v49, %v3466_v14  ;;  %v3452_v15 = vpop.xlane.xlu0 %3451  ;;  %v3443_v27 = vpop.xlane.xlu1 %3442 }
 0x45f   : > { %v3453_v18 = vrot.slane %v3452_v15, 4  ;;  %v3444_v13 = vrot.slane %v3443_v27, 4  ;;  %v3431_v3 = vpop.xlane.xlu2 %3430 }
 0x460   : > { %v3469_v6 = vrot.slane %v3468_v20, 1  ;;  %v3432_v54 = vrot.slane %v3431_v3, 4 }
 0x461   : > { %v3454_v50 = vmax.f32 %v3452_v15, %v3453_v18  ;;  %v3445_v58 = vadd.f32 %v3444_v13, %v3443_v27 }
 0x462   : > { %v3470_v31 = vadd.f32 %v3469_v6, %v3468_v20  ;;  %v3433_v63 = vmax.f32 %v3431_v3, %v3432_v54 }
 0x463   : > { %v3455_v1 = vrot.slane %v3454_v50, 2  ;;  %v3446_v48 = vrot.slane %v3445_v58, 2 }
 0x464   : > { %v3480_v37 = vmul.f32 0.00048828125, %v3470_v31  ;;  %v3434_v12 = vrot.slane %v3433_v63, 2 }
 0x465   : > { %v3456_v36 = vmax.f32 %v3454_v50, %v3455_v1  ;;  %v3447_v39 = vadd.f32 %v3446_v48, %v3445_v58 }
 0x466   : > { %3481 = vst [vmem:[%s5255_s14 + $0x7] sm:$0x1] %v3480_v37  ;;  %v3435_v30 = vmax.f32 %v3433_v63, %v3434_v12  ;;  %v3473_v19 = vpop.xlane.xlu1 %3472 }
 0x467   : > { %v3457_v28 = vrot.slane %v3456_v36, 1  ;;  %v3448_v7 = vrot.slane %v3447_v39, 1  ;;  %v3474_v17 = vrot.slane %v3473_v19, 4 }
 0x468   : > { %v3436_v21 = vrot.slane %v3435_v30, 1 }
 0x469   : > { %v3458_v53 = vmax.f32 %v3456_v36, %v3457_v28  ;;  %v3449_v10 = vadd.f32 %v3448_v7, %v3447_v39  ;;  %v3475_v25 = vmax.f32 %v3473_v19, %v3474_v17 }
 0x46a   : > { %v3437_v42 = vmax.f32 %v3435_v30, %v3436_v21 }
 0x46b   : > { %3461 = vst [vmem:[%s5263_s16 + $0x6] sm:$0x1] %v3458_v53  ;;  %v3459_v32 = vmul.f32 0.00048828125, %v3449_v10  ;;  %v3476_v4 = vrot.slane %v3475_v25, 2 }
 0x46c   : > { %3440 = vst [vmem:[%s5263_s16 + $0x5] sm:$0x1] %v3437_v42 }
 0x46d   : > { %3460 = vst [vmem:[%s5255_s14 + $0x6] sm:$0x1] %v3459_v32  ;;  %v3477_v51 = vmax.f32 %v3475_v25, %v3476_v4 }
 0x46f   : > { %v3478_v34 = vrot.slane %v3477_v51, 1 }
 0x471   : > { %v3479_v43 = vmax.f32 %v3477_v51, %v3478_v34 }
 0x473   : > { %3482 = vst [vmem:[%s5263_s16 + $0x7] sm:$0x1] %v3479_v43 }
 0x474 PF: > { %s17_s21 = sadd.s32 1, %s3963_s21  }
 0x475   : > { %p14_p6 = scmp.ge.s32.totalorder %s17_s21, 4  }
 0x477   :  { %16 = sbr.rel (!%p14_p6) target bundleno = 1 (0x1), region = 162 }

</bundles_post_ra>
